<compile_context>
chip_gen: v7x
topology: tpu7x:2x2x1
jax: 0.10.0
libtpu: 0.0.40
codegen_flags: <defaults>
</compile_context>

<pallas_src>
import functools

import jax
import jax.numpy as jnp
from jax import lax
from jax.experimental import pallas as pl
from jax.experimental.pallas import tpu as pltpu

C1, C2 = 64, 32          # fixed channel widths of the Decoder
NEG_SLOPE = 0.1


def _leaky(x):
    return jnp.where(x >= 0, x, NEG_SLOPE * x)


# ----------------------------------------------------------------------------
# Fused decoder kernel: conv1 -> lrelu -> conv2 -> lrelu -> conv3, one image
# per grid step; intermediates stay in VMEM scratch.
# ----------------------------------------------------------------------------
def _make_decoder_kernel(H, W, Cin):
    HW = H * W

    def kernel(xc_ref, w1_ref, b1_ref, w2_ref, b2_ref, w3_ref, b3_ref,
               o_ref, h1_pad, h2_pad):
        # xc_ref : (1, HW, 9*Cin)   full-im2col input (taps folded into K)
        # w1_ref : (9*Cin, C1)      b1_ref: (1, C1)
        # w2_ref : (3, 3*C1, C2)    b2_ref: (1, C2)   (kx folded, ky accumulated)
        # w3_ref : (3, 3*C2)        b3_ref: (1,) in SMEM
        # o_ref  : (1, 1, HW)       lane-dense output block
        # h1_pad : (H+2, W+2, C1) f32 VMEM scratch (zero border)
        # h2_pad : (H+2, W+2, C2) f32 VMEM scratch (zero border)

        # Re-zero the padded scratch every step (interior is overwritten below)
        # so the grid axis can safely stay "parallel" (megacore / 2-TC chips).
        h1_pad[...] = jnp.zeros_like(h1_pad)
        h2_pad[...] = jnp.zeros_like(h2_pad)

        # ---- conv1 + LeakyReLU: single MXU matmul, K = 9*Cin ----------------
        h1 = jnp.dot(xc_ref[0], w1_ref[...],
                     preferred_element_type=jnp.float32)          # (HW, C1)
        h1 = _leaky(h1 + b1_ref[...])
        h1_pad[1:H + 1, 1:W + 1, :] = h1.reshape(H, W, C1)        # stays in VMEM

        # ---- conv2 + LeakyReLU: kx-folded im2col, 3 matmuls with K = 3*C1 ---
        cols1 = jnp.concatenate(
            [h1_pad[:, kx:kx + W, :] for kx in range(3)], axis=-1)  # (H+2, W, 3*C1)
        acc2 = jnp.zeros((HW, C2), jnp.float32)
        for ky in range(3):
            patch = cols1[ky:ky + H].reshape(HW, 3 * C1)
            acc2 += jnp.dot(patch, w2_ref[ky],
                            preferred_element_type=jnp.float32)
        h2 = _leaky(acc2 + b2_ref[...])                            # (HW, C2)
        h2_pad[1:H + 1, 1:W + 1, :] = h2.reshape(H, W, C2)

        # ---- conv3 (Cout = 1): VPU weighted sum, lane-dense output ----------
        cols2 = jnp.concatenate(
            [h2_pad[:, kx:kx + W, :] for kx in range(3)], axis=-1)  # (H+2, W, 3*C2)
        w3 = w3_ref[...]                                            # (3, 3*C2)
        prod = jnp.zeros((HW, 3 * C2), jnp.float32)
        for ky in range(3):
            patch = cols2[ky:ky + H].reshape(HW, 3 * C2)
            prod += patch * w3[ky:ky + 1, :]
        out = jnp.sum(prod, axis=-1, keepdims=True) + b3_ref[0]     # (HW, 1)
        o_ref[...] = out.reshape(1, 1, HW).astype(o_ref.dtype)

    return kernel


# ----------------------------------------------------------------------------
# Decoder forward (accepts NCHW like the PyTorch module)
# ----------------------------------------------------------------------------
def _decoder_pallas(params, x_nchw):
    x = jnp.transpose(x_nchw, (0, 2, 3, 1)).astype(jnp.float32)    # NHWC
    N, H, W, Cin = x.shape
    HW = H * W

    # Single zero-pad of the raw input + full 9-tap im2col for conv1
    # (wrapper-side layout plumbing; folds all taps into the matmul K dim and
    #  avoids a 4->128 lane-padded input block).
    x_pad = jnp.pad(x, ((0, 0), (1, 1), (1, 1), (0, 0)))
    x_cols = jnp.concatenate(
        [x_pad[:, ky:ky + H, kx:kx + W, :]
         for ky in range(3) for kx in range(3)], axis=-1)          # (N,H,W,9*Cin)
    x_cols = x_cols.reshape(N, HW, 9 * Cin)

    # Fold taps into the weight contraction dim (HWIO -> (taps*Cin, Cout)).
    w1 = params["w1"].reshape(9 * Cin, C1)
    b1 = params["b1"].reshape(1, C1)
    w2 = params["w2"].reshape(3, 3 * C1, C2)
    b2 = params["b2"].reshape(1, C2)
    w3 = params["w3"].reshape(3, 3 * C2)
    b3 = params["b3"].reshape(1)

    flops = 2 * N * HW * 9 * (Cin * C1 + C1 * C2 + C2 * 1)
    bytes_accessed = 4 * (x_cols.size + w1.size + b1.size + w2.size + b2.size
                          + w3.size + b3.size + N * HW)

    kernel = _make_decoder_kernel(H, W, Cin)

    out = pl.pallas_call(
        kernel,
        out_shape=jax.ShapeDtypeStruct((N, 1, HW), x.dtype),
        grid_spec=pltpu.PrefetchScalarGridSpec(
            num_scalar_prefetch=0,
            grid=(N,),                                   # one image per step
            in_specs=[
                pl.BlockSpec((1, HW, 9 * Cin), lambda n: (n, 0, 0)),
                pl.BlockSpec((9 * Cin, C1), lambda n: (0, 0)),
                pl.BlockSpec((1, C1), lambda n: (0, 0)),
                pl.BlockSpec((3, 3 * C1, C2), lambda n: (0, 0, 0)),
                pl.BlockSpec((1, C2), lambda n: (0, 0)),
                pl.BlockSpec((3, 3 * C2), lambda n: (0, 0)),
                pl.BlockSpec(memory_space=pltpu.MemorySpace.SMEM),   # bias3 scalar
            ],
            out_specs=pl.BlockSpec((1, 1, HW), lambda n: (n, 0, 0)),
            scratch_shapes=[
                pltpu.VMEM((H + 2, W + 2, C1), jnp.float32),   # conv1 output
                pltpu.VMEM((H + 2, W + 2, C2), jnp.float32),   # conv2 output
            ],
        ),
        compiler_params=pltpu.CompilerParams(
            dimension_semantics=("parallel",)),
        cost_estimate=pl.CostEstimate(
            flops=flops, transcendentals=0, bytes_accessed=bytes_accessed),
    )(x_cols, w1, b1, w2, b2, w3, b3)

    return out.reshape(N, 1, H, W)                      # NCHW, single channel


decoder_forward = jax.jit(_decoder_pallas)


# ----------------------------------------------------------------------------
# Parameter init (deterministic, mirrors the PyTorch __init__)
#   nn.init.kaiming_normal_(weight, mode='fan_out', nonlinearity='relu')
#   bias: PyTorch default conv init uniform(-1/sqrt(fan_in), 1/sqrt(fan_in))
# ----------------------------------------------------------------------------
def init_decoder_params(key, in_channels):
    def conv_params(key, cin, cout):
        kw, kb = jax.random.split(key)
        fan_out = cout * 3 * 3
        std = (2.0 / fan_out) ** 0.5
        w_oihw = std * jax.random.normal(kw, (cout, cin, 3, 3), jnp.float32)
        w_hwio = jnp.transpose(w_oihw, (2, 3, 1, 0))
        fan_in = cin * 3 * 3
        bound = 1.0 / (fan_in ** 0.5)
        b = jax.random.uniform(kb, (cout,), jnp.float32, -bound, bound)
        return w_hwio, b

    k1, k2, k3 = jax.random.split(key, 3)
    w1, b1 = conv_params(k1, in_channels, C1)
    w2, b2 = conv_params(k2, C1, C2)
    w3, b3 = conv_params(k3, C2, 1)
    return {"w1": w1, "b1": b1, "w2": w2, "b2": b2, "w3": w3, "b3": b3}


# Pure-JAX reference (same math) for a correctness check.
def decoder_reference(params, x_nchw):
    def conv(x, w, b):
        y = lax.conv_general_dilated(
            x, w, window_strides=(1, 1), padding="SAME",
            dimension_numbers=("NHWC", "HWIO", "NHWC"),
            precision=lax.Precision.HIGHEST)
        return y + b

    x = jnp.transpose(x_nchw, (0, 2, 3, 1))
    h = _leaky(conv(x, params["w1"], params["b1"]))
    h = _leaky(conv(h, params["w2"], params["b2"]))
    o = conv(h, params["w3"], params["b3"])
    return jnp.transpose(o, (0, 3, 1, 2))


if __name__ == "__main__":
    key = jax.random.PRNGKey(0)
    k_param, k_x = jax.random.split(key)

    in_channels = 4
    x = jax.random.normal(k_x, (2, in_channels, 16, 16), jnp.float32)
    params = init_decoder_params(k_param, in_channels)

    out = decoder_forward(params, x)
    out = jax.block_until_ready(out)

    ref = decoder_reference(params, x)
    assert out.shape == (2, 1, 16, 16), out.shape
    max_err = float(jnp.max(jnp.abs(out - ref)))
    assert max_err < 1e-3, max_err

    print("KERNEL_OK")
</pallas_src>

<mosaic_0001>
module attributes {stable_mosaic.version = 11 : i64} {
  func.func @kernel(%arg0: i32, %arg1: memref<1x256x36xf32, #tpu.memory_space<vmem>>, %arg2: memref<36x64xf32, #tpu.memory_space<vmem>>, %arg3: memref<1x64xf32, #tpu.memory_space<vmem>>, %arg4: memref<3x192x32xf32, #tpu.memory_space<vmem>>, %arg5: memref<1x32xf32, #tpu.memory_space<vmem>>, %arg6: memref<3x96xf32, #tpu.memory_space<vmem>>, %arg7: memref<1xf32, #tpu.memory_space<smem>>, %arg8: memref<1x1x256xf32, #tpu.memory_space<vmem>>, %arg9: memref<18x18x64xf32, #tpu.memory_space<vmem>>, %arg10: memref<18x18x32xf32, #tpu.memory_space<vmem>>) attributes {dimension_semantics = [#tpu.dimension_semantics<parallel>], iteration_bounds = array<i64: 2>, scalar_prefetch = 0 : i64, scratch_operands = 2 : i64, tpu.core_type = #tpu.core_type<tc>, window_params = [{transform_indices = @transform_0, window_bounds = array<i64: 1, 256, 36>}, {pipeline_mode = #tpu.pipeline_mode<synchronous>, transform_indices = @transform_1, window_bounds = array<i64: 36, 64>}, {pipeline_mode = #tpu.pipeline_mode<synchronous>, transform_indices = @transform_2, window_bounds = array<i64: 1, 64>}, {pipeline_mode = #tpu.pipeline_mode<synchronous>, transform_indices = @transform_3, window_bounds = array<i64: 3, 192, 32>}, {pipeline_mode = #tpu.pipeline_mode<synchronous>, transform_indices = @transform_4, window_bounds = array<i64: 1, 32>}, {pipeline_mode = #tpu.pipeline_mode<synchronous>, transform_indices = @transform_5, window_bounds = array<i64: 3, 96>}, {transform_indices = @transform_6, window_bounds = array<i64: 1>}, {transform_indices = @transform_7, window_bounds = array<i64: 1, 1, 256>}]} {
    %cst = arith.constant 0.000000e+00 : f32
    %0 = vector.broadcast %cst : f32 to vector<18x18x64xf32>
    %c0 = arith.constant 0 : index
    %c0_0 = arith.constant 0 : index
    %c0_1 = arith.constant 0 : index
    %1 = vector.load %arg9[%c0, %c0_0, %c0_1] : memref<18x18x64xf32, #tpu.memory_space<vmem>>, vector<18x18x64xf32>
    tpu.vector_store %arg9[%c0, %c0_0, %c0_1], %0 {strides = array<i32>} : memref<18x18x64xf32, #tpu.memory_space<vmem>>, vector<18x18x64xf32>,
    %cst_2 = arith.constant 0.000000e+00 : f32
    %2 = vector.broadcast %cst_2 : f32 to vector<18x18x32xf32>
    %c0_3 = arith.constant 0 : index
    %c0_4 = arith.constant 0 : index
    %c0_5 = arith.constant 0 : index
    %3 = vector.load %arg10[%c0_3, %c0_4, %c0_5] : memref<18x18x32xf32, #tpu.memory_space<vmem>>, vector<18x18x32xf32>
    tpu.vector_store %arg10[%c0_3, %c0_4, %c0_5], %2 {strides = array<i32>} : memref<18x18x32xf32, #tpu.memory_space<vmem>>, vector<18x18x32xf32>,
    %c0_6 = arith.constant 0 : index
    %c0_7 = arith.constant 0 : index
    %c0_8 = arith.constant 0 : index
    %4 = vector.load %arg1[%c0_6, %c0_7, %c0_8] : memref<1x256x36xf32, #tpu.memory_space<vmem>>, vector<1x256x36xf32>
    %5 = vector.shape_cast %4 : vector<1x256x36xf32> to vector<256x36xf32>
    %c0_9 = arith.constant 0 : index
    %c0_10 = arith.constant 0 : index
    %6 = vector.load %arg2[%c0_9, %c0_10] : memref<36x64xf32, #tpu.memory_space<vmem>>, vector<36x64xf32>
    %cst_11 = arith.constant dense<0.000000e+00> : vector<256x64xf32>
    %7 = tpu.matmul %5, %6, %cst_11 {dimension_numbers = #tpu.dot_dimension_numbers<[1], [0], [0], [1], [0, 0, 1, 1], [], []>} : vector<256x36xf32>, vector<36x64xf32>, vector<256x64xf32> -> vector<256x64xf32>
    %c0_12 = arith.constant 0 : index
    %c0_13 = arith.constant 0 : index
    %8 = vector.load %arg3[%c0_12, %c0_13] : memref<1x64xf32, #tpu.memory_space<vmem>>, vector<1x64xf32>
    %9 = vector.broadcast %8 : vector<1x64xf32> to vector<256x64xf32>
    %10 = arith.addf %7, %9 : vector<256x64xf32>
    %cst_14 = arith.constant 0.000000e+00 : f32
    %11 = vector.broadcast %cst_14 : f32 to vector<256x64xf32>
    %12 = arith.cmpf oge, %10, %11 : vector<256x64xf32>
    %cst_15 = arith.constant 1.000000e-01 : f32
    %13 = vector.broadcast %cst_15 : f32 to vector<256x64xf32>
    %14 = arith.mulf %13, %10 : vector<256x64xf32>
    %15 = arith.select %12, %10, %14 : vector<256x64xi1>, vector<256x64xf32>
    %16 = vector.shape_cast %15 : vector<256x64xf32> to vector<16x16x64xf32>
    %c1 = arith.constant 1 : index
    %c1_16 = arith.constant 1 : index
    %c0_17 = arith.constant 0 : index
    %17 = vector.load %arg9[%c1, %c1_16, %c0_17] : memref<18x18x64xf32, #tpu.memory_space<vmem>>, vector<16x16x64xf32>
    tpu.vector_store %arg9[%c1, %c1_16, %c0_17], %16 {strides = array<i32>} : memref<18x18x64xf32, #tpu.memory_space<vmem>>, vector<16x16x64xf32>,
    %c0_18 = arith.constant 0 : index
    %c0_19 = arith.constant 0 : index
    %c0_20 = arith.constant 0 : index
    %18 = vector.load %arg9[%c0_18, %c0_19, %c0_20] : memref<18x18x64xf32, #tpu.memory_space<vmem>>, vector<18x16x64xf32>
    %c0_21 = arith.constant 0 : index
    %c1_22 = arith.constant 1 : index
    %c0_23 = arith.constant 0 : index
    %19 = vector.load %arg9[%c0_21, %c1_22, %c0_23] : memref<18x18x64xf32, #tpu.memory_space<vmem>>, vector<18x16x64xf32>
    %c0_24 = arith.constant 0 : index
    %c2 = arith.constant 2 : index
    %c0_25 = arith.constant 0 : index
    %20 = vector.load %arg9[%c0_24, %c2, %c0_25] : memref<18x18x64xf32, #tpu.memory_space<vmem>>, vector<18x16x64xf32>
    %21 = tpu.concatenate %18, %19, %20 in 2 : vector<18x16x64xf32>, vector<18x16x64xf32>, vector<18x16x64xf32> -> vector<18x16x192xf32>
    %cst_26 = arith.constant 0.000000e+00 : f32
    %22 = vector.broadcast %cst_26 : f32 to vector<256x32xf32>
    %23 = vector.extract_strided_slice %21 {offsets = [0, 0, 0], sizes = [16, 16, 192], strides = [1, 1, 1]} : vector<18x16x192xf32> to vector<16x16x192xf32>
    %24 = vector.shape_cast %23 : vector<16x16x192xf32> to vector<256x192xf32>
    %c0_27 = arith.constant 0 : index
    %c0_28 = arith.constant 0 : index
    %c0_29 = arith.constant 0 : index
    %25 = vector.load %arg4[%c0_27, %c0_28, %c0_29] : memref<3x192x32xf32, #tpu.memory_space<vmem>>, vector<1x192x32xf32>
    %26 = vector.shape_cast %25 : vector<1x192x32xf32> to vector<192x32xf32>
    %cst_30 = arith.constant dense<0.000000e+00> : vector<256x32xf32>
    %27 = tpu.matmul %24, %26, %cst_30 {dimension_numbers = #tpu.dot_dimension_numbers<[1], [0], [0], [1], [0, 0, 1, 1], [], []>} : vector<256x192xf32>, vector<192x32xf32>, vector<256x32xf32> -> vector<256x32xf32>
    %28 = arith.addf %22, %27 : vector<256x32xf32>
    %29 = vector.extract_strided_slice %21 {offsets = [1, 0, 0], sizes = [16, 16, 192], strides = [1, 1, 1]} : vector<18x16x192xf32> to vector<16x16x192xf32>
    %30 = vector.shape_cast %29 : vector<16x16x192xf32> to vector<256x192xf32>
    %c1_31 = arith.constant 1 : index
    %c0_32 = arith.constant 0 : index
    %c0_33 = arith.constant 0 : index
    %31 = vector.load %arg4[%c1_31, %c0_32, %c0_33] : memref<3x192x32xf32, #tpu.memory_space<vmem>>, vector<1x192x32xf32>
    %32 = vector.shape_cast %31 : vector<1x192x32xf32> to vector<192x32xf32>
    %cst_34 = arith.constant dense<0.000000e+00> : vector<256x32xf32>
    %33 = tpu.matmul %30, %32, %cst_34 {dimension_numbers = #tpu.dot_dimension_numbers<[1], [0], [0], [1], [0, 0, 1, 1], [], []>} : vector<256x192xf32>, vector<192x32xf32>, vector<256x32xf32> -> vector<256x32xf32>
    %34 = arith.addf %28, %33 : vector<256x32xf32>
    %35 = vector.extract_strided_slice %21 {offsets = [2, 0, 0], sizes = [16, 16, 192], strides = [1, 1, 1]} : vector<18x16x192xf32> to vector<16x16x192xf32>
    %36 = vector.shape_cast %35 : vector<16x16x192xf32> to vector<256x192xf32>
    %c2_35 = arith.constant 2 : index
    %c0_36 = arith.constant 0 : index
    %c0_37 = arith.constant 0 : index
    %37 = vector.load %arg4[%c2_35, %c0_36, %c0_37] : memref<3x192x32xf32, #tpu.memory_space<vmem>>, vector<1x192x32xf32>
    %38 = vector.shape_cast %37 : vector<1x192x32xf32> to vector<192x32xf32>
    %cst_38 = arith.constant dense<0.000000e+00> : vector<256x32xf32>
    %39 = tpu.matmul %36, %38, %cst_38 {dimension_numbers = #tpu.dot_dimension_numbers<[1], [0], [0], [1], [0, 0, 1, 1], [], []>} : vector<256x192xf32>, vector<192x32xf32>, vector<256x32xf32> -> vector<256x32xf32>
    %40 = arith.addf %34, %39 : vector<256x32xf32>
    %c0_39 = arith.constant 0 : index
    %c0_40 = arith.constant 0 : index
    %41 = vector.load %arg5[%c0_39, %c0_40] : memref<1x32xf32, #tpu.memory_space<vmem>>, vector<1x32xf32>
    %42 = vector.broadcast %41 : vector<1x32xf32> to vector<256x32xf32>
    %43 = arith.addf %40, %42 : vector<256x32xf32>
    %cst_41 = arith.constant 0.000000e+00 : f32
    %44 = vector.broadcast %cst_41 : f32 to vector<256x32xf32>
    %45 = arith.cmpf oge, %43, %44 : vector<256x32xf32>
    %cst_42 = arith.constant 1.000000e-01 : f32
    %46 = vector.broadcast %cst_42 : f32 to vector<256x32xf32>
    %47 = arith.mulf %46, %43 : vector<256x32xf32>
    %48 = arith.select %45, %43, %47 : vector<256x32xi1>, vector<256x32xf32>
    %49 = vector.shape_cast %48 : vector<256x32xf32> to vector<16x16x32xf32>
    %c1_43 = arith.constant 1 : index
    %c1_44 = arith.constant 1 : index
    %c0_45 = arith.constant 0 : index
    %50 = vector.load %arg10[%c1_43, %c1_44, %c0_45] : memref<18x18x32xf32, #tpu.memory_space<vmem>>, vector<16x16x32xf32>
    tpu.vector_store %arg10[%c1_43, %c1_44, %c0_45], %49 {strides = array<i32>} : memref<18x18x32xf32, #tpu.memory_space<vmem>>, vector<16x16x32xf32>,
    %c0_46 = arith.constant 0 : index
    %c0_47 = arith.constant 0 : index
    %c0_48 = arith.constant 0 : index
    %51 = vector.load %arg10[%c0_46, %c0_47, %c0_48] : memref<18x18x32xf32, #tpu.memory_space<vmem>>, vector<18x16x32xf32>
    %c0_49 = arith.constant 0 : index
    %c1_50 = arith.constant 1 : index
    %c0_51 = arith.constant 0 : index
    %52 = vector.load %arg10[%c0_49, %c1_50, %c0_51] : memref<18x18x32xf32, #tpu.memory_space<vmem>>, vector<18x16x32xf32>
    %c0_52 = arith.constant 0 : index
    %c2_53 = arith.constant 2 : index
    %c0_54 = arith.constant 0 : index
    %53 = vector.load %arg10[%c0_52, %c2_53, %c0_54] : memref<18x18x32xf32, #tpu.memory_space<vmem>>, vector<18x16x32xf32>
    %54 = tpu.concatenate %51, %52, %53 in 2 : vector<18x16x32xf32>, vector<18x16x32xf32>, vector<18x16x32xf32> -> vector<18x16x96xf32>
    %c0_55 = arith.constant 0 : index
    %c0_56 = arith.constant 0 : index
    %55 = vector.load %arg6[%c0_55, %c0_56] : memref<3x96xf32, #tpu.memory_space<vmem>>, vector<3x96xf32>
    %cst_57 = arith.constant 0.000000e+00 : f32
    %56 = vector.broadcast %cst_57 : f32 to vector<256x96xf32>
    %57 = vector.extract_strided_slice %54 {offsets = [0, 0, 0], sizes = [16, 16, 96], strides = [1, 1, 1]} : vector<18x16x96xf32> to vector<16x16x96xf32>
    %58 = vector.shape_cast %57 : vector<16x16x96xf32> to vector<256x96xf32>
    %59 = vector.extract_strided_slice %55 {offsets = [0, 0], sizes = [1, 96], strides = [1, 1]} : vector<3x96xf32> to vector<1x96xf32>
    %60 = vector.broadcast %59 : vector<1x96xf32> to vector<256x96xf32>
    %61 = arith.mulf %58, %60 : vector<256x96xf32>
    %62 = arith.addf %56, %61 : vector<256x96xf32>
    %63 = vector.extract_strided_slice %54 {offsets = [1, 0, 0], sizes = [16, 16, 96], strides = [1, 1, 1]} : vector<18x16x96xf32> to vector<16x16x96xf32>
    %64 = vector.shape_cast %63 : vector<16x16x96xf32> to vector<256x96xf32>
    %65 = vector.extract_strided_slice %55 {offsets = [1, 0], sizes = [1, 96], strides = [1, 1]} : vector<3x96xf32> to vector<1x96xf32>
    %66 = vector.broadcast %65 : vector<1x96xf32> to vector<256x96xf32>
    %67 = arith.mulf %64, %66 : vector<256x96xf32>
    %68 = arith.addf %62, %67 : vector<256x96xf32>
    %69 = vector.extract_strided_slice %54 {offsets = [2, 0, 0], sizes = [16, 16, 96], strides = [1, 1, 1]} : vector<18x16x96xf32> to vector<16x16x96xf32>
    %70 = vector.shape_cast %69 : vector<16x16x96xf32> to vector<256x96xf32>
    %71 = vector.extract_strided_slice %55 {offsets = [2, 0], sizes = [1, 96], strides = [1, 1]} : vector<3x96xf32> to vector<1x96xf32>
    %72 = vector.broadcast %71 : vector<1x96xf32> to vector<256x96xf32>
    %73 = arith.mulf %70, %72 : vector<256x96xf32>
    %74 = arith.addf %68, %73 : vector<256x96xf32>
    %cst_58 = arith.constant dense<0.000000e+00> : vector<256xf32>
    %75 = vector.multi_reduction <add>, %74, %cst_58 [1] : vector<256x96xf32> to vector<256xf32>
    %76 = vector.shape_cast %75 : vector<256xf32> to vector<256x1xf32>
    %c0_59 = arith.constant 0 : index
    %77 = memref.load %arg7[%c0_59] : memref<1xf32, #tpu.memory_space<smem>>
    %78 = vector.broadcast %77 : f32 to vector<256x1xf32>
    %79 = arith.addf %76, %78 : vector<256x1xf32>
    %80 = vector.shape_cast %79 : vector<256x1xf32> to vector<1x1x256xf32>
    %c0_60 = arith.constant 0 : index
    %c0_61 = arith.constant 0 : index
    %c0_62 = arith.constant 0 : index
    %81 = vector.load %arg8[%c0_60, %c0_61, %c0_62] : memref<1x1x256xf32, #tpu.memory_space<vmem>>, vector<1x1x256xf32>
    tpu.vector_store %arg8[%c0_60, %c0_61, %c0_62], %80 {strides = array<i32>} : memref<1x1x256xf32, #tpu.memory_space<vmem>>, vector<1x1x256xf32>,
    return
  }
  func.func @transform_0(%arg0: i32) -> (i32, i32, i32) {
    %c0_i32 = arith.constant 0 : i32
    %c0_i32_0 = arith.constant 0 : i32
    %c0_i32_1 = arith.constant 0 : i32
    return %arg0, %c0_i32, %c0_i32_0 : i32, i32, i32
  }
  func.func @transform_1(%arg0: i32) -> (i32, i32) {
    %c0_i32 = arith.constant 0 : i32
    %c0_i32_0 = arith.constant 0 : i32
    %c0_i32_1 = arith.constant 0 : i32
    return %c0_i32, %c0_i32_0 : i32, i32
  }
  func.func @transform_2(%arg0: i32) -> (i32, i32) {
    %c0_i32 = arith.constant 0 : i32
    %c0_i32_0 = arith.constant 0 : i32
    %c0_i32_1 = arith.constant 0 : i32
    return %c0_i32, %c0_i32_0 : i32, i32
  }
  func.func @transform_3(%arg0: i32) -> (i32, i32, i32) {
    %c0_i32 = arith.constant 0 : i32
    %c0_i32_0 = arith.constant 0 : i32
    %c0_i32_1 = arith.constant 0 : i32
    %c0_i32_2 = arith.constant 0 : i32
    return %c0_i32, %c0_i32_0, %c0_i32_1 : i32, i32, i32
  }
  func.func @transform_4(%arg0: i32) -> (i32, i32) {
    %c0_i32 = arith.constant 0 : i32
    %c0_i32_0 = arith.constant 0 : i32
    %c0_i32_1 = arith.constant 0 : i32
    return %c0_i32, %c0_i32_0 : i32, i32
  }
  func.func @transform_5(%arg0: i32) -> (i32, i32) {
    %c0_i32 = arith.constant 0 : i32
    %c0_i32_0 = arith.constant 0 : i32
    %c0_i32_1 = arith.constant 0 : i32
    return %c0_i32, %c0_i32_0 : i32, i32
  }
  func.func @transform_6(%arg0: i32) -> i32 {
    %c0_i32 = arith.constant 0 : i32
    %c0_i32_0 = arith.constant 0 : i32
    return %c0_i32 : i32
  }
  func.func @transform_7(%arg0: i32) -> (i32, i32, i32) {
    %c0_i32 = arith.constant 0 : i32
    %c0_i32_0 = arith.constant 0 : i32
    %c0_i32_1 = arith.constant 0 : i32
    return %arg0, %c0_i32, %c0_i32_0 : i32, i32, i32
  }
}

</mosaic_0001>

<bundles_post_ra>
// kernel: _decoder_pallas.1
= control target key start
LH: loop header
LB: loop body
LE: loop exit
PB: predicated region body
PF: predicated region fallthrough
CT: control target
= control target key end

     0   :  { %s6522_s26 = smov 0   ;;  %s9091_s0 = inlined_call_operand.vmem [shape: f32[2,256,36], index: 0, kind: input, shape index: {}]   ;;  %s9092_s1 = inlined_call_operand.vmem [shape: f32[36,64], index: 1, kind: input, shape index: {}]   ;;  %s9093_s2 = inlined_call_operand.vmem [shape: f32[1,64], index: 2, kind: input, shape index: {}]   ;;  %s9094_s3 = inlined_call_operand.vmem [shape: f32[3,192,32], index: 3, kind: input, shape index: {}]   ;;  %s9095_s4 = inlined_call_operand.vmem [shape: f32[1,32], index: 4, kind: input, shape index: {}]   ;;  %s9096_s5 = inlined_call_operand.vmem [shape: f32[3,96], index: 5, kind: input, shape index: {}]   ;;  %s9097_s6 = inlined_call_operand.<no memory space> [shape: f32[1], index: 6, kind: input, shape index: {}]   ;;  %s9098_s7 = inlined_call_operand.vmem [shape: f32[2,1,256], index: 7, kind: output, shape index: {}]  }
   0x1   :  { %12 = sst [smem:[#allocation4]] %s9097_s6 }
   0x2 LB: > { %s6022_s27 = sadd.s32 4294967295, %s6471_s26   ;;  %p6026_p0 = scmp.ge.s32.totalorder %s6471_s26, 1  ;;  %s6471_s26 = sphi %s6522_s26, %s18_s26  }
   0x3   : > { %p238_p1 = scmp.lt.s32.totalorder %s6471_s26, 3 }
   0x5   : > { %p239_p2 = pnand %p6026_p0, %p238_p1 }
   0x7   : > { %242 = sbr.rel (%p239_p2) target bundleno = 1323 (0x52b), region = 48 }
   0xe   : > { %v422_v0 = vld [vmem:[%s9092_s1] sm:$0xff]  ;;  %v423_v1 = vld [vmem:[%s9092_s1 + $0x8] sm:$0xff]  ;;  %v424_v2 = vld [vmem:[%s9092_s1 + $0x10] sm:$0xff]  ;;  %p269_p3 = scmp.lt.s32.totalorder %s6022_s27, 1  ;;  %vm278_vm0 = vcmask 523264   ;;  %vm281_vm1 = vcmask 517120  }
   0xf   : > { %v6307_v3 = vpack.c.bf16 %v423_v1, %v422_v0  ;;  %v425_v4 = vld [vmem:[%s9092_s1 + $0x18] sm:$0xff]  ;;  %v9099_v6 = vmov 0.0   ;;  %vm434_vm2 = vcmask 293888   ;;  %v426_v7 = vld [vmem:[%s9092_s1 + $0x20] sm:$0xf]  ;;  %vm531_vm3 = vcmask 1043456  }
  0x10   : > { %v6542_v5 = vpack.c.bf16 %v425_v4, %v424_v2  ;;  %s9129_s27 = smov (!%p269_p3, %s6022_s27), 1  ;;  %284 = vst.msk [vmem:[#allocation2 + $0x20] sm:$0xff] %vm278_vm0, %v9099_v6  ;;  %279 = vst.msk [vmem:[#allocation2] sm:$0xff] %vm278_vm0, %v9099_v6  ;;  %v6064_v40 = vld [vmem:[%s9094_s3 + $0xc0] sm:$0xff]  ;;  %v6065_v41 = vld [vmem:[%s9094_s3 + $0xc8] sm:$0xff]  ;;  %v9101_v42 = vmov 0.0|0.0  }
  0x11   : > { %285 = vst.msk [vmem:[#allocation2 + $0x28] sm:$0x3] %vm281_vm1, %v9099_v6  ;;  %282 = vst.msk [vmem:[#allocation2 + $0x10] sm:$0x3] %vm281_vm1, %v9099_v6  ;;  %6308 = vmatprep.subr.bf16.mxu0 %v6307_v3  ;;  %s6211_s12 = sshll.u32 %s9129_s27, 8  ;;  %6423 = vmatprep.subr.bf16.mxu1 %v9101_v42  ;;  %v6316_v43 = vpack.c.bf16 %v6065_v41, %v6064_v40  ;;  %v6066_v44 = vld [vmem:[%s9094_s3 + $0xd0] sm:$0xff] }
  0x12   : > { %280 = vst.msk [vmem:[#allocation2 + $0x8] sm:$0xff] %vm278_vm0, %v9099_v6  ;;  %283 = vst.msk [vmem:[#allocation2 + $0x18] sm:$0xff] %vm278_vm0, %v9099_v6  ;;  %6310 = vmatpush3.bf16.msra.mxu0 %v6307_v3  ;;  %s6659_s15 = scalar_lea.vmem %s9091_s0, %s6211_s12  ;;  %v6067_v45 = vld [vmem:[%s9094_s3 + $0xd8] sm:$0xff]  ;;  %v6068_v46 = vld [vmem:[%s9094_s3 + $0xe0] sm:$0xff]  ;;  %s6475_s24 = smov 64  }
  0x13   : > { %286 = vst.msk [vmem:[#allocation2 + $0x30] sm:$0xff] %vm278_vm0, %v9099_v6  ;;  %287 = vst.msk [vmem:[#allocation2 + $0x38] sm:$0xff] %vm278_vm0, %v9099_v6  ;;  %6312 = vmatprep.subr.bf16.mxu0 %v6542_v5  ;;  %v390_v8 = vld [vmem:[%s6659_s15] sm:$0xff]  ;;  %v391_v9 = vld [vmem:[%s6659_s15 + $0x8] sm:$0xff]  ;;  %6435 = vmatpush1.bf16.msra.mxu1 %v6316_v43  ;;  %v6319_v47 = vpack.c.bf16 %v6067_v45, %v6066_v44  ;;  %s6029_s20 = sshll.u32 %s9129_s27, 1 }
  0x14   : > { %288 = vst.msk [vmem:[#allocation2 + $0x40] sm:$0x3] %vm281_vm1, %v9099_v6  ;;  %291 = vst.msk [vmem:[#allocation2 + $0x58] sm:$0x3] %vm281_vm1, %v9099_v6  ;;  %6259 = vmatprep.mubr.msk.f32.mxu0 %vm434_vm2, %v390_v8  ;;  %v392_v10 = vld [vmem:[%s6659_s15 + $0x10] sm:$0xff]  ;;  %v393_v11 = vld [vmem:[%s6659_s15 + $0x18] sm:$0xff]  ;;  %6424 = vmatprep.subr.bf16.mxu1 %v9101_v42  ;;  %s277_s23 = scalar_lea.vmem %s9098_s7, %s6029_s20 }
  0x15   : > { %289 = vst.msk [vmem:[#allocation2 + $0x48] sm:$0xff] %vm278_vm0, %v9099_v6  ;;  %290 = vst.msk [vmem:[#allocation2 + $0x50] sm:$0xff] %vm278_vm0, %v9099_v6  ;;  %v394_v12 = vld [vmem:[%s6659_s15 + $0x20] sm:$0xff]  ;;  %v395_v13 = vld [vmem:[%s6659_s15 + $0x28] sm:$0xff] }
  0x16   : > { %292 = vst.msk [vmem:[#allocation2 + $0x60] sm:$0xff] %vm278_vm0, %v9099_v6  ;;  %293 = vst.msk [vmem:[#allocation2 + $0x68] sm:$0xff] %vm278_vm0, %v9099_v6  ;;  %6314 = vmatpush3.bf16.msra.mxu0 %v6542_v5  ;;  %v396_v14 = vld [vmem:[%s6659_s15 + $0x30] sm:$0xff]  ;;  %v397_v15 = vld [vmem:[%s6659_s15 + $0x38] sm:$0xff] }
  0x17   : > { %294 = vst.msk [vmem:[#allocation2 + $0x70] sm:$0x3] %vm281_vm1, %v9099_v6  ;;  %297 = vst.msk [vmem:[#allocation2 + $0x88] sm:$0x3] %vm281_vm1, %v9099_v6  ;;  %6257 = vmatprep.subr.msk.mxu0 %vm531_vm3, %v426_v7  ;;  %v398_v16 = vld [vmem:[%s6659_s15 + $0x40] sm:$0xff]  ;;  %v399_v17 = vld [vmem:[%s6659_s15 + $0x48] sm:$0xff]  ;;  %6436 = vmatpush1.bf16.msra.mxu1 %v6319_v47 }
  0x18   : > { %295 = vst.msk [vmem:[#allocation2 + $0x78] sm:$0xff] %vm278_vm0, %v9099_v6  ;;  %296 = vst.msk [vmem:[#allocation2 + $0x80] sm:$0xff] %vm278_vm0, %v9099_v6  ;;  %v400_v18 = vld [vmem:[%s6659_s15 + $0x50] sm:$0xff]  ;;  %v401_v19 = vld [vmem:[%s6659_s15 + $0x58] sm:$0xff]  ;;  %6425 = vmatprep.subr.bf16.mxu1 %v9101_v42 }
  0x19   : > { %298 = vst.msk [vmem:[#allocation2 + $0x90] sm:$0xff] %vm278_vm0, %v9099_v6  ;;  %299 = vst.msk [vmem:[#allocation2 + $0x98] sm:$0xff] %vm278_vm0, %v9099_v6  ;;  %v402_v20 = vld [vmem:[%s6659_s15 + $0x60] sm:$0xff]  ;;  %v403_v21 = vld [vmem:[%s6659_s15 + $0x68] sm:$0xff] }
  0x1a   : > { %300 = vst.msk [vmem:[#allocation2 + $0xa0] sm:$0x3] %vm281_vm1, %v9099_v6  ;;  %303 = vst.msk [vmem:[#allocation2 + $0xb8] sm:$0x3] %vm281_vm1, %v9099_v6  ;;  %6258 = vmatpush3.msk.msra.mxu0 %vm531_vm3, %v426_v7  ;;  %v404_v22 = vld [vmem:[%s6659_s15 + $0x70] sm:$0xff]  ;;  %v405_v23 = vld [vmem:[%s6659_s15 + $0x78] sm:$0xff] }
  0x1b   : > { %301 = vst.msk [vmem:[#allocation2 + $0xa8] sm:$0xff] %vm278_vm0, %v9099_v6  ;;  %302 = vst.msk [vmem:[#allocation2 + $0xb0] sm:$0xff] %vm278_vm0, %v9099_v6  ;;  %6260 = vmatmul.mubr.msk.f32.vlgmr.msra.gmra.mrb[0].mxu0 %vm434_vm2, %v391_v9  ;;  %v406_v24 = vld [vmem:[%s6659_s15 + $0x80] sm:$0xff]  ;;  %v407_v25 = vld [vmem:[%s6659_s15 + $0x88] sm:$0xff]  ;;  %6315 = vmatprep.subr.bf16.mxu0 %v9101_v42 }
  0x1c   : > { %304 = vst.msk [vmem:[#allocation2 + $0xc0] sm:$0xff] %vm278_vm0, %v9099_v6  ;;  %305 = vst.msk [vmem:[#allocation2 + $0xc8] sm:$0xff] %vm278_vm0, %v9099_v6  ;;  %6262 = vmatprep.mubr.msk.f32.mxu0 %vm434_vm2, %v392_v10  ;;  %v408_v26 = vld [vmem:[%s6659_s15 + $0x90] sm:$0xff]  ;;  %v409_v27 = vld [vmem:[%s6659_s15 + $0x98] sm:$0xff]  ;;  %6317 = vmatpush1.bf16.msra.mxu0 %v6316_v43 }
  0x1d   : > { %306 = vst.msk [vmem:[#allocation2 + $0xd0] sm:$0x3] %vm281_vm1, %v9099_v6  ;;  %309 = vst.msk [vmem:[#allocation2 + $0xe8] sm:$0x3] %vm281_vm1, %v9099_v6  ;;  %v410_v28 = vld [vmem:[%s6659_s15 + $0xa0] sm:$0xff]  ;;  %v411_v29 = vld [vmem:[%s6659_s15 + $0xa8] sm:$0xff]  ;;  %6318 = vmatprep.subr.bf16.mxu0 %v9101_v42 }
  0x1e   : > { %307 = vst.msk [vmem:[#allocation2 + $0xd8] sm:$0xff] %vm278_vm0, %v9099_v6  ;;  %308 = vst.msk [vmem:[#allocation2 + $0xe0] sm:$0xff] %vm278_vm0, %v9099_v6  ;;  %v412_v30 = vld [vmem:[%s6659_s15 + $0xb0] sm:$0xff]  ;;  %v413_v31 = vld [vmem:[%s6659_s15 + $0xb8] sm:$0xff] }
  0x1f   : > { %310 = vst.msk [vmem:[#allocation2 + $0xf0] sm:$0xff] %vm278_vm0, %v9099_v6  ;;  %311 = vst.msk [vmem:[#allocation2 + $0xf8] sm:$0xff] %vm278_vm0, %v9099_v6  ;;  %6263 = vmatmul.mubr.msk.f32.gmra.mrb[2].mxu0 %vm434_vm2, %v393_v11  ;;  %v414_v32 = vld [vmem:[%s6659_s15 + $0xc0] sm:$0xff]  ;;  %v415_v33 = vld [vmem:[%s6659_s15 + $0xc8] sm:$0xff] }
  0x20   : > { %312 = vst.msk [vmem:[#allocation2 + $0x100] sm:$0x3] %vm281_vm1, %v9099_v6  ;;  %315 = vst.msk [vmem:[#allocation2 + $0x118] sm:$0x3] %vm281_vm1, %v9099_v6  ;;  %6265 = vmatprep.mubr.msk.f32.mxu0 %vm434_vm2, %v394_v12  ;;  %v416_v34 = vld [vmem:[%s6659_s15 + $0xd0] sm:$0xff]  ;;  %v417_v35 = vld [vmem:[%s6659_s15 + $0xd8] sm:$0xff]  ;;  %6320 = vmatpush1.bf16.msra.mxu0 %v6319_v47 }
  0x21   : > { %313 = vst.msk [vmem:[#allocation2 + $0x108] sm:$0xff] %vm278_vm0, %v9099_v6  ;;  %314 = vst.msk [vmem:[#allocation2 + $0x110] sm:$0xff] %vm278_vm0, %v9099_v6  ;;  %v418_v36 = vld [vmem:[%s6659_s15 + $0xe0] sm:$0xff]  ;;  %v419_v37 = vld [vmem:[%s6659_s15 + $0xe8] sm:$0xff]  ;;  %6321 = vmatprep.subr.bf16.mxu0 %v9101_v42 }
  0x22   : > { %316 = vst.msk [vmem:[#allocation2 + $0x120] sm:$0xff] %vm278_vm0, %v9099_v6  ;;  %317 = vst.msk [vmem:[#allocation2 + $0x128] sm:$0xff] %vm278_vm0, %v9099_v6  ;;  %v420_v38 = vld [vmem:[%s6659_s15 + $0xf0] sm:$0xff]  ;;  %v421_v39 = vld [vmem:[%s6659_s15 + $0xf8] sm:$0xff]  ;;  %s6476_s15 = smov 32  }
  0x23   : > { %318 = vst.msk [vmem:[#allocation2 + $0x130] sm:$0x3] %vm281_vm1, %v9099_v6  ;;  %321 = vst.msk [vmem:[#allocation2 + $0x148] sm:$0x3] %vm281_vm1, %v9099_v6  ;;  %6266 = vmatmul.mubr.msk.f32.gmra.mrb[4].mxu0 %vm434_vm2, %v395_v13  ;;  %v6069_v48 = vld [vmem:[%s9094_s3 + $0xe8] sm:$0xff]  ;;  %v6070_v50 = vld [vmem:[%s9094_s3 + $0xf0] sm:$0xff] }
  0x24   : > { %319 = vst.msk [vmem:[#allocation2 + $0x138] sm:$0xff] %vm278_vm0, %v9099_v6  ;;  %320 = vst.msk [vmem:[#allocation2 + $0x140] sm:$0xff] %vm278_vm0, %v9099_v6  ;;  %6268 = vmatprep.mubr.msk.f32.mxu0 %vm434_vm2, %v396_v14  ;;  %v6322_v49 = vpack.c.bf16 %v6069_v48, %v6068_v46  ;;  %v6071_v51 = vld [vmem:[%s9094_s3 + $0xf8] sm:$0xff]  ;;  %v6072_v53 = vld [vmem:[%s9094_s3 + $0x100] sm:$0xff] }
  0x25   : > { %322 = vst.msk [vmem:[#allocation2 + $0x150] sm:$0xff] %vm278_vm0, %v9099_v6  ;;  %323 = vst.msk [vmem:[#allocation2 + $0x158] sm:$0xff] %vm278_vm0, %v9099_v6  ;;  %v6325_v52 = vpack.c.bf16 %v6071_v51, %v6070_v50  ;;  %v6073_v54 = vld [vmem:[%s9094_s3 + $0x108] sm:$0xff]  ;;  %v6074_v56 = vld [vmem:[%s9094_s3 + $0x110] sm:$0xff] }
  0x26   : > { %324 = vst.msk [vmem:[#allocation2 + $0x160] sm:$0x3] %vm281_vm1, %v9099_v6  ;;  %327 = vst.msk [vmem:[#allocation2 + $0x178] sm:$0x3] %vm281_vm1, %v9099_v6  ;;  %6437 = vmatpush1.bf16.msra.mxu1 %v6322_v49  ;;  %6323 = vmatpush1.bf16.msra.mxu0 %v6322_v49  ;;  %v6328_v55 = vpack.c.bf16 %v6073_v54, %v6072_v53  ;;  %v6075_v57 = vld [vmem:[%s9094_s3 + $0x118] sm:$0xff]  ;;  %v6076_v59 = vld [vmem:[%s9094_s3 + $0x120] sm:$0xff] }
  0x27   : > { %325 = vst.msk [vmem:[#allocation2 + $0x168] sm:$0xff] %vm278_vm0, %v9099_v6  ;;  %326 = vst.msk [vmem:[#allocation2 + $0x170] sm:$0xff] %vm278_vm0, %v9099_v6  ;;  %6269 = vmatmul.mubr.msk.f32.gmra.mrb[6].mxu0 %vm434_vm2, %v397_v15  ;;  %6426 = vmatprep.subr.bf16.mxu1 %v9101_v42  ;;  %v6331_v58 = vpack.c.bf16 %v6075_v57, %v6074_v56  ;;  %v6077_v60 = vld [vmem:[%s9094_s3 + $0x128] sm:$0xff]  ;;  %v6786_v61 = vld [vmem:[%s9093_s2] ss:$0 sm:$0xff] }
  0x28   : > { %328 = vst.msk [vmem:[#allocation2 + $0x180] sm:$0xff] %vm278_vm0, %v9099_v6  ;;  %329 = vst.msk [vmem:[#allocation2 + $0x188] sm:$0xff] %vm278_vm0, %v9099_v6  ;;  %6271 = vmatprep.mubr.msk.f32.mxu0 %vm434_vm2, %v398_v16  ;;  %6324 = vmatprep.subr.bf16.mxu0 %v9101_v42  ;;  %v6334_v62 = vpack.c.bf16 %v6077_v60, %v6076_v59  ;;  %v6078_v63 = vld [vmem:[%s9094_s3 + $0x130] sm:$0xff]  ;;  %v6079_v0 = vld [vmem:[%s9094_s3 + $0x138] sm:$0xff] }
  0x29   : > { %330 = vst.msk [vmem:[#allocation2 + $0x190] sm:$0x3] %vm281_vm1, %v9099_v6  ;;  %333 = vst.msk [vmem:[#allocation2 + $0x1a8] sm:$0x3] %vm281_vm1, %v9099_v6  ;;  %v6337_v5 = vpack.c.bf16 %v6079_v0, %v6078_v63  ;;  %v6080_v8 = vld [vmem:[%s9094_s3 + $0x140] sm:$0xff]  ;;  %v6081_v9 = vld [vmem:[%s9094_s3 + $0x148] sm:$0xff] }
  0x2a   : > { %331 = vst.msk [vmem:[#allocation2 + $0x198] sm:$0xff] %vm278_vm0, %v9099_v6  ;;  %332 = vst.msk [vmem:[#allocation2 + $0x1a0] sm:$0xff] %vm278_vm0, %v9099_v6  ;;  %6438 = vmatpush1.bf16.msra.mxu1 %v6325_v52  ;;  %6326 = vmatpush1.bf16.msra.mxu0 %v6325_v52  ;;  %v6086_v43 = vld [vmem:[%s9094_s3 + $0x170] sm:$0xff]  ;;  %v6087_v44 = vld [vmem:[%s9094_s3 + $0x178] sm:$0xff] }
  0x2b   : > { %6272 = vmatmul.mubr.msk.f32.gmra.mrb[8].mxu0 %vm434_vm2, %v399_v17  ;;  %6427 = vmatprep.subr.bf16.mxu1 %v9101_v42  ;;  %v6340_v17 = vpack.c.bf16 %v6081_v9, %v6080_v8  ;;  %v6349_v52 = vpack.c.bf16 %v6087_v44, %v6086_v43 }
  0x2c   : > { %6274 = vmatprep.mubr.msk.f32.mxu0 %vm434_vm2, %v400_v18  ;;  %6327 = vmatprep.subr.bf16.mxu0 %v9101_v42 }
  0x2e   : > { %6439 = vmatpush1.bf16.msra.mxu1 %v6328_v55  ;;  %6329 = vmatpush1.bf16.msra.mxu0 %v6328_v55 }
  0x2f   : > { %6275 = vmatmul.mubr.msk.f32.gmra.mrb[10].mxu0 %vm434_vm2, %v401_v19  ;;  %6428 = vmatprep.subr.bf16.mxu1 %v9101_v42  ;;  %v6082_v19 = vld [vmem:[%s9094_s3 + $0x150] sm:$0xff] }
  0x30   : > { %6277 = vmatprep.mubr.msk.f32.mxu0 %vm434_vm2, %v402_v20  ;;  %6330 = vmatprep.subr.bf16.mxu0 %v9101_v42  ;;  %v6083_v20 = vld [vmem:[%s9094_s3 + $0x158] sm:$0xff] }
  0x32   : > { %6440 = vmatpush1.bf16.msra.mxu1 %v6331_v58  ;;  %6332 = vmatpush1.bf16.msra.mxu0 %v6331_v58 }
  0x33   : > { %6278 = vmatmul.mubr.msk.f32.gmra.mrb[12].mxu0 %vm434_vm2, %v403_v21  ;;  %6429 = vmatprep.subr.bf16.mxu1 %v9101_v42 }
  0x34   : > { %6280 = vmatprep.mubr.msk.f32.mxu0 %vm434_vm2, %v404_v22  ;;  %6333 = vmatprep.subr.bf16.mxu0 %v9101_v42 }
  0x36   : > { %6441 = vmatpush1.bf16.msra.mxu1 %v6334_v62  ;;  %6335 = vmatpush1.bf16.msra.mxu0 %v6334_v62 }
  0x37   : > { %6281 = vmatmul.mubr.msk.f32.gmra.mrb[14].mxu0 %vm434_vm2, %v405_v23  ;;  %6430 = vmatprep.subr.bf16.mxu1 %v9101_v42 }
  0x38   : > { %6283 = vmatprep.mubr.msk.f32.mxu0 %vm434_vm2, %v406_v24  ;;  %6336 = vmatprep.subr.bf16.mxu0 %v9101_v42 }
  0x3a   : > { %6442 = vmatpush1.bf16.msra.mxu1 %v6337_v5  ;;  %6338 = vmatpush1.bf16.msra.mxu0 %v6337_v5 }
  0x3b   : > { %6284 = vmatmul.mubr.msk.f32.gmra.mrb[16].mxu0 %vm434_vm2, %v407_v25  ;;  %6431 = vmatprep.subr.bf16.mxu1 %v9101_v42 }
  0x3c   : > { %6286 = vmatprep.mubr.msk.f32.mxu0 %vm434_vm2, %v408_v26  ;;  %6339 = vmatprep.subr.bf16.mxu0 %v9101_v42 }
  0x3e   : > { %6443 = vmatpush1.bf16.msra.mxu1 %v6340_v17  ;;  %6341 = vmatpush1.bf16.msra.mxu0 %v6340_v17 }
  0x3f   : > { %6287 = vmatmul.mubr.msk.f32.gmra.mrb[18].mxu0 %vm434_vm2, %v409_v27  ;;  %6432 = vmatprep.subr.bf16.mxu1 %v9101_v42 }
  0x40   : > { %6289 = vmatprep.mubr.msk.f32.mxu0 %vm434_vm2, %v410_v28  ;;  %v6343_v28 = vpack.c.bf16 %v6083_v20, %v6082_v19  ;;  %6342 = vmatprep.subr.bf16.mxu0 %v9101_v42 }
  0x42   : > { %6444 = vmatpush1.bf16.msra.mxu1 %v6343_v28  ;;  %6344 = vmatpush1.bf16.msra.mxu0 %v6343_v28 }
  0x43   : > { %6290 = vmatmul.mubr.msk.f32.gmra.mrb[20].mxu0 %vm434_vm2, %v411_v29  ;;  %6433 = vmatprep.subr.bf16.mxu1 %v9101_v42 }
  0x44   : > { %6292 = vmatprep.mubr.msk.f32.mxu0 %vm434_vm2, %v412_v30  ;;  %v6084_v30 = vld [vmem:[%s9094_s3 + $0x160] sm:$0xff]  ;;  %6345 = vmatprep.subr.bf16.mxu0 %v9101_v42 }
  0x47   : > { %6293 = vmatmul.mubr.msk.f32.gmra.mrb[22].mxu0 %vm434_vm2, %v413_v31  ;;  %v6085_v31 = vld [vmem:[%s9094_s3 + $0x168] sm:$0xff] }
  0x48   : > { %6295 = vmatprep.mubr.msk.f32.mxu0 %vm434_vm2, %v414_v32  ;;  %v6346_v40 = vpack.c.bf16 %v6085_v31, %v6084_v30 }
  0x4a   : > { %6445 = vmatpush1.bf16.msra.mxu1 %v6346_v40  ;;  %6347 = vmatpush1.bf16.msra.mxu0 %v6346_v40 }
  0x4b   : > { %6296 = vmatmul.mubr.msk.f32.gmra.mrb[24].mxu0 %vm434_vm2, %v415_v33  ;;  %6434 = vmatprep.subr.bf16.mxu1 %v9101_v42 }
  0x4c   : > { %6298 = vmatprep.mubr.msk.f32.mxu0 %vm434_vm2, %v416_v34  ;;  %6348 = vmatprep.subr.bf16.mxu0 %v9101_v42 }
  0x4e   : > { %6446 = vmatpush1.bf16.msra.mxu1 %v6349_v52  ;;  %6350 = vmatpush1.bf16.msra.mxu0 %v6349_v52 }
  0x4f   : > { %6299 = vmatmul.mubr.msk.f32.gmra.mrb[26].mxu0 %vm434_vm2, %v417_v35  ;;  %6387 = vmatprep.subr.bf16.mxu1 %v9101_v42 }
  0x50   : > { %6301 = vmatprep.mubr.msk.f32.mxu0 %vm434_vm2, %v418_v36  ;;  %6351 = vmatprep.subr.bf16.mxu0 %v9101_v42 }
  0x53   : > { %6302 = vmatmul.mubr.msk.f32.gmra.mrb[28].mxu0 %vm434_vm2, %v419_v37 }
  0x54   : > { %6304 = vmatprep.mubr.msk.f32.mxu0 %vm434_vm2, %v420_v38 }
  0x57   : > { %6305 = vmatmul.mubr.msk.f32.gmra.mrb[30].mxu0 %vm434_vm2, %v421_v39 }
  0xee   : > { %v6261_v1 = vpop.f32.mrb[0].mxu0 }
  0xef   : > { %v607_v2 = vadd.f32 %v6261_v1, %v6786_v61  ;;  %v601_v3 = vpop.f32.mrb[1].mxu0 }
  0xf0   : > { %v602_v4 = vadd.f32 %v6786_v61, %v601_v3 }
  0xf1   : > { %vm761_vm4 = vcmp.ge.f32.partialorder %v607_v2, 0.0  ;;  %v793_v7 = vmul.f32 0.1, %v607_v2 }
  0xf2   : > { %vm760_vm5 = vcmp.ge.f32.partialorder %v602_v4, 0.0  ;;  %v792_v10 = vmul.f32 0.1, %v602_v4  ;;  %v6264_v11 = vpop.f32.mrb[2].mxu0 }
  0xf3   : > { %v825_v12 = vsel %vm761_vm4, %v607_v2, %v793_v7  ;;  %v617_v13 = vadd.f32 %v6264_v11, %v6786_v61  ;;  %v611_v14 = vpop.f32.mrb[3].mxu0 }
  0xf4   : > { %858 = vst.msk [vmem:[#allocation2 + $0x21] sm:$0xff] %vm278_vm0, %v825_v12  ;;  %v824_v15 = vsel %vm760_vm5, %v602_v4, %v792_v10  ;;  %v612_v16 = vadd.f32 %v6786_v61, %v611_v14 }
  0xf5   : > { %857 = vst.msk [vmem:[#allocation2 + $0x19] sm:$0xff] %vm278_vm0, %v824_v15  ;;  %vm763_vm6 = vcmp.ge.f32.partialorder %v617_v13, 0.0  ;;  %v795_v18 = vmul.f32 0.1, %v617_v13 }
  0xf6   : > { %vm762_vm7 = vcmp.ge.f32.partialorder %v612_v16, 0.0  ;;  %v794_v21 = vmul.f32 0.1, %v612_v16  ;;  %v6267_v22 = vpop.f32.mrb[4].mxu0 }
  0xf7   : > { %v827_v23 = vsel %vm763_vm6, %v617_v13, %v795_v18  ;;  %v627_v24 = vadd.f32 %v6267_v22, %v6786_v61  ;;  %v621_v25 = vpop.f32.mrb[5].mxu0 }
  0xf8   : > { %860 = vst.msk [vmem:[#allocation2 + $0x39] sm:$0xff] %vm278_vm0, %v827_v23  ;;  %v826_v26 = vsel %vm762_vm7, %v612_v16, %v794_v21  ;;  %v622_v27 = vadd.f32 %v6786_v61, %v621_v25 }
  0xf9   : > { %859 = vst.msk [vmem:[#allocation2 + $0x31] sm:$0xff] %vm278_vm0, %v826_v26  ;;  %vm765_vm8 = vcmp.ge.f32.partialorder %v627_v24, 0.0  ;;  %v797_v29 = vmul.f32 0.1, %v627_v24 }
  0xfa   : > { %vm764_vm9 = vcmp.ge.f32.partialorder %v622_v27, 0.0  ;;  %v796_v32 = vmul.f32 0.1, %v622_v27  ;;  %v6270_v33 = vpop.f32.mrb[6].mxu0 }
  0xfb   : > { %v829_v34 = vsel %vm765_vm8, %v627_v24, %v797_v29  ;;  %v637_v35 = vadd.f32 %v6270_v33, %v6786_v61  ;;  %v631_v36 = vpop.f32.mrb[7].mxu0 }
  0xfc   : > { %862 = vst.msk [vmem:[#allocation2 + $0x51] sm:$0xff] %vm278_vm0, %v829_v34  ;;  %v828_v37 = vsel %vm764_vm9, %v622_v27, %v796_v32  ;;  %v632_v38 = vadd.f32 %v6786_v61, %v631_v36  ;;  %v963_v39 = vld [vmem:[#allocation2 + $0x1a] sm:$0xff] }
  0xfd   : > { %861 = vst.msk [vmem:[#allocation2 + $0x49] sm:$0xff] %vm278_vm0, %v828_v37  ;;  %vm767_vm10 = vcmp.ge.f32.partialorder %v637_v35, 0.0  ;;  %v799_v41 = vmul.f32 0.1, %v637_v35  ;;  %6088 = vmatprep.mubr.msk.f32.mxu0 %vm278_vm0, %v963_v39 }
  0xfe   : > { %vm766_vm11 = vcmp.ge.f32.partialorder %v632_v38, 0.0  ;;  %v798_v45 = vmul.f32 0.1, %v632_v38  ;;  %v6273_v46 = vpop.f32.mrb[8].mxu0 }
  0xff   : > { %v831_v47 = vsel %vm767_vm10, %v637_v35, %v799_v41  ;;  %v647_v48 = vadd.f32 %v6273_v46, %v6786_v61  ;;  %v641_v49 = vpop.f32.mrb[9].mxu0 }
 0x100   : > { %864 = vst.msk [vmem:[#allocation2 + $0x69] sm:$0xff] %vm278_vm0, %v831_v47  ;;  %v830_v50 = vsel %vm766_vm11, %v632_v38, %v798_v45  ;;  %v642_v51 = vadd.f32 %v6786_v61, %v641_v49 }
 0x101   : > { %863 = vst.msk [vmem:[#allocation2 + $0x61] sm:$0xff] %vm278_vm0, %v830_v50  ;;  %vm769_vm12 = vcmp.ge.f32.partialorder %v647_v48, 0.0  ;;  %v801_v53 = vmul.f32 0.1, %v647_v48 }
 0x102   : > { %vm768_vm13 = vcmp.ge.f32.partialorder %v642_v51, 0.0  ;;  %v800_v54 = vmul.f32 0.1, %v642_v51  ;;  %v6276_v55 = vpop.f32.mrb[10].mxu0 }
 0x103   : > { %v833_v56 = vsel %vm769_vm12, %v647_v48, %v801_v53  ;;  %v657_v57 = vadd.f32 %v6276_v55, %v6786_v61  ;;  %v651_v58 = vpop.f32.mrb[11].mxu0 }
 0x104   : > { %866 = vst.msk [vmem:[#allocation2 + $0x81] sm:$0xff] %vm278_vm0, %v833_v56  ;;  %v832_v59 = vsel %vm768_vm13, %v642_v51, %v800_v54  ;;  %v652_v60 = vadd.f32 %v6786_v61, %v651_v58 }
 0x105   : > { %865 = vst.msk [vmem:[#allocation2 + $0x79] sm:$0xff] %vm278_vm0, %v832_v59  ;;  %vm771_vm14 = vcmp.ge.f32.partialorder %v657_v57, 0.0  ;;  %v803_v62 = vmul.f32 0.1, %v657_v57 }
 0x106   : > { %vm770_vm15 = vcmp.ge.f32.partialorder %v652_v60, 0.0  ;;  %v802_v63 = vmul.f32 0.1, %v652_v60  ;;  %v6279_v0 = vpop.f32.mrb[12].mxu0 }
 0x107   : > { %v835_v1 = vsel %vm771_vm14, %v657_v57, %v803_v62  ;;  %v667_v2 = vadd.f32 %v6279_v0, %v6786_v61  ;;  %v661_v3 = vpop.f32.mrb[13].mxu0 }
 0x108   : > { %868 = vst.msk [vmem:[#allocation2 + $0x99] sm:$0xff] %vm278_vm0, %v835_v1  ;;  %v834_v4 = vsel %vm770_vm15, %v652_v60, %v802_v63  ;;  %v662_v5 = vadd.f32 %v6786_v61, %v661_v3 }
 0x109   : > { %867 = vst.msk [vmem:[#allocation2 + $0x91] sm:$0xff] %vm278_vm0, %v834_v4  ;;  %vm773_vm1 = vcmp.ge.f32.partialorder %v667_v2, 0.0  ;;  %v805_v7 = vmul.f32 0.1, %v667_v2 }
 0x10a   : > { %vm772_vm2 = vcmp.ge.f32.partialorder %v662_v5, 0.0  ;;  %v804_v8 = vmul.f32 0.1, %v662_v5  ;;  %v6282_v9 = vpop.f32.mrb[14].mxu0 }
 0x10b   : > { %v837_v10 = vsel %vm773_vm1, %v667_v2, %v805_v7  ;;  %v677_v11 = vadd.f32 %v6282_v9, %v6786_v61  ;;  %v671_v12 = vpop.f32.mrb[15].mxu0  ;;  %v927_v9 = vld [vmem:[#allocation2 + $0x19] sm:$0xff] }
 0x10c   : > { %870 = vst.msk [vmem:[#allocation2 + $0xb1] sm:$0xff] %vm278_vm0, %v837_v10  ;;  %v836_v13 = vsel %vm772_vm2, %v662_v5, %v804_v8  ;;  %v672_v14 = vadd.f32 %v6786_v61, %v671_v12 }
 0x10d   : > { %869 = vst.msk [vmem:[#allocation2 + $0xa9] sm:$0xff] %vm278_vm0, %v836_v13  ;;  %vm775_vm3 = vcmp.ge.f32.partialorder %v677_v11, 0.0  ;;  %v807_v15 = vmul.f32 0.1, %v677_v11 }
 0x10e   : > { %vm774_vm4 = vcmp.ge.f32.partialorder %v672_v14, 0.0  ;;  %v806_v16 = vmul.f32 0.1, %v672_v14  ;;  %v6285_v17 = vpop.f32.mrb[16].mxu0 }
 0x10f   : > { %v839_v18 = vsel %vm775_vm3, %v677_v11, %v807_v15  ;;  %v687_v19 = vadd.f32 %v6285_v17, %v6786_v61  ;;  %v681_v20 = vpop.f32.mrb[17].mxu0 }
 0x110   : > { %872 = vst.msk [vmem:[#allocation2 + $0xc9] sm:$0xff] %vm278_vm0, %v839_v18  ;;  %v838_v21 = vsel %vm774_vm4, %v672_v14, %v806_v16  ;;  %v682_v22 = vadd.f32 %v6786_v61, %v681_v20 }
 0x111   : > { %871 = vst.msk [vmem:[#allocation2 + $0xc1] sm:$0xff] %vm278_vm0, %v838_v21  ;;  %vm777_vm5 = vcmp.ge.f32.partialorder %v687_v19, 0.0  ;;  %v809_v23 = vmul.f32 0.1, %v687_v19 }
 0x112   : > { %vm776_vm6 = vcmp.ge.f32.partialorder %v682_v22, 0.0  ;;  %v808_v24 = vmul.f32 0.1, %v682_v22  ;;  %v6288_v25 = vpop.f32.mrb[18].mxu0 }
 0x113   : > { %v841_v26 = vsel %vm777_vm5, %v687_v19, %v809_v23  ;;  %v697_v27 = vadd.f32 %v6288_v25, %v6786_v61  ;;  %v691_v28 = vpop.f32.mrb[19].mxu0  ;;  %v940_v41 = vld [vmem:[#allocation2 + $0xb1] sm:$0xff]  ;;  %v928_v19 = vld [vmem:[#allocation2 + $0x21] sm:$0xff] }
 0x114   : > { %874 = vst.msk [vmem:[#allocation2 + $0xe1] sm:$0xff] %vm278_vm0, %v841_v26  ;;  %v840_v29 = vsel %vm776_vm6, %v682_v22, %v808_v24  ;;  %v692_v30 = vadd.f32 %v6786_v61, %v691_v28  ;;  %v975_v31 = vld [vmem:[#allocation2 + $0xaa] sm:$0xff]  ;;  %vm334_vm6 = vcmask 261120  }
 0x115   : > { %v939_v32 = vld [vmem:[#allocation2 + $0xa9] sm:$0xff]  ;;  %873 = vst.msk [vmem:[#allocation2 + $0xd9] sm:$0xff] %vm278_vm0, %v840_v29  ;;  %vm779_vm7 = vcmp.ge.f32.partialorder %v697_v27, 0.0  ;;  %v811_v33 = vmul.f32 0.1, %v697_v27  ;;  %6100 = vmatprep.mubr.msk.f32.mxu1 %vm278_vm0, %v975_v31  ;;  %v929_v29 = vld [vmem:[#allocation2 + $0x31] sm:$0xff] }
 0x116   : > { %1061 = vrot.lane.b32.xlu0 %v939_v32, %s6475_s24  ;;  %vm778_vm8 = vcmp.ge.f32.partialorder %v692_v30, 0.0  ;;  %v810_v34 = vmul.f32 0.1, %v692_v30  ;;  %v6291_v35 = vpop.f32.mrb[20].mxu0 }
 0x117   : > { %v843_v36 = vsel %vm779_vm7, %v697_v27, %v811_v33  ;;  %v707_v37 = vadd.f32 %v6291_v35, %v6786_v61  ;;  %v701_v38 = vpop.f32.mrb[21].mxu0  ;;  %v942_v51 = vld [vmem:[#allocation2 + $0xc9] sm:$0xff]  ;;  %vm337_vm7 = vcmask 254976  }
 0x118   : > { %876 = vst.msk [vmem:[#allocation2 + $0xf9] sm:$0xff] %vm278_vm0, %v843_v36  ;;  %v842_v39 = vsel %vm778_vm8, %v692_v30, %v810_v34  ;;  %v941_v40 = vld [vmem:[#allocation2 + $0xc1] sm:$0xff]  ;;  %v702_v43 = vadd.f32 %v6786_v61, %v701_v38  ;;  %v930_v36 = vld [vmem:[#allocation2 + $0x39] sm:$0xff]  ;;  %v931_v38 = vld [vmem:[#allocation2 + $0x49] sm:$0xff] }
 0x119   : > { %875 = vst.msk [vmem:[#allocation2 + $0xf1] sm:$0xff] %vm278_vm0, %v842_v39  ;;  %1065 = vrot.lane.b32.xlu1 %v941_v40, %s6475_s24  ;;  %vm781_vm9 = vcmp.ge.f32.partialorder %v707_v37, 0.0  ;;  %v813_v44 = vmul.f32 0.1, %v707_v37  ;;  %v932_v40 = vld [vmem:[#allocation2 + $0x51] sm:$0xff] }
 0x11a   : > { %1063 = vrot.lane.b32.xlu0 %v940_v41, %s6475_s24  ;;  %vm780_vm10 = vcmp.ge.f32.partialorder %v702_v43, 0.0  ;;  %v812_v45 = vmul.f32 0.1, %v702_v43  ;;  %v6294_v46 = vpop.f32.mrb[22].mxu0 }
 0x11b   : > { %v845_v47 = vsel %vm781_vm9, %v707_v37, %v813_v44  ;;  %v717_v48 = vadd.f32 %v6294_v46, %v6786_v61  ;;  %v711_v49 = vpop.f32.mrb[23].mxu0  ;;  %v944_v55 = vld [vmem:[#allocation2 + $0xe1] sm:$0xff] }
 0x11c   : > { %878 = vst.msk [vmem:[#allocation2 + $0x111] sm:$0xff] %vm278_vm0, %v845_v47  ;;  %v844_v50 = vsel %vm780_vm10, %v702_v43, %v812_v45  ;;  %v943_v52 = vld [vmem:[#allocation2 + $0xd9] sm:$0xff]  ;;  %v712_v53 = vadd.f32 %v6786_v61, %v711_v49  ;;  %v933_v43 = vld [vmem:[#allocation2 + $0x61] sm:$0xff]  ;;  %v934_v45 = vld [vmem:[#allocation2 + $0x69] sm:$0xff] }
 0x11d   : > { %877 = vst.msk [vmem:[#allocation2 + $0x109] sm:$0xff] %vm278_vm0, %v844_v50  ;;  %1067 = vrot.lane.b32.xlu1 %v942_v51, %s6475_s24  ;;  %vm783_vm11 = vcmp.ge.f32.partialorder %v717_v48, 0.0  ;;  %v815_v54 = vmul.f32 0.1, %v717_v48  ;;  %v935_v47 = vld [vmem:[#allocation2 + $0x79] sm:$0xff]  ;;  %v936_v49 = vld [vmem:[#allocation2 + $0x81] sm:$0xff] }
 0x11e   : > { %1069 = vrot.lane.b32.xlu0 %v943_v52, %s6475_s24  ;;  %vm782_vm12 = vcmp.ge.f32.partialorder %v712_v53, 0.0  ;;  %v814_v56 = vmul.f32 0.1, %v712_v53  ;;  %v6297_v57 = vpop.f32.mrb[24].mxu0  ;;  %v937_v51 = vld [vmem:[#allocation2 + $0x91] sm:$0xff] }
 0x11f   : > { %v847_v58 = vsel %vm783_vm11, %v717_v48, %v815_v54  ;;  %v727_v59 = vadd.f32 %v6297_v57, %v6786_v61  ;;  %v721_v60 = vpop.f32.mrb[25].mxu0  ;;  %v946_v2 = vld [vmem:[#allocation2 + $0xf9] sm:$0xff] }
 0x120   : > { %v945_v62 = vld [vmem:[#allocation2 + $0xf1] sm:$0xff]  ;;  %880 = vst.msk [vmem:[#allocation2 + $0x129] sm:$0xff] %vm278_vm0, %v847_v58  ;;  %v846_v63 = vsel %vm782_vm12, %v712_v53, %v814_v56  ;;  %v722_v0 = vadd.f32 %v6786_v61, %v721_v60  ;;  %v938_v53 = vld [vmem:[#allocation2 + $0x99] sm:$0xff]  ;;  %v926_v56 = vld [vmem:[#allocation2 + $0x9] sm:$0xff] }
 0x121   : > { %1071 = vrot.lane.b32.xlu1 %v944_v55, %s6475_s24  ;;  %879 = vst.msk [vmem:[#allocation2 + $0x121] sm:$0xff] %vm278_vm0, %v846_v63  ;;  %vm785_vm13 = vcmp.ge.f32.partialorder %v727_v59, 0.0  ;;  %v817_v1 = vmul.f32 0.1, %v727_v59  ;;  %v925_v55 = vld [vmem:[#allocation2 + $0x1] sm:$0xff]  ;;  %v959_v57 = vld [vmem:[#allocation2 + $0x199] sm:$0xff] }
 0x122   : > { %1073 = vrot.lane.b32.xlu0 %v945_v62, %s6475_s24  ;;  %vm784_vm14 = vcmp.ge.f32.partialorder %v722_v0, 0.0  ;;  %v816_v3 = vmul.f32 0.1, %v722_v0  ;;  %v6300_v4 = vpop.f32.mrb[26].mxu0  ;;  %v960_v58 = vld [vmem:[#allocation2 + $0x1a1] sm:$0xff] }
 0x123   : > { %v849_v5 = vsel %vm785_vm13, %v727_v59, %v817_v1  ;;  %v737_v7 = vadd.f32 %v6300_v4, %v6786_v61  ;;  %v731_v8 = vpop.f32.mrb[27].mxu0  ;;  %v948_v23 = vld [vmem:[#allocation2 + $0x111] sm:$0xff]  ;;  %v6152_v59 = vld [vmem:[%s9094_s3 + $0x180] sm:$0xff]  ;;  %v6153_v60 = vld [vmem:[%s9094_s3 + $0x188] sm:$0xff] }
 0x124   : > { %882 = vst.msk [vmem:[#allocation2 + $0x141] sm:$0xff] %vm278_vm0, %v849_v5  ;;  %v848_v10 = vsel %vm784_vm14, %v722_v0, %v816_v3  ;;  %v732_v11 = vadd.f32 %v6786_v61, %v731_v8  ;;  %v947_v13 = vld [vmem:[#allocation2 + $0x109] sm:$0xff]  ;;  %v6388_v62 = vpack.c.bf16 %v6153_v60, %v6152_v59  ;;  %v6950_v4 = vld [vmem:[#allocation2 + $0xb2] sm:$0xff] }
 0x125   : > { %1075 = vrot.lane.b32.xlu1 %v946_v2, %s6475_s24  ;;  %881 = vst.msk [vmem:[#allocation2 + $0x139] sm:$0xff] %vm278_vm0, %v848_v10  ;;  %vm787_vm15 = vcmp.ge.f32.partialorder %v737_v7, 0.0  ;;  %v819_v12 = vmul.f32 0.1, %v737_v7  ;;  %v903_v0 = vld [vmem:[#allocation2 + $0xa8] sm:$0xff]  ;;  %v6154_v1 = vld [vmem:[%s9094_s3 + $0x190] sm:$0xff] }
 0x126   : > { %1037 = vrot.lane.b32.xlu0 %v927_v9, %s6475_s24  ;;  %vm786_vm1 = vcmp.ge.f32.partialorder %v732_v11, 0.0  ;;  %v818_v14 = vmul.f32 0.1, %v732_v11  ;;  %v6303_v15 = vpop.f32.mrb[28].mxu0  ;;  %v6155_v2 = vld [vmem:[%s9094_s3 + $0x198] sm:$0xff]  ;;  %v904_v9 = vld [vmem:[#allocation2 + $0xb0] sm:$0xff] }
 0x127   : > { %v851_v16 = vsel %vm787_vm15, %v737_v7, %v819_v12  ;;  %v747_v17 = vadd.f32 %v6303_v15, %v6786_v61  ;;  %v741_v18 = vpop.f32.mrb[29].mxu0  ;;  %v6391_v5 = vpack.c.bf16 %v6155_v2, %v6154_v1  ;;  %v6156_v10 = vld [vmem:[%s9094_s3 + $0x1a0] sm:$0xff]  ;;  %v7064_v59 = vld [vmem:[#allocation2 + $0xf2] sm:$0xff] }
 0x128   : > { %884 = vst.msk [vmem:[#allocation2 + $0x159] sm:$0xff] %vm278_vm0, %v851_v16  ;;  %v850_v20 = vsel %vm786_vm1, %v732_v11, %v818_v14  ;;  %v742_v21 = vadd.f32 %v6786_v61, %v741_v18  ;;  %v949_v33 = vld [vmem:[#allocation2 + $0x121] sm:$0xff]  ;;  %v6158_v18 = vld [vmem:[%s9094_s3 + $0x1b0] sm:$0xff] }
 0x129   : > { %1077 = vrot.lane.b32.xlu1 %v947_v13, %s6475_s24  ;;  %883 = vst.msk [vmem:[#allocation2 + $0x151] sm:$0xff] %vm278_vm0, %v850_v20  ;;  %vm789_vm2 = vcmp.ge.f32.partialorder %v747_v17, 0.0  ;;  %v821_v22 = vmul.f32 0.1, %v747_v17  ;;  %v6157_v11 = vld [vmem:[%s9094_s3 + $0x1a8] sm:$0xff]  ;;  %v1183_v2 = vld [vmem:[%s9094_s3 + $0x30] sm:$0xff] }
 0x12a   : > { %1039 = vrot.lane.b32.xlu0 %v928_v19, %s6475_s24  ;;  %vm788_vm3 = vcmp.ge.f32.partialorder %v742_v21, 0.0  ;;  %v820_v24 = vmul.f32 0.1, %v742_v21  ;;  %v6306_v25 = vpop.f32.mrb[30].mxu0  ;;  %v6965_v13 = vld [vmem:[#allocation2 + $0xc2] sm:$0xff]  ;;  %v6394_v14 = vpack.c.bf16 %v6157_v11, %v6156_v10  ;;  %v6159_v19 = vld [vmem:[%s9094_s3 + $0x1b8] sm:$0xff] }
 0x12b   : > { %v853_v26 = vsel %vm789_vm2, %v747_v17, %v821_v22  ;;  %v757_v27 = vadd.f32 %v6306_v25, %v6786_v61  ;;  %v751_v28 = vpop.f32.mrb[31].mxu0  ;;  %v952_v41 = vld [vmem:[#allocation2 + $0x141] sm:$0xff]  ;;  %v6397_v22 = vpack.c.bf16 %v6159_v19, %v6158_v18  ;;  %v6166_v10 = vld [vmem:[%s9094_s3 + $0x1f0] sm:$0xff]  ;;  %v6167_v11 = vld [vmem:[%s9094_s3 + $0x1f8] sm:$0xff] }
 0x12c   : > { %886 = vst.msk [vmem:[#allocation2 + $0x171] sm:$0xff] %vm278_vm0, %v853_v26  ;;  %v852_v30 = vsel %vm788_vm3, %v742_v21, %v820_v24  ;;  %v752_v31 = vadd.f32 %v6786_v61, %v751_v28  ;;  %v950_v61 = vld [vmem:[#allocation2 + $0x129] sm:$0xff]  ;;  %v951_v39 = vld [vmem:[#allocation2 + $0x139] sm:$0xff] }
 0x12d   : > { %1079 = vrot.lane.b32.xlu1 %v948_v23, %s6475_s24  ;;  %885 = vst.msk [vmem:[#allocation2 + $0x169] sm:$0xff] %vm278_vm0, %v852_v30  ;;  %vm791_vm4 = vcmp.ge.f32.partialorder %v757_v27, 0.0  ;;  %v823_v32 = vmul.f32 0.1, %v757_v27  ;;  %v905_v17 = vld [vmem:[#allocation2 + $0xc0] sm:$0xff]  ;;  %v6980_v21 = vld [vmem:[#allocation2 + $0xca] sm:$0xff] }
 0x12e   : > { %1041 = vrot.lane.b32.xlu0 %v929_v29, %s6475_s24  ;;  %vm790_vm5 = vcmp.ge.f32.partialorder %v752_v31, 0.0  ;;  %v822_v34 = vmul.f32 0.1, %v752_v31  ;;  %v906_v25 = vld [vmem:[#allocation2 + $0xc8] sm:$0xff]  ;;  %v1177_v26 = vld [vmem:[%s9094_s3] sm:$0xff]  ;;  %v894_v18 = vld [vmem:[#allocation2 + $0x38] sm:$0xff] }
 0x12f   : > { %v855_v35 = vsel %vm791_vm4, %v757_v27, %v823_v32  ;;  %v954_v46 = vld [vmem:[#allocation2 + $0x159] sm:$0xff]  ;;  %v1178_v28 = vld [vmem:[%s9094_s3 + $0x8] sm:$0xff] }
 0x130   : > { %888 = vst.msk [vmem:[#allocation2 + $0x189] sm:$0xff] %vm278_vm0, %v855_v35  ;;  %v854_v37 = vsel %vm790_vm5, %v752_v31, %v822_v34  ;;  %v953_v44 = vld [vmem:[#allocation2 + $0x151] sm:$0xff]  ;;  %v6160_v29 = vld [vmem:[%s9094_s3 + $0x1c0] sm:$0xff]  ;;  %v6161_v30 = vld [vmem:[%s9094_s3 + $0x1c8] sm:$0xff] }
 0x131   : > { %1081 = vrot.lane.b32.xlu1 %v949_v33, %s6475_s24  ;;  %887 = vst.msk [vmem:[#allocation2 + $0x181] sm:$0xff] %vm278_vm0, %v854_v37  ;;  %v7003_v31 = vld [vmem:[#allocation2 + $0xda] sm:$0xff]  ;;  %v1179_v37 = vld [vmem:[%s9094_s3 + $0x10] sm:$0xff] }
 0x132   : > { %1043 = vrot.lane.b32.xlu0 %v930_v36, %s6475_s24  ;;  %v891_v34 = vld [vmem:[#allocation2 + $0x18] sm:$0xff]  ;;  %v6352_v36 = vpack.c.bf16 %v1178_v28, %v1177_v26  ;;  %v1186_v28 = vld [vmem:[%s9094_s3 + $0x48] sm:$0xff] }
 0x133   : > { %v956_v50 = vld [vmem:[#allocation2 + $0x171] sm:$0xff] }
 0x134   : > { %v955_v48 = vld [vmem:[#allocation2 + $0x169] sm:$0xff]  ;;  %v907_v35 = vld [vmem:[#allocation2 + $0xd8] sm:$0xff] }
 0x135   : > { %1083 = vrot.lane.b32.xlu1 %v950_v61, %s6475_s24  ;;  %v6400_v61 = vpack.c.bf16 %v6161_v30, %v6160_v29  ;;  %v910_v19 = vld [vmem:[#allocation2 + $0xf8] sm:$0xff]  ;;  %v6168_v29 = vld [vmem:[%s9094_s3 + $0x200] sm:$0xff]  ;;  %v6169_v30 = vld [vmem:[%s9094_s3 + $0x208] sm:$0xff] }
 0x136   : > { %1045 = vrot.lane.b32.xlu0 %v931_v38, %s6475_s24 }
 0x137   : > { %v958_v54 = vld [vmem:[#allocation2 + $0x189] sm:$0xff] }
 0x138   : > { %v957_v52 = vld [vmem:[#allocation2 + $0x181] sm:$0xff] }
 0x139   : > { %1085 = vrot.lane.b32.xlu1 %v951_v39, %s6475_s24 }
 0x13a   : > { %1047 = vrot.lane.b32.xlu0 %v932_v40, %s6475_s24  ;;  %v1180_v40 = vld [vmem:[%s9094_s3 + $0x18] sm:$0xff] }
 0x13d   : > { %1087 = vrot.lane.b32.xlu1 %v952_v41, %s6475_s24  ;;  %v6162_v41 = vld [vmem:[%s9094_s3 + $0x1d0] sm:$0xff] }
 0x13e   : > { %1049 = vrot.lane.b32.xlu0 %v933_v43, %s6475_s24  ;;  %v6163_v43 = vld [vmem:[%s9094_s3 + $0x1d8] sm:$0xff] }
 0x141   : > { %1089 = vrot.lane.b32.xlu1 %v953_v44, %s6475_s24  ;;  %v7030_v44 = vld [vmem:[#allocation2 + $0x22] sm:$0xff] }
 0x142   : > { %1051 = vrot.lane.b32.xlu0 %v934_v45, %s6475_s24  ;;  %v7032_v45 = vld [vmem:[#allocation2 + $0xe2] sm:$0xff] }
 0x145   : > { %1091 = vrot.lane.b32.xlu1 %v954_v46, %s6475_s24 }
 0x146   : > { %1053 = vrot.lane.b32.xlu0 %v935_v47, %s6475_s24 }
 0x149   : > { %1093 = vrot.lane.b32.xlu1 %v955_v48, %s6475_s24  ;;  %v892_v48 = vld [vmem:[#allocation2 + $0x20] sm:$0xff] }
 0x14a   : > { %1055 = vrot.lane.b32.xlu0 %v936_v49, %s6475_s24  ;;  %v908_v49 = vld [vmem:[#allocation2 + $0xe0] sm:$0xff] }
 0x14d   : > { %1095 = vrot.lane.b32.xlu1 %v956_v50, %s6475_s24  ;;  %v6355_v50 = vpack.c.bf16 %v1180_v40, %v1179_v37  ;;  %v911_v37 = vld [vmem:[#allocation2 + $0x108] sm:$0xff]  ;;  %v1187_v40 = vld [vmem:[%s9094_s3 + $0x50] sm:$0xff] }
 0x14e   : > { %1057 = vrot.lane.b32.xlu0 %v937_v51, %s6475_s24  ;;  %v1181_v51 = vld [vmem:[%s9094_s3 + $0x20] sm:$0xff] }
 0x151   : > { %1097 = vrot.lane.b32.xlu1 %v957_v52, %s6475_s24  ;;  %v6403_v52 = vpack.c.bf16 %v6163_v43, %v6162_v41  ;;  %v6412_v41 = vpack.c.bf16 %v6169_v30, %v6168_v29 }
 0x152   : > { %1059 = vrot.lane.b32.xlu0 %v938_v53, %s6475_s24 }
 0x155   : > { %1099 = vrot.lane.b32.xlu1 %v958_v54, %s6475_s24 }
 0x156   : > { %1033 = vrot.lane.b32.xlu0 %v925_v55, %s6475_s24  ;;  %v1182_v55 = vld [vmem:[%s9094_s3 + $0x28] sm:$0xff] }
 0x157   : > { %v6358_v1 = vpack.c.bf16 %v1182_v55, %v1181_v51  ;;  %v7163_v51 = vld [vmem:[#allocation2 + $0x112] sm:$0xff] }
 0x159   : > { %1035 = vrot.lane.b32.xlu1 %v926_v56, %s6475_s24  ;;  %v6164_v56 = vld [vmem:[%s9094_s3 + $0x1e0] sm:$0xff] }
 0x15a   : > { %1101 = vrot.lane.b32.xlu0 %v959_v57, %s6475_s24  ;;  %v6165_v57 = vld [vmem:[%s9094_s3 + $0x1e8] sm:$0xff] }
 0x15d   : > { %1103 = vrot.lane.b32.xlu1 %v960_v58, %s6475_s24  ;;  %v7062_v58 = vld [vmem:[#allocation2 + $0x32] sm:$0xff] }
 0x188   : > { %v1062_v63 = vpop.permute.xlu0 %1061 }
 0x189   : > { %v6947_v3 = vsel %vm278_vm0, %v903_v0, %v1062_v63  ;;  %v893_v63 = vld [vmem:[#allocation2 + $0x30] sm:$0xff] }
 0x18a   : > { %1447 = vmatmul.mubr.f32.vlgmr.msra.gmra.mrb[0].mxu1 %v6947_v3  ;;  %v909_v0 = vld [vmem:[#allocation2 + $0xf0] sm:$0xff] }
 0x18b   : > { %6389 = vmatpush1.bf16.msra.mxu1 %v6388_v62  ;;  %6101 = vmatprep.mubr.msk.f32.mxu1 %vm278_vm0, %v6950_v4  ;;  %v1066_v7 = vpop.permute.xlu1 %1065 }
 0x18c   : > { %v1064_v8 = vpop.permute.xlu0 %1063  ;;  %6390 = vmatprep.subr.bf16.mxu1 %v9101_v42  ;;  %v6977_v20 = vsel %vm278_vm0, %v905_v17, %v1066_v7 }
 0x18d   : > { %v6962_v12 = vsel %vm278_vm0, %v904_v9, %v1064_v8  ;;  %v1184_v9 = vld [vmem:[%s9094_s3 + $0x38] sm:$0xff] }
 0x18e   : > { %1452 = vmatmul.mubr.f32.gmra.mrb[2].mxu1 %v6962_v12 }
 0x18f   : > { %6102 = vmatprep.mubr.msk.f32.mxu1 %vm278_vm0, %v6965_v13  ;;  %6392 = vmatpush1.bf16.msra.mxu1 %v6391_v5  ;;  %v1068_v15 = vpop.permute.xlu1 %1067  ;;  %v6406_v5 = vpack.c.bf16 %v6165_v57, %v6164_v56  ;;  %v896_v56 = vld [vmem:[#allocation2 + $0x50] sm:$0xff] }
 0x190   : > { %v1070_v16 = vpop.permute.xlu0 %1069  ;;  %6393 = vmatprep.subr.bf16.mxu1 %v9101_v42  ;;  %v6991_v27 = vsel %vm278_vm0, %v906_v25, %v1068_v15  ;;  %v7097_v15 = vld [vmem:[#allocation2 + $0xfa] sm:$0xff]  ;;  %v912_v57 = vld [vmem:[#allocation2 + $0x110] sm:$0xff] }
 0x191   : > { %v7017_v39 = vsel %vm278_vm0, %v907_v35, %v1070_v16 }
 0x192   : > { %1457 = vmatmul.mubr.f32.gmra.mrb[4].mxu1 %v6977_v20 }
 0x193   : > { %6103 = vmatprep.mubr.msk.f32.mxu1 %vm278_vm0, %v6980_v21  ;;  %6395 = vmatpush1.bf16.msra.mxu1 %v6394_v14  ;;  %v1072_v23 = vpop.permute.xlu1 %1071  ;;  %v7095_v14 = vld [vmem:[#allocation2 + $0x3a] sm:$0xff] }
 0x194   : > { %v6984_v24 = vpop.permute.xlu0 %1073  ;;  %6396 = vmatprep.subr.bf16.mxu1 %v9101_v42  ;;  %v7047_v54 = vsel %vm278_vm0, %v908_v49, %v1072_v23  ;;  %v1185_v23 = vld [vmem:[%s9094_s3 + $0x40] sm:$0xff]  ;;  %v6170_v49 = vld [vmem:[%s9094_s3 + $0x210] sm:$0xff] }
 0x195   : > { %v7080_v8 = vsel %vm278_vm0, %v909_v0, %v6984_v24  ;;  %v6409_v24 = vpack.c.bf16 %v6167_v11, %v6166_v10  ;;  %v6173_v10 = vld [vmem:[%s9094_s3 + $0x228] sm:$0xff] }
 0x196   : > { %1462 = vmatmul.mubr.f32.gmra.mrb[6].mxu1 %v6991_v27  ;;  %v7196_v11 = vld [vmem:[#allocation2 + $0x122] sm:$0xff] }
 0x197   : > { %6104 = vmatprep.mubr.msk.f32.mxu1 %vm278_vm0, %v7003_v31  ;;  %6398 = vmatpush1.bf16.msra.mxu1 %v6397_v22  ;;  %v7007_v32 = vpop.permute.xlu1 %1075  ;;  %v6361_v22 = vpack.c.bf16 %v1184_v9, %v1183_v2  ;;  %v6172_v9 = vld [vmem:[%s9094_s3 + $0x220] sm:$0xff] }
 0x198   : > { %v1038_v33 = vpop.permute.xlu0 %1037  ;;  %6399 = vmatprep.subr.bf16.mxu1 %v9101_v42  ;;  %v7113_v26 = vsel %vm278_vm0, %v910_v19, %v7007_v32  ;;  %v7128_v32 = vld [vmem:[#allocation2 + $0x4a] sm:$0xff]  ;;  %v897_v19 = vld [vmem:[#allocation2 + $0x60] sm:$0xff] }
 0x199   : > { %v7014_v38 = vsel %vm278_vm0, %v891_v34, %v1038_v33  ;;  %v7130_v33 = vld [vmem:[#allocation2 + $0x10a] sm:$0xff] }
 0x19a   : > { %1387 = vmatmul.mubr.f32.vlgmr.msra.gmra.mrb[32].mxu0 %v7014_v38  ;;  %1467 = vmatmul.mubr.f32.gmra.mrb[8].mxu1 %v7017_v39 }
 0x19b   : > { %6089 = vmatprep.mubr.msk.f32.mxu0 %vm278_vm0, %v7030_v44  ;;  %6105 = vmatprep.mubr.msk.f32.mxu1 %vm278_vm0, %v7032_v45  ;;  %v7038_v46 = vpop.permute.xlu1 %1077 }
 0x19c   : > { %6353 = vmatpush1.bf16.msra.mxu0 %v6352_v36  ;;  %v1040_v47 = vpop.permute.xlu0 %1039  ;;  %6401 = vmatpush1.bf16.msra.mxu1 %v6400_v61  ;;  %v895_v36 = vld [vmem:[#allocation2 + $0x48] sm:$0xff]  ;;  %v6364_v61 = vpack.c.bf16 %v1186_v28, %v1185_v23  ;;  %v6418_v28 = vpack.c.bf16 %v6173_v10, %v6172_v9  ;;  %v899_v10 = vld [vmem:[#allocation2 + $0x78] sm:$0xff] }
 0x19d   : > { %v7044_v53 = vsel %vm278_vm0, %v892_v48, %v1040_v47  ;;  %6354 = vmatprep.subr.bf16.mxu0 %v9101_v42  ;;  %6402 = vmatprep.subr.bf16.mxu1 %v9101_v42  ;;  %v7146_v47 = vsel %vm278_vm0, %v911_v37, %v7038_v46  ;;  %v1188_v48 = vld [vmem:[%s9094_s3 + $0x58] sm:$0xff] }
 0x19e   : > { %1392 = vmatmul.mubr.f32.gmra.mrb[34].mxu0 %v7044_v53  ;;  %1472 = vmatmul.mubr.f32.gmra.mrb[10].mxu1 %v7047_v54  ;;  %v7161_v46 = vld [vmem:[#allocation2 + $0x52] sm:$0xff] }
 0x19f   : > { %6090 = vmatprep.mubr.msk.f32.mxu0 %vm278_vm0, %v7062_v58  ;;  %6106 = vmatprep.mubr.msk.f32.mxu1 %vm278_vm0, %v7064_v59  ;;  %v7070_v60 = vpop.permute.xlu1 %1079  ;;  %v6175_v37 = vld [vmem:[%s9094_s3 + $0x238] sm:$0xff] }
 0x1a0   : > { %6356 = vmatpush1.bf16.msra.mxu0 %v6355_v50  ;;  %v1042_v62 = vpop.permute.xlu0 %1041  ;;  %6404 = vmatpush1.bf16.msra.mxu1 %v6403_v52  ;;  %v6171_v50 = vld [vmem:[%s9094_s3 + $0x218] sm:$0xff]  ;;  %v7179_v2 = vsel %vm278_vm0, %v912_v57, %v7070_v60  ;;  %v7194_v60 = vld [vmem:[#allocation2 + $0x62] sm:$0xff] }
 0x1a1   : > { %v7076_v7 = vsel %vm278_vm0, %v893_v63, %v1042_v62  ;;  %6357 = vmatprep.subr.bf16.mxu0 %v9101_v42  ;;  %6405 = vmatprep.subr.bf16.mxu1 %v9101_v42  ;;  %v6367_v62 = vpack.c.bf16 %v1188_v48, %v1187_v40  ;;  %v1189_v63 = vld [vmem:[%s9094_s3 + $0x60] sm:$0xff]  ;;  %v6415_v0 = vpack.c.bf16 %v6171_v50, %v6170_v49  ;;  %v898_v48 = vld [vmem:[#allocation2 + $0x68] sm:$0xff] }
 0x1a2   : > { %1397 = vmatmul.mubr.f32.gmra.mrb[36].mxu0 %v7076_v7  ;;  %1477 = vmatmul.mubr.f32.gmra.mrb[12].mxu1 %v7080_v8  ;;  %v914_v49 = vld [vmem:[#allocation2 + $0x128] sm:$0xff] }
 0x1a3   : > { %6091 = vmatprep.mubr.msk.f32.mxu0 %vm278_vm0, %v7095_v14  ;;  %6107 = vmatprep.mubr.msk.f32.mxu1 %vm278_vm0, %v7097_v15  ;;  %v7103_v16 = vpop.permute.xlu1 %1081 }
 0x1a4   : > { %6359 = vmatpush1.bf16.msra.mxu0 %v6358_v1  ;;  %v1044_v17 = vpop.permute.xlu0 %1043  ;;  %6407 = vmatpush1.bf16.msra.mxu1 %v6406_v5  ;;  %v1190_v5 = vld [vmem:[%s9094_s3 + $0x68] sm:$0xff] }
 0x1a5   : > { %v7109_v25 = vsel %vm278_vm0, %v894_v18, %v1044_v17  ;;  %6360 = vmatprep.subr.bf16.mxu0 %v9101_v42  ;;  %6408 = vmatprep.subr.bf16.mxu1 %v9101_v42  ;;  %v6370_v23 = vpack.c.bf16 %v1190_v5, %v1189_v63  ;;  %v1194_v63 = vld [vmem:[%s9094_s3 + $0x88] sm:$0xff] }
 0x1a6   : > { %1402 = vmatmul.mubr.f32.gmra.mrb[38].mxu0 %v7109_v25  ;;  %1482 = vmatmul.mubr.f32.gmra.mrb[14].mxu1 %v7113_v26 }
 0x1a7   : > { %6092 = vmatprep.mubr.msk.f32.mxu0 %vm278_vm0, %v7128_v32  ;;  %6108 = vmatprep.mubr.msk.f32.mxu1 %vm278_vm0, %v7130_v33  ;;  %v7136_v34 = vpop.permute.xlu1 %1083 }
 0x1a8   : > { %6362 = vmatpush1.bf16.msra.mxu0 %v6361_v22  ;;  %v1046_v35 = vpop.permute.xlu0 %1045  ;;  %6410 = vmatpush1.bf16.msra.mxu1 %v6409_v24  ;;  %v913_v22 = vld [vmem:[#allocation2 + $0x120] sm:$0xff]  ;;  %v1191_v24 = vld [vmem:[%s9094_s3 + $0x70] sm:$0xff]  ;;  %v7240_v57 = vsel %vm278_vm0, %v914_v49, %v7136_v34 }
 0x1a9   : > { %v7142_v43 = vsel %vm278_vm0, %v895_v36, %v1046_v35  ;;  %6363 = vmatprep.subr.bf16.mxu0 %v9101_v42  ;;  %6411 = vmatprep.subr.bf16.mxu1 %v9101_v42  ;;  %v7212_v30 = vsel %vm278_vm0, %v913_v22, %v7103_v16  ;;  %v1192_v35 = vld [vmem:[%s9094_s3 + $0x78] sm:$0xff]  ;;  %v6174_v36 = vld [vmem:[%s9094_s3 + $0x230] sm:$0xff] }
 0x1aa   : > { %1407 = vmatmul.mubr.f32.gmra.mrb[40].mxu0 %v7142_v43  ;;  %1487 = vmatmul.mubr.f32.gmra.mrb[16].mxu1 %v7146_v47  ;;  %v7227_v16 = vld [vmem:[#allocation2 + $0x6a] sm:$0xff]  ;;  %v6373_v50 = vpack.c.bf16 %v1192_v35, %v1191_v24  ;;  %v7254_v34 = vld [vmem:[#allocation2 + $0x13a] sm:$0xff]  ;;  %v7276_v35 = vld [vmem:[#allocation2 + $0x82] sm:$0xff] }
 0x1ab   : > { %6093 = vmatprep.mubr.msk.f32.mxu0 %vm278_vm0, %v7161_v46  ;;  %6109 = vmatprep.mubr.msk.f32.mxu1 %vm278_vm0, %v7163_v51  ;;  %v7169_v52 = vpop.permute.xlu1 %1085  ;;  %v1195_v24 = vld [vmem:[%s9094_s3 + $0x90] sm:$0xff] }
 0x1ac   : > { %6365 = vmatpush1.bf16.msra.mxu0 %v6364_v61  ;;  %v1048_v55 = vpop.permute.xlu0 %1047  ;;  %6413 = vmatpush1.bf16.msra.mxu1 %v6412_v41  ;;  %v7229_v61 = vld [vmem:[#allocation2 + $0x12a] sm:$0xff] }
 0x1ad   : > { %v7175_v1 = vsel %vm278_vm0, %v896_v56, %v1048_v55  ;;  %6366 = vmatprep.subr.bf16.mxu0 %v9101_v42  ;;  %6414 = vmatprep.subr.bf16.mxu1 %v9101_v42  ;;  %v6421_v55 = vpack.c.bf16 %v6175_v37, %v6174_v36  ;;  %v7278_v36 = vld [vmem:[#allocation2 + $0x142] sm:$0xff] }
 0x1ae   : > { %1412 = vmatmul.mubr.f32.gmra.mrb[42].mxu0 %v7175_v1  ;;  %1492 = vmatmul.mubr.f32.gmra.mrb[18].mxu1 %v7179_v2 }
 0x1af   : > { %6094 = vmatprep.mubr.msk.f32.mxu0 %vm278_vm0, %v7194_v60  ;;  %6110 = vmatprep.mubr.msk.f32.mxu1 %vm278_vm0, %v7196_v11  ;;  %v7202_v17 = vpop.permute.xlu1 %1087 }
 0x1b0   : > { %6368 = vmatpush1.bf16.msra.mxu0 %v6367_v62  ;;  %v1050_v18 = vpop.permute.xlu0 %1049  ;;  %6416 = vmatpush1.bf16.msra.mxu1 %v6415_v0  ;;  %v1193_v62 = vld [vmem:[%s9094_s3 + $0x80] sm:$0xff] }
 0x1b1   : > { %v7208_v29 = vsel %vm278_vm0, %v897_v19, %v1050_v18  ;;  %6369 = vmatprep.subr.bf16.mxu0 %v9101_v42  ;;  %6417 = vmatprep.subr.bf16.mxu1 %v9101_v42  ;;  %v7252_v0 = vld [vmem:[#allocation2 + $0x7a] sm:$0xff]  ;;  %v6376_v19 = vpack.c.bf16 %v1194_v63, %v1193_v62  ;;  %v1198_v63 = vld [vmem:[%s9094_s3 + $0xa8] sm:$0xff] }
 0x1b2   : > { %1417 = vmatmul.mubr.f32.gmra.mrb[44].mxu0 %v7208_v29  ;;  %1497 = vmatmul.mubr.f32.gmra.mrb[20].mxu1 %v7212_v30  ;;  %v915_v18 = vld [vmem:[#allocation2 + $0x138] sm:$0xff]  ;;  %v1197_v62 = vld [vmem:[%s9094_s3 + $0xa0] sm:$0xff] }
 0x1b3   : > { %6095 = vmatprep.mubr.msk.f32.mxu0 %vm278_vm0, %v7227_v16  ;;  %6111 = vmatprep.mubr.msk.f32.mxu1 %vm278_vm0, %v7229_v61  ;;  %v1090_v40 = vpop.permute.xlu1 %1089 }
 0x1b4   : > { %6371 = vmatpush1.bf16.msra.mxu0 %v6370_v23  ;;  %v1052_v41 = vpop.permute.xlu0 %1051  ;;  %6419 = vmatpush1.bf16.msra.mxu1 %v6418_v28  ;;  %v7265_v23 = vsel %vm278_vm0, %v915_v18, %v7169_v52  ;;  %v1196_v28 = vld [vmem:[%s9094_s3 + $0x98] sm:$0xff] }
 0x1b5   : > { %v7236_v56 = vsel %vm278_vm0, %v898_v48, %v1052_v41  ;;  %6372 = vmatprep.subr.bf16.mxu0 %v9101_v42  ;;  %6420 = vmatprep.subr.bf16.mxu1 %v9101_v42  ;;  %v900_v41 = vld [vmem:[#allocation2 + $0x80] sm:$0xff]  ;;  %v6379_v49 = vpack.c.bf16 %v1196_v28, %v1195_v24  ;;  %v917_v24 = vld [vmem:[#allocation2 + $0x150] sm:$0xff]  ;;  %v6382_v28 = vpack.c.bf16 %v1198_v63, %v1197_v62 }
 0x1b6   : > { %1422 = vmatmul.mubr.f32.gmra.mrb[46].mxu0 %v7236_v56  ;;  %1502 = vmatmul.mubr.f32.gmra.mrb[22].mxu1 %v7240_v57  ;;  %v916_v48 = vld [vmem:[#allocation2 + $0x140] sm:$0xff] }
 0x1b7   : > { %6096 = vmatprep.mubr.msk.f32.mxu0 %vm278_vm0, %v7252_v0  ;;  %6112 = vmatprep.mubr.msk.f32.mxu1 %vm278_vm0, %v7254_v34  ;;  %v1092_v5 = vpop.permute.xlu1 %1091  ;;  %v7323_v62 = vld [vmem:[#allocation2 + $0x9a] sm:$0xff] }
 0x1b8   : > { %6374 = vmatpush1.bf16.msra.mxu0 %v6373_v50  ;;  %v1054_v9 = vpop.permute.xlu0 %1053  ;;  %6422 = vmatpush1.bf16.msra.mxu1 %v6421_v55  ;;  %v7289_v55 = vsel %vm278_vm0, %v916_v48, %v7202_v17  ;;  %v1199_v48 = vld [vmem:[%s9094_s3 + $0xb0] sm:$0xff]  ;;  %v7325_v63 = vld [vmem:[#allocation2 + $0x15a] sm:$0xff] }
 0x1b9   : > { %v7261_v22 = vsel %vm278_vm0, %v899_v10, %v1054_v9  ;;  %6375 = vmatprep.subr.bf16.mxu0 %v9101_v42  ;;  %9114 = vst [vmem:[#allocation5_spill] sm:$0xff] %v7289_v55  ;;  %v7300_v9 = vld [vmem:[#allocation2 + $0x92] sm:$0xff]  ;;  %9117 = vst [vmem:[#allocation8_spill] sm:$0xff] %v7325_v63 }
 0x1ba   : > { %1427 = vmatmul.mubr.f32.gmra.mrb[48].mxu0 %v7261_v22  ;;  %1507 = vmatmul.mubr.f32.gmra.mrb[24].mxu1 %v7265_v23  ;;  %v7302_v10 = vld [vmem:[#allocation2 + $0x152] sm:$0xff] }
 0x1bb   : > { %6097 = vmatprep.mubr.msk.f32.mxu0 %vm278_vm0, %v7276_v35  ;;  %6113 = vmatprep.mubr.msk.f32.mxu1 %vm278_vm0, %v7278_v36  ;;  %v1094_v52 = vpop.permute.xlu1 %1093  ;;  %9115 = vst [vmem:[#allocation6_spill] sm:$0xff] %v7302_v10 }
 0x1bc   : > { %6377 = vmatpush1.bf16.msra.mxu0 %v6376_v19  ;;  %v1056_v37 = vpop.permute.xlu0 %1055  ;;  %v901_v19 = vld [vmem:[#allocation2 + $0x90] sm:$0xff] }
 0x1bd   : > { %v7285_v50 = vsel %vm278_vm0, %v900_v41, %v1056_v37  ;;  %6378 = vmatprep.subr.bf16.mxu0 %v9101_v42  ;;  %v7312_v41 = vsel %vm278_vm0, %v917_v24, %v1090_v40  ;;  %v918_v24 = vld [vmem:[#allocation2 + $0x158] sm:$0xff] }
 0x1be   : > { %1432 = vmatmul.mubr.f32.gmra.mrb[50].mxu0 %v7285_v50  ;;  %1512 = vmatmul.mubr.f32.gmra.mrb[26].mxu1 %v7289_v55  ;;  %9116 = vst [vmem:[#allocation7_spill] sm:$0xff] %v7312_v41  ;;  %v9119_v55 = vmov 0.0|0.0  }
 0x1bf   : > { %6098 = vmatprep.mubr.msk.f32.mxu0 %vm278_vm0, %v7300_v9  ;;  %6114 = vmatprep.mubr.msk.f32.mxu1 %vm278_vm0, %v7302_v10  ;;  %v1096_v17 = vpop.permute.xlu1 %1095 }
 0x1c0   : > { %6380 = vmatpush1.bf16.msra.mxu0 %v6379_v49  ;;  %v1058_v18 = vpop.permute.xlu0 %1057  ;;  %v1200_v49 = vld [vmem:[%s9094_s3 + $0xb8] sm:$0xff] }
 0x1c1   : > { %v7309_v37 = vsel %vm278_vm0, %v901_v19, %v1058_v18  ;;  %6381 = vmatprep.subr.bf16.mxu0 %v9101_v42  ;;  %v902_v19 = vld [vmem:[#allocation2 + $0x98] sm:$0xff]  ;;  %v6385_v6 = vpack.c.bf16 %v1200_v49, %v1199_v48  ;;  %v961_v42 = vld [vmem:[#allocation2 + $0x2] sm:$0xff] }
 0x1c2   : > { %1437 = vmatmul.mubr.f32.gmra.mrb[52].mxu0 %v7309_v37  ;;  %1517 = vmatmul.mubr.f32.gmra.mrb[28].mxu1 %v7312_v41  ;;  %v7335_v41 = vsel %vm278_vm0, %v918_v24, %v1092_v5  ;;  %v7350_v24 = vld [vmem:[#allocation2 + $0x172] sm:$0xff] }
 0x1c3   : > { %6099 = vmatprep.mubr.msk.f32.mxu0 %vm278_vm0, %v7323_v62  ;;  %6115 = vmatprep.mubr.msk.f32.mxu1 %vm278_vm0, %v7325_v63  ;;  %v1098_v40 = vpop.permute.xlu1 %1097  ;;  %9118 = vst [vmem:[#allocation9_spill] sm:$0xff] %v7335_v41  ;;  %v7340_v63 = vld [vmem:[#allocation2 + $0x16a] sm:$0xff] }
 0x1c4   : > { %6383 = vmatpush1.bf16.msra.mxu0 %v6382_v28  ;;  %v1060_v18 = vpop.permute.xlu0 %1059  ;;  %9120 = vst [vmem:[#allocation10_spill] sm:$0xff] %v7340_v63  ;;  %v889_v28 = vld [vmem:[#allocation2] sm:$0xff] }
 0x1c5   : > { %v7332_v10 = vsel %vm278_vm0, %v902_v19, %v1060_v18  ;;  %6384 = vmatprep.subr.bf16.mxu0 %v9119_v55  ;;  %v919_v18 = vld [vmem:[#allocation2 + $0x168] sm:$0xff] }
 0x1c6   : > { %1442 = vmatmul.mubr.f32.gmra.mrb[54].mxu0 %v7332_v10  ;;  %1522 = vmatmul.mubr.f32.gmra.mrb[30].mxu1 %v7335_v41  ;;  %v7347_v55 = vsel %vm278_vm0, %v919_v18, %v1094_v52  ;;  %v962_v19 = vld [vmem:[#allocation2 + $0xa] sm:$0xff]  ;;  %v921_v18 = vld [vmem:[#allocation2 + $0x180] sm:$0xff] }
 0x1c7   : > { %6116 = vmatprep.mubr.msk.f32.mxu1 %vm278_vm0, %v7340_v63  ;;  %6120 = vmatprep.mubr.msk.f32.mxu0 %vm278_vm0, %v961_v42  ;;  %v1100_v48 = vpop.permute.xlu1 %1099  ;;  %v890_v41 = vld [vmem:[#allocation2 + $0x8] sm:$0xff] }
 0x1c8   : > { %6386 = vmatpush1.bf16.msra.mxu0 %v6385_v6  ;;  %v1034_v49 = vpop.permute.xlu0 %1033  ;;  %v920_v6 = vld [vmem:[#allocation2 + $0x170] sm:$0xff] }
 0x1c9   : > { %v1141_v5 = vsel %vm278_vm0, %v889_v28, %v1034_v49  ;;  %v7356_v63 = vsel %vm278_vm0, %v920_v6, %v1096_v17  ;;  %v7360_v28 = vld [vmem:[#allocation2 + $0x182] sm:$0xff]  ;;  %v6463_v49 = vld [vmem:[#allocation2 + $0x1a] sm:$0xff]  ;;  %v7369_v17 = vld [vmem:[#allocation2 + $0x18a] sm:$0xff] }
 0x1ca   : > { %1527 = vmatmul.mubr.f32.gmra.mrb[32].mxu1 %v7347_v55 }
 0x1cb   : > { %1618 = vmatmul.mubr.f32.vlgmr.msra.gmra.mrb[56].mxu0 %v1141_v5  ;;  %6117 = vmatprep.mubr.msk.f32.mxu1 %vm278_vm0, %v7350_v24  ;;  %v1036_v42 = vpop.permute.xlu1 %1035  ;;  %v7366_v5 = vsel %vm278_vm0, %v921_v18, %v1098_v40 }
 0x1cc   : > { %6121 = vmatprep.mubr.msk.f32.mxu0 %vm278_vm0, %v962_v19  ;;  %v1142_v52 = vsel %vm278_vm0, %v890_v41, %v1036_v42  ;;  %v922_v41 = vld [vmem:[#allocation2 + $0x188] sm:$0xff] }
 0x1cd   : > { %v7377_v19 = vsel %vm278_vm0, %v922_v41, %v1100_v48 }
 0x1ce   : > { %1532 = vmatmul.mubr.f32.gmra.mrb[34].mxu1 %v7356_v63 }
 0x1cf   : > { %1623 = vmatmul.mubr.f32.gmra.mrb[58].mxu0 %v1142_v52  ;;  %6118 = vmatprep.mubr.msk.f32.mxu1 %vm278_vm0, %v7360_v28 }
 0x1d0   : > { %6122 = vmatprep.mubr.msk.f32.mxu0 %vm278_vm0, %v6463_v49 }
 0x1d2   : > { %1537 = vmatmul.mubr.f32.gmra.mrb[36].mxu1 %v7366_v5 }
 0x1d3   : > { %1628 = vmatmul.mubr.f32.gmra.mrb[60].mxu0 %v7014_v38  ;;  %6119 = vmatprep.mubr.msk.f32.mxu1 %vm278_vm0, %v7369_v17  ;;  %v6464_v38 = vld [vmem:[#allocation2 + $0xaa] sm:$0xff] }
 0x1d4   : > { %6123 = vmatprep.mubr.msk.f32.mxu0 %vm278_vm0, %v7030_v44  ;;  %v9123_v44 = vld [vmem:[#allocation6_spill] sm:$0xff] }
 0x1d6   : > { %1542 = vmatmul.mubr.f32.gmra.mrb[38].mxu1 %v7377_v19 }
 0x1d7   : > { %1633 = vmatmul.mubr.f32.gmra.mrb[62].mxu0 %v7044_v53  ;;  %6176 = vmatprep.mubr.msk.f32.mxu1 %vm278_vm0, %v7062_v58  ;;  %v9124_v53 = vld [vmem:[#allocation7_spill] sm:$0xff] }
 0x1d8   : > { %6124 = vmatprep.mubr.msk.f32.mxu0 %vm278_vm0, %v7062_v58  ;;  %v9126_v58 = vld [vmem:[#allocation9_spill] sm:$0xff] }
 0x1da   : > { %1874 = vmatmul.mubr.f32.vlgmr.msra.gmra.mrb[40].mxu1 %v7076_v7 }
 0x1db   : > { %1638 = vmatmul.mubr.f32.gmra.mrb[64].mxu0 %v7076_v7  ;;  %6177 = vmatprep.mubr.msk.f32.mxu1 %vm278_vm0, %v7095_v14  ;;  %v1102_v7 = vpop.permute.xlu0 %1101 }
 0x1dc   : > { %6125 = vmatprep.mubr.msk.f32.mxu0 %vm278_vm0, %v7095_v14  ;;  %v923_v14 = vld [vmem:[#allocation2 + $0x198] sm:$0xff] }
 0x1de   : > { %1879 = vmatmul.mubr.f32.gmra.mrb[42].mxu1 %v7109_v25 }
 0x1df   : > { %1643 = vmatmul.mubr.f32.gmra.mrb[66].mxu0 %v7109_v25  ;;  %6178 = vmatprep.mubr.msk.f32.mxu1 %vm278_vm0, %v7128_v32  ;;  %v1104_v25 = vpop.permute.xlu1 %1103 }
 0x1e0   : > { %6126 = vmatprep.mubr.msk.f32.mxu0 %vm278_vm0, %v7128_v32  ;;  %v924_v32 = vld [vmem:[#allocation2 + $0x1a0] sm:$0xff] }
 0x1e2   : > { %1884 = vmatmul.mubr.f32.gmra.mrb[44].mxu1 %v7142_v43 }
 0x1e3   : > { %1648 = vmatmul.mubr.f32.gmra.mrb[68].mxu0 %v7142_v43  ;;  %6179 = vmatprep.mubr.msk.f32.mxu1 %vm278_vm0, %v7161_v46 }
 0x1e4   : > { %6127 = vmatprep.mubr.msk.f32.mxu0 %vm278_vm0, %v7161_v46 }
 0x1e6   : > { %1889 = vmatmul.mubr.f32.gmra.mrb[46].mxu1 %v7175_v1 }
 0x1e7   : > { %1653 = vmatmul.mubr.f32.gmra.mrb[70].mxu0 %v7175_v1  ;;  %6180 = vmatprep.mubr.msk.f32.mxu1 %vm278_vm0, %v7194_v60 }
 0x1e8   : > { %6128 = vmatprep.mubr.msk.f32.mxu0 %vm278_vm0, %v7194_v60 }
 0x1ea   : > { %1894 = vmatmul.mubr.f32.gmra.mrb[48].mxu1 %v7208_v29 }
 0x1eb   : > { %1658 = vmatmul.mubr.f32.gmra.mrb[72].mxu0 %v7208_v29  ;;  %6181 = vmatprep.mubr.msk.f32.mxu1 %vm278_vm0, %v7227_v16 }
 0x1ec   : > { %6129 = vmatprep.mubr.msk.f32.mxu0 %vm278_vm0, %v7227_v16 }
 0x1ee   : > { %1899 = vmatmul.mubr.f32.gmra.mrb[50].mxu1 %v7236_v56 }
 0x1ef   : > { %1663 = vmatmul.mubr.f32.gmra.mrb[74].mxu0 %v7236_v56  ;;  %6182 = vmatprep.mubr.msk.f32.mxu1 %vm278_vm0, %v7252_v0 }
 0x1f0   : > { %6130 = vmatprep.mubr.msk.f32.mxu0 %vm278_vm0, %v7252_v0 }
 0x1f2   : > { %1904 = vmatmul.mubr.f32.gmra.mrb[52].mxu1 %v7261_v22 }
 0x1f3   : > { %1668 = vmatmul.mubr.f32.gmra.mrb[76].mxu0 %v7261_v22  ;;  %6183 = vmatprep.mubr.msk.f32.mxu1 %vm278_vm0, %v7276_v35 }
 0x1f4   : > { %6131 = vmatprep.mubr.msk.f32.mxu0 %vm278_vm0, %v7276_v35 }
 0x1f6   : > { %1909 = vmatmul.mubr.f32.gmra.mrb[54].mxu1 %v7285_v50 }
 0x1f7   : > { %1673 = vmatmul.mubr.f32.gmra.mrb[78].mxu0 %v7285_v50  ;;  %6184 = vmatprep.mubr.msk.f32.mxu1 %vm278_vm0, %v7300_v9 }
 0x1f8   : > { %6132 = vmatprep.mubr.msk.f32.mxu0 %vm278_vm0, %v7300_v9 }
 0x1fa   : > { %1914 = vmatmul.mubr.f32.gmra.mrb[56].mxu1 %v7309_v37 }
 0x1fb   : > { %1678 = vmatmul.mubr.f32.gmra.mrb[80].mxu0 %v7309_v37  ;;  %6185 = vmatprep.mubr.msk.f32.mxu1 %vm278_vm0, %v7323_v62 }
 0x1fc   : > { %6133 = vmatprep.mubr.msk.f32.mxu0 %vm278_vm0, %v7323_v62 }
 0x1fe   : > { %1919 = vmatmul.mubr.f32.gmra.mrb[58].mxu1 %v7332_v10 }
 0x1ff   : > { %1683 = vmatmul.mubr.f32.gmra.mrb[82].mxu0 %v7332_v10  ;;  %6186 = vmatprep.mubr.msk.f32.mxu1 %vm278_vm0, %v6464_v38 }
 0x200   : > { %6134 = vmatprep.mubr.msk.f32.mxu0 %vm278_vm0, %v6464_v38 }
 0x202   : > { %1924 = vmatmul.mubr.f32.gmra.mrb[60].mxu1 %v6947_v3 }
 0x203   : > { %1688 = vmatmul.mubr.f32.gmra.mrb[84].mxu0 %v6947_v3  ;;  %6187 = vmatprep.mubr.msk.f32.mxu1 %vm278_vm0, %v6950_v4  ;;  %v9121_v3 = vmov 0.0  }
 0x204   : > { %6135 = vmatprep.mubr.msk.f32.mxu0 %vm278_vm0, %v6950_v4  ;;  %335 = vst.msk [vmem:[#allocation3] sm:$0xff] %vm334_vm6, %v9121_v3  ;;  %336 = vst.msk [vmem:[#allocation3 + $0x8] sm:$0xff] %vm334_vm6, %v9121_v3 }
 0x205   : > { %339 = vst.msk [vmem:[#allocation3 + $0x18] sm:$0xff] %vm334_vm6, %v9121_v3  ;;  %340 = vst.msk [vmem:[#allocation3 + $0x20] sm:$0xff] %vm334_vm6, %v9121_v3 }
 0x206   : > { %1929 = vmatmul.mubr.f32.gmra.mrb[62].mxu1 %v6962_v12  ;;  %342 = vst.msk [vmem:[#allocation3 + $0x30] sm:$0xff] %vm334_vm6, %v9121_v3  ;;  %343 = vst.msk [vmem:[#allocation3 + $0x38] sm:$0xff] %vm334_vm6, %v9121_v3 }
 0x207   : > { %1693 = vmatmul.mubr.f32.gmra.mrb[86].mxu0 %v6962_v12  ;;  %6188 = vmatprep.mubr.msk.f32.mxu1 %vm278_vm0, %v6965_v13  ;;  %345 = vst.msk [vmem:[#allocation3 + $0x48] sm:$0xff] %vm334_vm6, %v9121_v3  ;;  %346 = vst.msk [vmem:[#allocation3 + $0x50] sm:$0xff] %vm334_vm6, %v9121_v3 }
 0x208   : > { %6136 = vmatprep.mubr.msk.f32.mxu0 %vm278_vm0, %v6965_v13  ;;  %348 = vst.msk [vmem:[#allocation3 + $0x60] sm:$0xff] %vm334_vm6, %v9121_v3  ;;  %349 = vst.msk [vmem:[#allocation3 + $0x68] sm:$0xff] %vm334_vm6, %v9121_v3 }
 0x209   : > { %351 = vst.msk [vmem:[#allocation3 + $0x78] sm:$0xff] %vm334_vm6, %v9121_v3  ;;  %352 = vst.msk [vmem:[#allocation3 + $0x80] sm:$0xff] %vm334_vm6, %v9121_v3 }
 0x20a   : > { %1934 = vmatmul.mubr.f32.gmra.mrb[64].mxu1 %v6977_v20  ;;  %354 = vst.msk [vmem:[#allocation3 + $0x90] sm:$0xff] %vm334_vm6, %v9121_v3  ;;  %355 = vst.msk [vmem:[#allocation3 + $0x98] sm:$0xff] %vm334_vm6, %v9121_v3 }
 0x20b   : > { %1698 = vmatmul.mubr.f32.gmra.mrb[88].mxu0 %v6977_v20  ;;  %6189 = vmatprep.mubr.msk.f32.mxu1 %vm278_vm0, %v6980_v21  ;;  %357 = vst.msk [vmem:[#allocation3 + $0xa8] sm:$0xff] %vm334_vm6, %v9121_v3  ;;  %358 = vst.msk [vmem:[#allocation3 + $0xb0] sm:$0xff] %vm334_vm6, %v9121_v3  ;;  %v2270_v4 = vld [vmem:[#allocation3 + $0x1] sm:$0xff] }
 0x20c   : > { %6137 = vmatprep.mubr.msk.f32.mxu0 %vm278_vm0, %v6980_v21  ;;  %360 = vst.msk [vmem:[#allocation3 + $0xc0] sm:$0xff] %vm334_vm6, %v9121_v3  ;;  %361 = vst.msk [vmem:[#allocation3 + $0xc8] sm:$0xff] %vm334_vm6, %v9121_v3  ;;  %2378 = vrot.lane.b32.xlu0 %v2270_v4, %s6476_s15  ;;  %v2306_v21 = vld [vmem:[#allocation3 + $0x2] sm:$0xff] }
 0x20d   : > { %363 = vst.msk [vmem:[#allocation3 + $0xd8] sm:$0xff] %vm334_vm6, %v9121_v3  ;;  %364 = vst.msk [vmem:[#allocation3 + $0xe0] sm:$0xff] %vm334_vm6, %v9121_v3 }
 0x20e   : > { %1939 = vmatmul.mubr.f32.gmra.mrb[66].mxu1 %v6991_v27  ;;  %366 = vst.msk [vmem:[#allocation3 + $0xf0] sm:$0xff] %vm334_vm6, %v9121_v3  ;;  %367 = vst.msk [vmem:[#allocation3 + $0xf8] sm:$0xff] %vm334_vm6, %v9121_v3 }
 0x20f   : > { %1703 = vmatmul.mubr.f32.gmra.mrb[90].mxu0 %v6991_v27  ;;  %6190 = vmatprep.mubr.msk.f32.mxu1 %vm278_vm0, %v7003_v31  ;;  %369 = vst.msk [vmem:[#allocation3 + $0x108] sm:$0xff] %vm334_vm6, %v9121_v3  ;;  %370 = vst.msk [vmem:[#allocation3 + $0x110] sm:$0xff] %vm334_vm6, %v9121_v3 }
 0x210   : > { %6138 = vmatprep.mubr.msk.f32.mxu0 %vm278_vm0, %v7003_v31  ;;  %372 = vst.msk [vmem:[#allocation3 + $0x120] sm:$0xff] %vm334_vm6, %v9121_v3  ;;  %373 = vst.msk [vmem:[#allocation3 + $0x128] sm:$0xff] %vm334_vm6, %v9121_v3 }
 0x211   : > { %375 = vst.msk [vmem:[#allocation3 + $0x138] sm:$0xff] %vm334_vm6, %v9121_v3  ;;  %376 = vst.msk [vmem:[#allocation3 + $0x140] sm:$0xff] %vm334_vm6, %v9121_v3 }
 0x212   : > { %1944 = vmatmul.mubr.f32.gmra.mrb[68].mxu1 %v7017_v39  ;;  %378 = vst.msk [vmem:[#allocation3 + $0x150] sm:$0xff] %vm334_vm6, %v9121_v3  ;;  %379 = vst.msk [vmem:[#allocation3 + $0x158] sm:$0xff] %vm334_vm6, %v9121_v3 }
 0x213   : > { %1708 = vmatmul.mubr.f32.gmra.mrb[92].mxu0 %v7017_v39  ;;  %6191 = vmatprep.mubr.msk.f32.mxu1 %vm278_vm0, %v7032_v45  ;;  %381 = vst.msk [vmem:[#allocation3 + $0x168] sm:$0xff] %vm334_vm6, %v9121_v3  ;;  %382 = vst.msk [vmem:[#allocation3 + $0x170] sm:$0xff] %vm334_vm6, %v9121_v3  ;;  %v9122_v39 = vld [vmem:[#allocation5_spill] sm:$0xff] }
 0x214   : > { %6139 = vmatprep.mubr.msk.f32.mxu0 %vm278_vm0, %v7032_v45  ;;  %384 = vst.msk [vmem:[#allocation3 + $0x180] sm:$0xff] %vm334_vm6, %v9121_v3  ;;  %385 = vst.msk [vmem:[#allocation3 + $0x188] sm:$0xff] %vm334_vm6, %v9121_v3 }
 0x215   : > { %387 = vst.msk [vmem:[#allocation3 + $0x198] sm:$0xff] %vm334_vm6, %v9121_v3  ;;  %388 = vst.msk [vmem:[#allocation3 + $0x1a0] sm:$0xff] %vm334_vm6, %v9121_v3 }
 0x216   : > { %1949 = vmatmul.mubr.f32.gmra.mrb[70].mxu1 %v7047_v54  ;;  %338 = vst.msk [vmem:[#allocation3 + $0x10] sm:$0x3] %vm337_vm7, %v9121_v3  ;;  %341 = vst.msk [vmem:[#allocation3 + $0x28] sm:$0x3] %vm337_vm7, %v9121_v3 }
 0x217   : > { %1713 = vmatmul.mubr.f32.gmra.mrb[94].mxu0 %v7047_v54  ;;  %6192 = vmatprep.mubr.msk.f32.mxu1 %vm278_vm0, %v7064_v59  ;;  %344 = vst.msk [vmem:[#allocation3 + $0x40] sm:$0x3] %vm337_vm7, %v9121_v3  ;;  %347 = vst.msk [vmem:[#allocation3 + $0x58] sm:$0x3] %vm337_vm7, %v9121_v3  ;;  %v9125_v54 = vld [vmem:[#allocation8_spill] sm:$0xff] }
 0x218   : > { %6140 = vmatprep.mubr.msk.f32.mxu0 %vm278_vm0, %v7064_v59  ;;  %350 = vst.msk [vmem:[#allocation3 + $0x70] sm:$0x3] %vm337_vm7, %v9121_v3  ;;  %353 = vst.msk [vmem:[#allocation3 + $0x88] sm:$0x3] %vm337_vm7, %v9121_v3  ;;  %v9127_v59 = vld [vmem:[#allocation10_spill] sm:$0xff] }
 0x219   : > { %356 = vst.msk [vmem:[#allocation3 + $0xa0] sm:$0x3] %vm337_vm7, %v9121_v3  ;;  %359 = vst.msk [vmem:[#allocation3 + $0xb8] sm:$0x3] %vm337_vm7, %v9121_v3 }
 0x21a   : > { %1954 = vmatmul.mubr.f32.gmra.mrb[72].mxu1 %v7080_v8  ;;  %362 = vst.msk [vmem:[#allocation3 + $0xd0] sm:$0x3] %vm337_vm7, %v9121_v3  ;;  %365 = vst.msk [vmem:[#allocation3 + $0xe8] sm:$0x3] %vm337_vm7, %v9121_v3 }
 0x21b   : > { %1718 = vmatmul.mubr.f32.gmra.mrb[96].mxu0 %v7080_v8  ;;  %6193 = vmatprep.mubr.msk.f32.mxu1 %vm278_vm0, %v7097_v15  ;;  %368 = vst.msk [vmem:[#allocation3 + $0x100] sm:$0x3] %vm337_vm7, %v9121_v3  ;;  %371 = vst.msk [vmem:[#allocation3 + $0x118] sm:$0x3] %vm337_vm7, %v9121_v3  ;;  %v995_v8 = vld [vmem:[#allocation2 + $0x19a] sm:$0xff] }
 0x21c   : > { %6141 = vmatprep.mubr.msk.f32.mxu0 %vm278_vm0, %v7097_v15  ;;  %374 = vst.msk [vmem:[#allocation3 + $0x130] sm:$0x3] %vm337_vm7, %v9121_v3  ;;  %377 = vst.msk [vmem:[#allocation3 + $0x148] sm:$0x3] %vm337_vm7, %v9121_v3  ;;  %v2304_v13 = vld [vmem:[#allocation3 + $0x199] sm:$0xff]  ;;  %v1175_v15 = vsel %vm278_vm0, %v923_v14, %v1102_v7 }
 0x21d   : > { %380 = vst.msk [vmem:[#allocation3 + $0x160] sm:$0x3] %vm337_vm7, %v9121_v3  ;;  %383 = vst.msk [vmem:[#allocation3 + $0x178] sm:$0x3] %vm337_vm7, %v9121_v3  ;;  %v2271_v12 = vld [vmem:[#allocation3 + $0x9] sm:$0xff]  ;;  %2446 = vrot.lane.b32.xlu0 %v2304_v13, %s6476_s15  ;;  %v2340_v31 = vld [vmem:[#allocation3 + $0x19a] sm:$0xff] }
 0x21e   : > { %1959 = vmatmul.mubr.f32.gmra.mrb[74].mxu1 %v7113_v26  ;;  %386 = vst.msk [vmem:[#allocation3 + $0x190] sm:$0x3] %vm337_vm7, %v9121_v3  ;;  %389 = vst.msk [vmem:[#allocation3 + $0x1a8] sm:$0x3] %vm337_vm7, %v9121_v3  ;;  %2380 = vrot.lane.b32.xlu1 %v2271_v12, %s6476_s15  ;;  %v2307_v27 = vld [vmem:[#allocation3 + $0xa] sm:$0xff] }
 0x21f   : > { %1723 = vmatmul.mubr.f32.gmra.mrb[98].mxu0 %v7113_v26  ;;  %6194 = vmatprep.mubr.msk.f32.mxu1 %vm278_vm0, %v7130_v33  ;;  %v996_v26 = vld [vmem:[#allocation2 + $0x1a2] sm:$0xff] }
 0x220   : > { %6142 = vmatprep.mubr.msk.f32.mxu0 %vm278_vm0, %v7130_v33  ;;  %v1176_v33 = vsel %vm278_vm0, %v924_v32, %v1104_v25 }
 0x221   : > { %2522 = vrot.lane.b32.xlu0 %v2306_v21, %s6475_s24 }
 0x222   : > { %1964 = vmatmul.mubr.f32.gmra.mrb[76].mxu1 %v7146_v47 }
 0x223   : > { %1728 = vmatmul.mubr.f32.gmra.mrb[100].mxu0 %v7146_v47  ;;  %6195 = vmatprep.mubr.msk.f32.mxu1 %vm278_vm0, %v7163_v51 }
 0x224   : > { %6143 = vmatprep.mubr.msk.f32.mxu0 %vm278_vm0, %v7163_v51 }
 0x225   : > { %v2305_v20 = vld [vmem:[#allocation3 + $0x1a1] sm:$0xff]  ;;  %2590 = vrot.lane.b32.xlu0 %v2340_v31, %s6475_s24 }
 0x226   : > { %1969 = vmatmul.mubr.f32.gmra.mrb[78].mxu1 %v7179_v2  ;;  %2448 = vrot.lane.b32.xlu1 %v2305_v20, %s6476_s15  ;;  %v2341_v45 = vld [vmem:[#allocation3 + $0x1a2] sm:$0xff] }
 0x227   : > { %1733 = vmatmul.mubr.f32.gmra.mrb[102].mxu0 %v7179_v2  ;;  %6196 = vmatprep.mubr.msk.f32.mxu1 %vm278_vm0, %v7196_v11 }
 0x228   : > { %6144 = vmatprep.mubr.msk.f32.mxu0 %vm278_vm0, %v7196_v11 }
 0x22a   : > { %1974 = vmatmul.mubr.f32.gmra.mrb[80].mxu1 %v7212_v30  ;;  %2524 = vrot.lane.b32.xlu1 %v2307_v27, %s6475_s24 }
 0x22b   : > { %1738 = vmatmul.mubr.f32.gmra.mrb[104].mxu0 %v7212_v30  ;;  %6197 = vmatprep.mubr.msk.f32.mxu1 %vm278_vm0, %v7229_v61 }
 0x22c   : > { %6145 = vmatprep.mubr.msk.f32.mxu0 %vm278_vm0, %v7229_v61 }
 0x22e   : > { %1979 = vmatmul.mubr.f32.gmra.mrb[82].mxu1 %v7240_v57  ;;  %2592 = vrot.lane.b32.xlu1 %v2341_v45, %s6475_s24 }
 0x22f   : > { %1743 = vmatmul.mubr.f32.gmra.mrb[106].mxu0 %v7240_v57  ;;  %6198 = vmatprep.mubr.msk.f32.mxu1 %vm278_vm0, %v7254_v34 }
 0x230   : > { %6146 = vmatprep.mubr.msk.f32.mxu0 %vm278_vm0, %v7254_v34 }
 0x232   : > { %1984 = vmatmul.mubr.f32.gmra.mrb[84].mxu1 %v7265_v23 }
 0x233   : > { %1748 = vmatmul.mubr.f32.gmra.mrb[108].mxu0 %v7265_v23  ;;  %6199 = vmatprep.mubr.msk.f32.mxu1 %vm278_vm0, %v7278_v36 }
 0x234   : > { %6147 = vmatprep.mubr.msk.f32.mxu0 %vm278_vm0, %v7278_v36 }
 0x236   : > { %1989 = vmatmul.mubr.f32.gmra.mrb[86].mxu1 %v9122_v39 }
 0x237   : > { %1753 = vmatmul.mubr.f32.gmra.mrb[110].mxu0 %v9122_v39  ;;  %6200 = vmatprep.mubr.msk.f32.mxu1 %vm278_vm0, %v9123_v44 }
 0x238   : > { %6148 = vmatprep.mubr.msk.f32.mxu0 %vm278_vm0, %v9123_v44 }
 0x23a   : > { %1994 = vmatmul.mubr.f32.gmra.mrb[88].mxu1 %v9124_v53 }
 0x23b   : > { %1758 = vmatmul.mubr.f32.gmra.mrb[112].mxu0 %v9124_v53  ;;  %6201 = vmatprep.mubr.msk.f32.mxu1 %vm278_vm0, %v9125_v54 }
 0x23c   : > { %6149 = vmatprep.mubr.msk.f32.mxu0 %vm278_vm0, %v9125_v54 }
 0x23e   : > { %1999 = vmatmul.mubr.f32.gmra.mrb[90].mxu1 %v9126_v58 }
 0x23f   : > { %1763 = vmatmul.mubr.f32.gmra.mrb[114].mxu0 %v9126_v58  ;;  %6202 = vmatprep.mubr.msk.f32.mxu1 %vm278_vm0, %v9127_v59 }
 0x240   : > { %6150 = vmatprep.mubr.msk.f32.mxu0 %vm278_vm0, %v9127_v59 }
 0x242   : > { %2004 = vmatmul.mubr.f32.gmra.mrb[92].mxu1 %v7347_v55 }
 0x243   : > { %1768 = vmatmul.mubr.f32.gmra.mrb[116].mxu0 %v7347_v55  ;;  %6203 = vmatprep.mubr.msk.f32.mxu1 %vm278_vm0, %v7350_v24 }
 0x244   : > { %6151 = vmatprep.mubr.msk.f32.mxu0 %vm278_vm0, %v7350_v24 }
 0x246   : > { %2009 = vmatmul.mubr.f32.gmra.mrb[94].mxu1 %v7356_v63 }
 0x247   : > { %1773 = vmatmul.mubr.f32.gmra.mrb[118].mxu0 %v7356_v63  ;;  %6204 = vmatprep.mubr.msk.f32.mxu1 %vm278_vm0, %v7360_v28 }
 0x24a   : > { %2014 = vmatmul.mubr.f32.gmra.mrb[96].mxu1 %v7366_v5 }
 0x24b   : > { %6205 = vmatprep.mubr.msk.f32.mxu1 %vm278_vm0, %v7369_v17 }
 0x24e   : > { %2019 = vmatmul.mubr.f32.gmra.mrb[98].mxu1 %v7377_v19 }
 0x24f   : > { %6206 = vmatprep.mubr.msk.f32.mxu1 %vm278_vm0, %v995_v8 }
 0x252   : > { %2024 = vmatmul.mubr.f32.gmra.mrb[100].mxu1 %v1175_v15 }
 0x253   : > { %6207 = vmatprep.mubr.msk.f32.mxu1 %vm278_vm0, %v996_v26 }
 0x256   : > { %2029 = vmatmul.mubr.f32.gmra.mrb[102].mxu1 %v1176_v33 }
 0x25d   : > { %v7673_v43 = vpop.f32.mrb[0].mxu1 }
 0x25e   : > { %v1450_v47 = vpop.f32.mrb[1].mxu1 }
 0x261   : > { %v7675_v46 = vpop.f32.mrb[2].mxu1 }
 0x262   : > { %v1455_v51 = vpop.f32.mrb[3].mxu1 }
 0x265   : > { %v7677_v1 = vpop.f32.mrb[4].mxu1 }
 0x266   : > { %v1460_v2 = vpop.f32.mrb[5].mxu1 }
 0x269   : > { %v7679_v60 = vpop.f32.mrb[6].mxu1 }
 0x26a   : > { %v1465_v11 = vpop.f32.mrb[7].mxu1 }
 0x26d   : > { %v1388_v29 = vpop.f32.mrb[32].mxu0  ;;  %v7681_v30 = vpop.f32.mrb[8].mxu1 }
 0x26e   : > { %v1390_v16 = vpop.f32.mrb[33].mxu0  ;;  %v1470_v61 = vpop.f32.mrb[9].mxu1 }
 0x271   : > { %v1393_v56 = vpop.f32.mrb[34].mxu0  ;;  %v7683_v57 = vpop.f32.mrb[10].mxu1 }
 0x272   : > { %v1395_v0 = vpop.f32.mrb[35].mxu0  ;;  %v1475_v34 = vpop.f32.mrb[11].mxu1 }
 0x275   : > { %v1398_v22 = vpop.f32.mrb[36].mxu0  ;;  %v7685_v23 = vpop.f32.mrb[12].mxu1 }
 0x276   : > { %v1400_v35 = vpop.f32.mrb[37].mxu0  ;;  %v1480_v36 = vpop.f32.mrb[13].mxu1 }
 0x279   : > { %v1403_v50 = vpop.f32.mrb[38].mxu0  ;;  %v7687_v9 = vpop.f32.mrb[14].mxu1 }
 0x27a   : > { %v1405_v10 = vpop.f32.mrb[39].mxu0  ;;  %v1485_v37 = vpop.f32.mrb[15].mxu1 }
 0x27d   : > { %v1408_v62 = vpop.f32.mrb[40].mxu0  ;;  %v7689_v63 = vpop.f32.mrb[16].mxu1 }
 0x27e   : > { %v1410_v40 = vpop.f32.mrb[41].mxu0  ;;  %v1490_v48 = vpop.f32.mrb[17].mxu1 }
 0x27f   : > { %v7728_v40 = vld [vmem:[%s9095_s4] ss:$0 sm:$0xff] }
 0x281   : > { %v1413_v55 = vpop.f32.mrb[42].mxu0  ;;  %v7691_v24 = vpop.f32.mrb[18].mxu1 }
 0x282   : > { %v1415_v42 = vpop.f32.mrb[43].mxu0  ;;  %v1495_v6 = vpop.f32.mrb[19].mxu1 }
 0x285   : > { %v7693_v52 = vpop.f32.mrb[44].mxu0  ;;  %v7695_v28 = vpop.f32.mrb[20].mxu1 }
 0x286   : > { %v1420_v49 = vpop.f32.mrb[45].mxu0  ;;  %v1500_v18 = vpop.f32.mrb[21].mxu1 }
 0x289   : > { %v7697_v5 = vpop.f32.mrb[46].mxu0  ;;  %v7699_v17 = vpop.f32.mrb[22].mxu1 }
 0x28a   : > { %v1425_v41 = vpop.f32.mrb[47].mxu0  ;;  %v1505_v19 = vpop.f32.mrb[23].mxu1 }
 0x28d   : > { %v7701_v38 = vpop.f32.mrb[48].mxu0  ;;  %v7703_v3 = vpop.f32.mrb[24].mxu1 }
 0x28e   : > { %v1430_v4 = vpop.f32.mrb[49].mxu0  ;;  %v1510_v12 = vpop.f32.mrb[25].mxu1 }
 0x291   : > { %v7705_v13 = vpop.f32.mrb[50].mxu0  ;;  %v7707_v20 = vpop.f32.mrb[26].mxu1 }
 0x292   : > { %v1435_v21 = vpop.f32.mrb[51].mxu0  ;;  %v1515_v27 = vpop.f32.mrb[27].mxu1 }
 0x295   : > { %v7709_v31 = vpop.f32.mrb[52].mxu0  ;;  %v7711_v39 = vpop.f32.mrb[28].mxu1 }
 0x296   : > { %v1440_v44 = vpop.f32.mrb[53].mxu0  ;;  %v1520_v45 = vpop.f32.mrb[29].mxu1 }
 0x299   : > { %v7713_v53 = vpop.f32.mrb[54].mxu0  ;;  %v7715_v54 = vpop.f32.mrb[30].mxu1 }
 0x29a   : > { %v1445_v58 = vpop.f32.mrb[55].mxu0  ;;  %v1525_v59 = vpop.f32.mrb[31].mxu1 }
 0x29d   : > { %v7717_v7 = vpop.f32.mrb[32].mxu1 }
 0x29e   : > { %v1619_v8 = vpop.f32.mrb[56].mxu0  ;;  %v1530_v14 = vpop.f32.mrb[33].mxu1 }
 0x29f   : > { %v1620_v15 = vadd.f32 %v1619_v8, %v1388_v29  ;;  %v1621_v25 = vpop.f32.mrb[57].mxu0 }
 0x2a1   : > { %v7719_v26 = vpop.f32.mrb[34].mxu1 }
 0x2a2   : > { %v1624_v32 = vpop.f32.mrb[58].mxu0  ;;  %v1535_v33 = vpop.f32.mrb[35].mxu1 }
 0x2a3   : > { %v1625_v47 = vadd.f32 %v1624_v32, %v1393_v56  ;;  %v1626_v51 = vpop.f32.mrb[59].mxu0 }
 0x2a5   : > { %v7721_v2 = vpop.f32.mrb[36].mxu1 }
 0x2a6   : > { %v1629_v11 = vpop.f32.mrb[60].mxu0  ;;  %v1540_v16 = vpop.f32.mrb[37].mxu1 }
 0x2a7   : > { %v1630_v61 = vadd.f32 %v1629_v11, %v1398_v22  ;;  %v1631_v0 = vpop.f32.mrb[61].mxu0 }
 0x2a9   : > { %v7723_v34 = vpop.f32.mrb[38].mxu1 }
 0x2aa   : > { %v1634_v35 = vpop.f32.mrb[62].mxu0  ;;  %v1545_v36 = vpop.f32.mrb[39].mxu1 }
 0x2ab   : > { %v1635_v10 = vadd.f32 %v1634_v35, %v1403_v50  ;;  %v1636_v37 = vpop.f32.mrb[63].mxu0 }
 0x2ad   : > { %v1875_v29 = vpop.f32.mrb[40].mxu1 }
 0x2ae   : > { %v1639_v56 = vpop.f32.mrb[64].mxu0  ;;  %v2034_v48 = vadd.f32 %v1875_v29, %v1620_v15  ;;  %v1877_v42 = vpop.f32.mrb[41].mxu1 }
 0x2af   : > { %v1640_v6 = vadd.f32 %v1639_v56, %v1408_v62  ;;  %v1641_v49 = vpop.f32.mrb[65].mxu0 }
 0x2b0   : > { %v2073_v22 = vadd.f32 %v7728_v40, %v2034_v48 }
 0x2b1   : > { %v1880_v18 = vpop.f32.mrb[42].mxu1 }
 0x2b2   : > { %vm2105_vm8 = vcmp.ge.f32.partialorder %v2073_v22, 0.0  ;;  %v2137_v41 = vmul.f32 0.1, %v2073_v22  ;;  %v1644_v19 = vpop.f32.mrb[66].mxu0  ;;  %v2035_v4 = vadd.f32 %v1880_v18, %v1625_v47  ;;  %v1882_v50 = vpop.f32.mrb[43].mxu1 }
 0x2b3   : > { %v1645_v12 = vadd.f32 %v1644_v19, %v1413_v55  ;;  %v1646_v21 = vpop.f32.mrb[67].mxu0 }
 0x2b4   : > { %v2169_v27 = vsel %vm2105_vm8, %v2073_v22, %v2137_v41  ;;  %v2074_v44 = vadd.f32 %v7728_v40, %v2035_v4 }
 0x2b5   : > { %2202 = vst.msk [vmem:[#allocation3 + $0x19] sm:$0xff] %vm334_vm6, %v2169_v27  ;;  %v1885_v45 = vpop.f32.mrb[44].mxu1 }
 0x2b6   : > { %vm2106_vm9 = vcmp.ge.f32.partialorder %v2074_v44, 0.0  ;;  %v2138_v58 = vmul.f32 0.1, %v2074_v44  ;;  %v1649_v62 = vpop.f32.mrb[68].mxu0  ;;  %v2036_v59 = vadd.f32 %v1885_v45, %v1630_v61  ;;  %v1887_v8 = vpop.f32.mrb[45].mxu1 }
 0x2b7   : > { %v1650_v14 = vadd.f32 %v1649_v62, %v7693_v52  ;;  %v1651_v15 = vpop.f32.mrb[69].mxu0 }
 0x2b8   : > { %v2170_v25 = vsel %vm2106_vm9, %v2074_v44, %v2138_v58  ;;  %v2075_v32 = vadd.f32 %v7728_v40, %v2036_v59 }
 0x2b9   : > { %2203 = vst.msk [vmem:[#allocation3 + $0x21] sm:$0xff] %vm334_vm6, %v2170_v25  ;;  %v1890_v55 = vpop.f32.mrb[46].mxu1 }
 0x2ba   : > { %vm2107_vm10 = vcmp.ge.f32.partialorder %v2075_v32, 0.0  ;;  %v2139_v33 = vmul.f32 0.1, %v2075_v32  ;;  %v1654_v47 = vpop.f32.mrb[70].mxu0  ;;  %v2037_v51 = vadd.f32 %v1890_v55, %v1635_v10  ;;  %v1892_v11 = vpop.f32.mrb[47].mxu1 }
 0x2bb   : > { %v1655_v16 = vadd.f32 %v1654_v47, %v7697_v5  ;;  %v1656_v0 = vpop.f32.mrb[71].mxu0 }
 0x2bc   : > { %v2171_v35 = vsel %vm2107_vm10, %v2075_v32, %v2139_v33  ;;  %v2076_v61 = vadd.f32 %v7728_v40, %v2037_v51  ;;  %v2272_v36 = vld [vmem:[#allocation3 + $0x19] sm:$0xff] }
 0x2bd   : > { %2204 = vst.msk [vmem:[#allocation3 + $0x31] sm:$0xff] %vm334_vm6, %v2171_v35  ;;  %v1895_v52 = vpop.f32.mrb[48].mxu1  ;;  %2382 = vrot.lane.b32.xlu0 %v2272_v36, %s6476_s15 }
 0x2be   : > { %vm2108_vm11 = vcmp.ge.f32.partialorder %v2076_v61, 0.0  ;;  %v2140_v37 = vmul.f32 0.1, %v2076_v61  ;;  %v1659_v29 = vpop.f32.mrb[72].mxu0  ;;  %v2038_v56 = vadd.f32 %v1895_v52, %v1640_v6  ;;  %v1897_v48 = vpop.f32.mrb[49].mxu1 }
 0x2bf   : > { %v1660_v10 = vadd.f32 %v1659_v29, %v7701_v38  ;;  %v1661_v42 = vpop.f32.mrb[73].mxu0 }
 0x2c0   : > { %v2172_v49 = vsel %vm2108_vm11, %v2076_v61, %v2140_v37  ;;  %v2077_v5 = vadd.f32 %v7728_v40, %v2038_v56  ;;  %v2273_v22 = vld [vmem:[#allocation3 + $0x21] sm:$0xff] }
 0x2c1   : > { %v2308_v18 = vld [vmem:[#allocation3 + $0x1a] sm:$0xff]  ;;  %2205 = vst.msk [vmem:[#allocation3 + $0x39] sm:$0xff] %vm334_vm6, %v2172_v49  ;;  %v1900_v41 = vpop.f32.mrb[50].mxu1  ;;  %2384 = vrot.lane.b32.xlu1 %v2273_v22, %s6476_s15  ;;  %v2309_v45 = vld [vmem:[#allocation3 + $0x22] sm:$0xff] }
 0x2c2   : > { %2526 = vrot.lane.b32.xlu0 %v2308_v18, %s6475_s24  ;;  %vm2109_vm12 = vcmp.ge.f32.partialorder %v2077_v5, 0.0  ;;  %v2141_v19 = vmul.f32 0.1, %v2077_v5  ;;  %v1664_v4 = vpop.f32.mrb[74].mxu0  ;;  %v2039_v6 = vadd.f32 %v1900_v41, %v1645_v12  ;;  %v1902_v50 = vpop.f32.mrb[51].mxu1 }
 0x2c3   : > { %v1665_v38 = vadd.f32 %v1664_v4, %v7705_v13  ;;  %v1666_v21 = vpop.f32.mrb[75].mxu0 }
 0x2c4   : > { %v2173_v27 = vsel %vm2109_vm12, %v2077_v5, %v2141_v19  ;;  %v2078_v44 = vadd.f32 %v7728_v40, %v2039_v6  ;;  %v2274_v58 = vld [vmem:[#allocation3 + $0x31] sm:$0xff] }
 0x2c5   : > { %2206 = vst.msk [vmem:[#allocation3 + $0x49] sm:$0xff] %vm334_vm6, %v2173_v27  ;;  %v1905_v62 = vpop.f32.mrb[52].mxu1  ;;  %2528 = vrot.lane.b32.xlu1 %v2309_v45, %s6475_s24 }
 0x2c6   : > { %2386 = vrot.lane.b32.xlu0 %v2274_v58, %s6476_s15  ;;  %vm2110_vm13 = vcmp.ge.f32.partialorder %v2078_v44, 0.0  ;;  %v2142_v59 = vmul.f32 0.1, %v2078_v44  ;;  %v1669_v8 = vpop.f32.mrb[76].mxu0  ;;  %v2040_v12 = vadd.f32 %v1905_v62, %v1650_v14  ;;  %v1907_v15 = vpop.f32.mrb[53].mxu1 }
 0x2c7   : > { %v1670_v13 = vadd.f32 %v1669_v8, %v7709_v31  ;;  %v1671_v25 = vpop.f32.mrb[77].mxu0 }
 0x2c8   : > { %v2174_v32 = vsel %vm2110_vm13, %v2078_v44, %v2142_v59  ;;  %v2079_v55 = vadd.f32 %v7728_v40, %v2040_v12  ;;  %v2275_v33 = vld [vmem:[#allocation3 + $0x39] sm:$0xff] }
 0x2c9   : > { %v2310_v47 = vld [vmem:[#allocation3 + $0x32] sm:$0xff]  ;;  %2207 = vst.msk [vmem:[#allocation3 + $0x51] sm:$0xff] %vm334_vm6, %v2174_v32  ;;  %v1910_v51 = vpop.f32.mrb[54].mxu1  ;;  %2388 = vrot.lane.b32.xlu1 %v2275_v33, %s6476_s15  ;;  %v2311_v37 = vld [vmem:[#allocation3 + $0x3a] sm:$0xff] }
 0x2ca   : > { %2530 = vrot.lane.b32.xlu0 %v2310_v47, %s6475_s24  ;;  %vm2111_vm14 = vcmp.ge.f32.partialorder %v2079_v55, 0.0  ;;  %v2143_v11 = vmul.f32 0.1, %v2079_v55  ;;  %v1674_v0 = vpop.f32.mrb[78].mxu0  ;;  %v2041_v14 = vadd.f32 %v1910_v51, %v1655_v16  ;;  %v1912_v35 = vpop.f32.mrb[55].mxu1 }
 0x2cb   : > { %v1675_v31 = vadd.f32 %v1674_v0, %v7713_v53  ;;  %v1676_v61 = vpop.f32.mrb[79].mxu0 }
 0x2cc   : > { %v2175_v36 = vsel %vm2111_vm14, %v2079_v55, %v2143_v11  ;;  %v2080_v52 = vadd.f32 %v7728_v40, %v2041_v14  ;;  %v2276_v29 = vld [vmem:[#allocation3 + $0x49] sm:$0xff] }
 0x2cd   : > { %2208 = vst.msk [vmem:[#allocation3 + $0x61] sm:$0xff] %vm334_vm6, %v2175_v36  ;;  %v1915_v56 = vpop.f32.mrb[56].mxu1  ;;  %2532 = vrot.lane.b32.xlu1 %v2311_v37, %s6475_s24 }
 0x2ce   : > { %2390 = vrot.lane.b32.xlu0 %v2276_v29, %s6476_s15  ;;  %vm2112_vm15 = vcmp.ge.f32.partialorder %v2080_v52, 0.0  ;;  %v2144_v48 = vmul.f32 0.1, %v2080_v52  ;;  %v1679_v42 = vpop.f32.mrb[80].mxu0  ;;  %v2042_v16 = vadd.f32 %v1915_v56, %v1660_v10  ;;  %v1917_v49 = vpop.f32.mrb[57].mxu1 }
 0x2cf   : > { %v1680_v53 = vadd.f32 %v1679_v42, %v7673_v43  ;;  %v1681_v5 = vpop.f32.mrb[81].mxu0 }
 0x2d0   : > { %v2176_v22 = vsel %vm2112_vm15, %v2080_v52, %v2144_v48  ;;  %v2081_v18 = vadd.f32 %v7728_v40, %v2042_v16  ;;  %v2277_v41 = vld [vmem:[#allocation3 + $0x51] sm:$0xff] }
 0x2d1   : > { %v2312_v19 = vld [vmem:[#allocation3 + $0x4a] sm:$0xff]  ;;  %2209 = vst.msk [vmem:[#allocation3 + $0x69] sm:$0xff] %vm334_vm6, %v2176_v22  ;;  %v1920_v4 = vpop.f32.mrb[58].mxu1  ;;  %2392 = vrot.lane.b32.xlu1 %v2277_v41, %s6476_s15  ;;  %v2313_v58 = vld [vmem:[#allocation3 + $0x52] sm:$0xff] }
 0x2d2   : > { %2534 = vrot.lane.b32.xlu0 %v2312_v19, %s6475_s24  ;;  %vm2113_vm1 = vcmp.ge.f32.partialorder %v2081_v18, 0.0  ;;  %v2145_v6 = vmul.f32 0.1, %v2081_v18  ;;  %v1684_v50 = vpop.f32.mrb[82].mxu0  ;;  %v2043_v10 = vadd.f32 %v1920_v4, %v1665_v38  ;;  %v1922_v21 = vpop.f32.mrb[59].mxu1 }
 0x2d3   : > { %v1685_v43 = vadd.f32 %v1684_v50, %v7675_v46  ;;  %v1686_v27 = vpop.f32.mrb[83].mxu0 }
 0x2d4   : > { %v2177_v44 = vsel %vm2113_vm1, %v2081_v18, %v2145_v6  ;;  %v2082_v45 = vadd.f32 %v7728_v40, %v2043_v10  ;;  %v2278_v62 = vld [vmem:[#allocation3 + $0x61] sm:$0xff] }
 0x2d5   : > { %2210 = vst.msk [vmem:[#allocation3 + $0x79] sm:$0xff] %vm334_vm6, %v2177_v44  ;;  %v1925_v59 = vpop.f32.mrb[60].mxu1  ;;  %2536 = vrot.lane.b32.xlu1 %v2313_v58, %s6475_s24 }
 0x2d6   : > { %2394 = vrot.lane.b32.xlu0 %v2278_v62, %s6476_s15  ;;  %vm2114_vm2 = vcmp.ge.f32.partialorder %v2082_v45, 0.0  ;;  %v2146_v8 = vmul.f32 0.1, %v2082_v45  ;;  %v1689_v12 = vpop.f32.mrb[84].mxu0  ;;  %v2044_v38 = vadd.f32 %v1925_v59, %v1670_v13  ;;  %v1927_v15 = vpop.f32.mrb[61].mxu1 }
 0x2d7   : > { %v1690_v46 = vadd.f32 %v1689_v12, %v7677_v1  ;;  %v1691_v25 = vpop.f32.mrb[85].mxu0 }
 0x2d8   : > { %v2178_v32 = vsel %vm2114_vm2, %v2082_v45, %v2146_v8  ;;  %v2083_v55 = vadd.f32 %v7728_v40, %v2044_v38  ;;  %v2279_v33 = vld [vmem:[#allocation3 + $0x69] sm:$0xff] }
 0x2d9   : > { %v2314_v47 = vld [vmem:[#allocation3 + $0x62] sm:$0xff]  ;;  %2211 = vst.msk [vmem:[#allocation3 + $0x81] sm:$0xff] %vm334_vm6, %v2178_v32  ;;  %v1930_v51 = vpop.f32.mrb[62].mxu1  ;;  %2396 = vrot.lane.b32.xlu1 %v2279_v33, %s6476_s15  ;;  %v2315_v52 = vld [vmem:[#allocation3 + $0x6a] sm:$0xff] }
 0x2da   : > { %2538 = vrot.lane.b32.xlu0 %v2314_v47, %s6475_s24  ;;  %vm2115_vm3 = vcmp.ge.f32.partialorder %v2083_v55, 0.0  ;;  %v2147_v11 = vmul.f32 0.1, %v2083_v55  ;;  %v1694_v0 = vpop.f32.mrb[86].mxu0  ;;  %v2045_v13 = vadd.f32 %v1930_v51, %v1675_v31  ;;  %v1932_v14 = vpop.f32.mrb[63].mxu1 }
 0x2db   : > { %v1695_v1 = vadd.f32 %v1694_v0, %v7679_v60  ;;  %v1696_v35 = vpop.f32.mrb[87].mxu0 }
 0x2dc   : > { %v2179_v61 = vsel %vm2115_vm3, %v2083_v55, %v2147_v11  ;;  %v2084_v36 = vadd.f32 %v7728_v40, %v2045_v13  ;;  %v2280_v37 = vld [vmem:[#allocation3 + $0x79] sm:$0xff] }
 0x2dd   : > { %2212 = vst.msk [vmem:[#allocation3 + $0x91] sm:$0xff] %vm334_vm6, %v2179_v61  ;;  %v1935_v29 = vpop.f32.mrb[64].mxu1  ;;  %2540 = vrot.lane.b32.xlu1 %v2315_v52, %s6475_s24 }
 0x2de   : > { %2398 = vrot.lane.b32.xlu0 %v2280_v37, %s6476_s15  ;;  %vm2116_vm4 = vcmp.ge.f32.partialorder %v2084_v36, 0.0  ;;  %v2148_v56 = vmul.f32 0.1, %v2084_v36  ;;  %v1699_v48 = vpop.f32.mrb[88].mxu0  ;;  %v2046_v31 = vadd.f32 %v1935_v29, %v1680_v53  ;;  %v1937_v42 = vpop.f32.mrb[65].mxu1 }
 0x2df   : > { %v1700_v60 = vadd.f32 %v1699_v48, %v7681_v30  ;;  %v1701_v16 = vpop.f32.mrb[89].mxu0 }
 0x2e0   : > { %v2180_v49 = vsel %vm2116_vm4, %v2084_v36, %v2148_v56  ;;  %v2085_v5 = vadd.f32 %v7728_v40, %v2046_v31  ;;  %v2281_v22 = vld [vmem:[#allocation3 + $0x81] sm:$0xff] }
 0x2e1   : > { %v2316_v18 = vld [vmem:[#allocation3 + $0x7a] sm:$0xff]  ;;  %2213 = vst.msk [vmem:[#allocation3 + $0x99] sm:$0xff] %vm334_vm6, %v2180_v49  ;;  %v1940_v41 = vpop.f32.mrb[66].mxu1  ;;  %2400 = vrot.lane.b32.xlu1 %v2281_v22, %s6476_s15  ;;  %v2317_v27 = vld [vmem:[#allocation3 + $0x82] sm:$0xff] }
 0x2e2   : > { %2542 = vrot.lane.b32.xlu0 %v2316_v18, %s6475_s24  ;;  %vm2117_vm5 = vcmp.ge.f32.partialorder %v2085_v5, 0.0  ;;  %v2149_v19 = vmul.f32 0.1, %v2085_v5  ;;  %v1704_v4 = vpop.f32.mrb[90].mxu0  ;;  %v2047_v53 = vadd.f32 %v1940_v41, %v1685_v43  ;;  %v1942_v6 = vpop.f32.mrb[67].mxu1 }
 0x2e3   : > { %v1705_v30 = vadd.f32 %v1704_v4, %v7683_v57  ;;  %v1706_v50 = vpop.f32.mrb[91].mxu0 }
 0x2e4   : > { %v2181_v10 = vsel %vm2117_vm5, %v2085_v5, %v2149_v19  ;;  %v2086_v21 = vadd.f32 %v7728_v40, %v2047_v53  ;;  %v2282_v44 = vld [vmem:[#allocation3 + $0x91] sm:$0xff] }
 0x2e5   : > { %2214 = vst.msk [vmem:[#allocation3 + $0xa9] sm:$0xff] %vm334_vm6, %v2181_v10  ;;  %v1945_v45 = vpop.f32.mrb[68].mxu1  ;;  %2544 = vrot.lane.b32.xlu1 %v2317_v27, %s6475_s24 }
 0x2e6   : > { %2402 = vrot.lane.b32.xlu0 %v2282_v44, %s6476_s15  ;;  %vm2118_vm7 = vcmp.ge.f32.partialorder %v2086_v21, 0.0  ;;  %v2150_v58 = vmul.f32 0.1, %v2086_v21  ;;  %v1709_v62 = vpop.f32.mrb[92].mxu0  ;;  %v2048_v43 = vadd.f32 %v1945_v45, %v1690_v46  ;;  %v1947_v59 = vpop.f32.mrb[69].mxu1 }
 0x2e7   : > { %v1710_v57 = vadd.f32 %v1709_v62, %v7685_v23  ;;  %v1711_v8 = vpop.f32.mrb[93].mxu0 }
 0x2e8   : > { %v2182_v12 = vsel %vm2118_vm7, %v2086_v21, %v2150_v58  ;;  %v2087_v38 = vadd.f32 %v7728_v40, %v2048_v43  ;;  %v2283_v15 = vld [vmem:[#allocation3 + $0x99] sm:$0xff] }
 0x2e9   : > { %v2318_v25 = vld [vmem:[#allocation3 + $0x92] sm:$0xff]  ;;  %2215 = vst.msk [vmem:[#allocation3 + $0xb1] sm:$0xff] %vm334_vm6, %v2182_v12  ;;  %v1950_v32 = vpop.f32.mrb[70].mxu1  ;;  %2404 = vrot.lane.b32.xlu1 %v2283_v15, %s6476_s15  ;;  %v2319_v13 = vld [vmem:[#allocation3 + $0x9a] sm:$0xff] }
 0x2ea   : > { %2546 = vrot.lane.b32.xlu0 %v2318_v25, %s6475_s24  ;;  %vm2119_vm8 = vcmp.ge.f32.partialorder %v2087_v38, 0.0  ;;  %v2151_v55 = vmul.f32 0.1, %v2087_v38  ;;  %v1714_v33 = vpop.f32.mrb[94].mxu0  ;;  %v2049_v46 = vadd.f32 %v1950_v32, %v1695_v1  ;;  %v1952_v47 = vpop.f32.mrb[71].mxu1 }
 0x2eb   : > { %v1715_v23 = vadd.f32 %v1714_v33, %v7687_v9  ;;  %v1716_v51 = vpop.f32.mrb[95].mxu0 }
 0x2ec   : > { %v2183_v11 = vsel %vm2119_vm8, %v2087_v38, %v2151_v55  ;;  %v2088_v0 = vadd.f32 %v7728_v40, %v2049_v46  ;;  %v2284_v14 = vld [vmem:[#allocation3 + $0xa9] sm:$0xff] }
 0x2ed   : > { %2216 = vst.msk [vmem:[#allocation3 + $0xc1] sm:$0xff] %vm334_vm6, %v2183_v11  ;;  %v1955_v35 = vpop.f32.mrb[72].mxu1  ;;  %2548 = vrot.lane.b32.xlu1 %v2319_v13, %s6475_s24 }
 0x2ee   : > { %2406 = vrot.lane.b32.xlu0 %v2284_v14, %s6476_s15  ;;  %vm2120_vm9 = vcmp.ge.f32.partialorder %v2088_v0, 0.0  ;;  %v2152_v61 = vmul.f32 0.1, %v2088_v0  ;;  %v1719_v36 = vpop.f32.mrb[96].mxu0  ;;  %v2050_v1 = vadd.f32 %v1955_v35, %v1700_v60  ;;  %v1957_v52 = vpop.f32.mrb[73].mxu1 }
 0x2ef   : > { %v1720_v9 = vadd.f32 %v1719_v36, %v7689_v63  ;;  %v1721_v37 = vpop.f32.mrb[97].mxu0 }
 0x2f0   : > { %v2184_v29 = vsel %vm2120_vm9, %v2088_v0, %v2152_v61  ;;  %v2089_v56 = vadd.f32 %v7728_v40, %v2050_v1  ;;  %v2285_v48 = vld [vmem:[#allocation3 + $0xb1] sm:$0xff] }
 0x2f1   : > { %v2320_v31 = vld [vmem:[#allocation3 + $0xaa] sm:$0xff]  ;;  %2217 = vst.msk [vmem:[#allocation3 + $0xc9] sm:$0xff] %vm334_vm6, %v2184_v29  ;;  %v1960_v42 = vpop.f32.mrb[74].mxu1  ;;  %2408 = vrot.lane.b32.xlu1 %v2285_v48, %s6476_s15  ;;  %v2321_v19 = vld [vmem:[#allocation3 + $0xb2] sm:$0xff] }
 0x2f2   : > { %2550 = vrot.lane.b32.xlu0 %v2320_v31, %s6475_s24  ;;  %vm2121_vm10 = vcmp.ge.f32.partialorder %v2089_v56, 0.0  ;;  %v2153_v16 = vmul.f32 0.1, %v2089_v56  ;;  %v1724_v49 = vpop.f32.mrb[98].mxu0  ;;  %v2051_v60 = vadd.f32 %v1960_v42, %v1705_v30  ;;  %v1962_v5 = vpop.f32.mrb[75].mxu1 }
 0x2f3   : > { %v1725_v63 = vadd.f32 %v1724_v49, %v7691_v24  ;;  %v1726_v22 = vpop.f32.mrb[99].mxu0 }
 0x2f4   : > { %v2185_v18 = vsel %vm2121_vm10, %v2089_v56, %v2153_v16  ;;  %v2090_v41 = vadd.f32 %v7728_v40, %v2051_v60  ;;  %v2286_v4 = vld [vmem:[#allocation3 + $0xc1] sm:$0xff] }
 0x2f5   : > { %2218 = vst.msk [vmem:[#allocation3 + $0xd9] sm:$0xff] %vm334_vm6, %v2185_v18  ;;  %v1965_v53 = vpop.f32.mrb[76].mxu1  ;;  %2552 = vrot.lane.b32.xlu1 %v2321_v19, %s6475_s24 }
 0x2f6   : > { %2410 = vrot.lane.b32.xlu0 %v2286_v4, %s6476_s15  ;;  %vm2122_vm11 = vcmp.ge.f32.partialorder %v2090_v41, 0.0  ;;  %v2154_v6 = vmul.f32 0.1, %v2090_v41  ;;  %v1729_v50 = vpop.f32.mrb[100].mxu0  ;;  %v2052_v30 = vadd.f32 %v1965_v53, %v1710_v57  ;;  %v1967_v10 = vpop.f32.mrb[77].mxu1 }
 0x2f7   : > { %v1730_v24 = vadd.f32 %v1729_v50, %v7695_v28  ;;  %v1731_v21 = vpop.f32.mrb[101].mxu0 }
 0x2f8   : > { %v2186_v27 = vsel %vm2122_vm11, %v2090_v41, %v2154_v6  ;;  %v2091_v44 = vadd.f32 %v7728_v40, %v2052_v30  ;;  %v2287_v45 = vld [vmem:[#allocation3 + $0xc9] sm:$0xff] }
 0x2f9   : > { %v2322_v58 = vld [vmem:[#allocation3 + $0xc2] sm:$0xff]  ;;  %2219 = vst.msk [vmem:[#allocation3 + $0xe1] sm:$0xff] %vm334_vm6, %v2186_v27  ;;  %v1970_v62 = vpop.f32.mrb[78].mxu1  ;;  %2412 = vrot.lane.b32.xlu1 %v2287_v45, %s6476_s15  ;;  %v2323_v25 = vld [vmem:[#allocation3 + $0xca] sm:$0xff] }
 0x2fa   : > { %2554 = vrot.lane.b32.xlu0 %v2322_v58, %s6475_s24  ;;  %vm2123_vm12 = vcmp.ge.f32.partialorder %v2091_v44, 0.0  ;;  %v2155_v43 = vmul.f32 0.1, %v2091_v44  ;;  %v1734_v59 = vpop.f32.mrb[102].mxu0  ;;  %v2053_v57 = vadd.f32 %v1970_v62, %v1715_v23  ;;  %v1972_v8 = vpop.f32.mrb[79].mxu1 }
 0x2fb   : > { %v1735_v28 = vadd.f32 %v1734_v59, %v7699_v17  ;;  %v1736_v12 = vpop.f32.mrb[103].mxu0 }
 0x2fc   : > { %v2187_v38 = vsel %vm2123_vm12, %v2091_v44, %v2155_v43  ;;  %v2092_v15 = vadd.f32 %v7728_v40, %v2053_v57  ;;  %v2288_v32 = vld [vmem:[#allocation3 + $0xd9] sm:$0xff]  ;;  %vm2907_vm12 = vcmask 785408  }
 0x2fd   : > { %2220 = vst.msk [vmem:[#allocation3 + $0xf1] sm:$0xff] %vm334_vm6, %v2187_v38  ;;  %v1975_v55 = vpop.f32.mrb[80].mxu1  ;;  %2556 = vrot.lane.b32.xlu1 %v2323_v25, %s6475_s24 }
 0x2fe   : > { %2414 = vrot.lane.b32.xlu0 %v2288_v32, %s6476_s15  ;;  %vm2124_vm13 = vcmp.ge.f32.partialorder %v2092_v15, 0.0  ;;  %v2156_v33 = vmul.f32 0.1, %v2092_v15  ;;  %v1739_v46 = vpop.f32.mrb[104].mxu0  ;;  %v2054_v47 = vadd.f32 %v1975_v55, %v1720_v9  ;;  %v1977_v23 = vpop.f32.mrb[81].mxu1 }
 0x2ff   : > { %v1740_v17 = vadd.f32 %v1739_v46, %v7703_v3  ;;  %v1741_v51 = vpop.f32.mrb[105].mxu0 }
 0x300   : > { %v2188_v11 = vsel %vm2124_vm13, %v2092_v15, %v2156_v33  ;;  %v2093_v0 = vadd.f32 %v7728_v40, %v2054_v47  ;;  %v2289_v13 = vld [vmem:[#allocation3 + $0xe1] sm:$0xff]  ;;  %vm5783_vm13 = vcmask 261312  }
 0x301   : > { %v2324_v14 = vld [vmem:[#allocation3 + $0xda] sm:$0xff]  ;;  %2221 = vst.msk [vmem:[#allocation3 + $0xf9] sm:$0xff] %vm334_vm6, %v2188_v11  ;;  %v1980_v35 = vpop.f32.mrb[82].mxu1  ;;  %2416 = vrot.lane.b32.xlu1 %v2289_v13, %s6476_s15  ;;  %v2325_v56 = vld [vmem:[#allocation3 + $0xe2] sm:$0xff] }
 0x302   : > { %2558 = vrot.lane.b32.xlu0 %v2324_v14, %s6475_s24  ;;  %vm2125_vm14 = vcmp.ge.f32.partialorder %v2093_v0, 0.0  ;;  %v2157_v61 = vmul.f32 0.1, %v2093_v0  ;;  %v1744_v36 = vpop.f32.mrb[106].mxu0  ;;  %v2055_v1 = vadd.f32 %v1980_v35, %v1725_v63  ;;  %v1982_v52 = vpop.f32.mrb[83].mxu1 }
 0x303   : > { %v1745_v3 = vadd.f32 %v1744_v36, %v7707_v20  ;;  %v1746_v9 = vpop.f32.mrb[107].mxu0 }
 0x304   : > { %v2189_v37 = vsel %vm2125_vm14, %v2093_v0, %v2157_v61  ;;  %v2094_v29 = vadd.f32 %v7728_v40, %v2055_v1  ;;  %v2290_v48 = vld [vmem:[#allocation3 + $0xf1] sm:$0xff]  ;;  %vm5790_vm14 = vcmask 326912  }
 0x305   : > { %2222 = vst.msk [vmem:[#allocation3 + $0x109] sm:$0xff] %vm334_vm6, %v2189_v37  ;;  %v1985_v31 = vpop.f32.mrb[84].mxu1  ;;  %2560 = vrot.lane.b32.xlu1 %v2325_v56, %s6475_s24 }
 0x306   : > { %2418 = vrot.lane.b32.xlu0 %v2290_v48, %s6476_s15  ;;  %vm2126_vm15 = vcmp.ge.f32.partialorder %v2094_v29, 0.0  ;;  %v2158_v42 = vmul.f32 0.1, %v2094_v29  ;;  %v1749_v16 = vpop.f32.mrb[108].mxu0  ;;  %v2056_v49 = vadd.f32 %v1985_v31, %v1730_v24  ;;  %v1987_v60 = vpop.f32.mrb[85].mxu1 }
 0x307   : > { %v1750_v20 = vadd.f32 %v1749_v16, %v7711_v39  ;;  %v1751_v5 = vpop.f32.mrb[109].mxu0 }
 0x308   : > { %v2190_v63 = vsel %vm2126_vm15, %v2094_v29, %v2158_v42  ;;  %v2095_v22 = vadd.f32 %v7728_v40, %v2056_v49  ;;  %v2291_v18 = vld [vmem:[#allocation3 + $0xf9] sm:$0xff]  ;;  %vm5797_vm15 = vcmask 392512  }
 0x309   : > { %v2326_v41 = vld [vmem:[#allocation3 + $0xf2] sm:$0xff]  ;;  %2223 = vst.msk [vmem:[#allocation3 + $0x111] sm:$0xff] %vm334_vm6, %v2190_v63  ;;  %v1990_v19 = vpop.f32.mrb[86].mxu1  ;;  %2420 = vrot.lane.b32.xlu1 %v2291_v18, %s6476_s15  ;;  %v2327_v21 = vld [vmem:[#allocation3 + $0xfa] sm:$0xff] }
 0x30a   : > { %2562 = vrot.lane.b32.xlu0 %v2326_v41, %s6475_s24  ;;  %vm2127_vm1 = vcmp.ge.f32.partialorder %v2095_v22, 0.0  ;;  %v2159_v4 = vmul.f32 0.1, %v2095_v22  ;;  %v1754_v53 = vpop.f32.mrb[110].mxu0  ;;  %v2057_v6 = vadd.f32 %v1990_v19, %v1735_v28  ;;  %v1992_v50 = vpop.f32.mrb[87].mxu1 }
 0x30b   : > { %v1755_v39 = vadd.f32 %v1754_v53, %v7715_v54  ;;  %v1756_v30 = vpop.f32.mrb[111].mxu0 }
 0x30c   : > { %v2191_v10 = vsel %vm2127_vm1, %v2095_v22, %v2159_v4  ;;  %v2096_v24 = vadd.f32 %v7728_v40, %v2057_v6  ;;  %v2292_v27 = vld [vmem:[#allocation3 + $0x109] sm:$0xff]  ;;  %vm5804_vm1 = vcmask 458112  }
 0x30d   : > { %2224 = vst.msk [vmem:[#allocation3 + $0x121] sm:$0xff] %vm334_vm6, %v2191_v10  ;;  %v1995_v44 = vpop.f32.mrb[88].mxu1  ;;  %2564 = vrot.lane.b32.xlu1 %v2327_v21, %s6475_s24 }
 0x30e   : > { %2422 = vrot.lane.b32.xlu0 %v2292_v27, %s6476_s15  ;;  %vm2128_vm2 = vcmp.ge.f32.partialorder %v2096_v24, 0.0  ;;  %v2160_v45 = vmul.f32 0.1, %v2096_v24  ;;  %v1759_v58 = vpop.f32.mrb[112].mxu0  ;;  %v2058_v62 = vadd.f32 %v1995_v44, %v1740_v17  ;;  %v1997_v43 = vpop.f32.mrb[89].mxu1 }
 0x30f   : > { %v1760_v54 = vadd.f32 %v1759_v58, %v7717_v7  ;;  %v1761_v59 = vpop.f32.mrb[113].mxu0 }
 0x310   : > { %v2192_v57 = vsel %vm2128_vm2, %v2096_v24, %v2160_v45  ;;  %v2097_v8 = vadd.f32 %v7728_v40, %v2058_v62  ;;  %v2293_v28 = vld [vmem:[#allocation3 + $0x111] sm:$0xff]  ;;  %vm5811_vm2 = vcmask 523712  }
 0x311   : > { %v2328_v12 = vld [vmem:[#allocation3 + $0x10a] sm:$0xff]  ;;  %2225 = vst.msk [vmem:[#allocation3 + $0x129] sm:$0xff] %vm334_vm6, %v2192_v57  ;;  %v2000_v38 = vpop.f32.mrb[90].mxu1  ;;  %2424 = vrot.lane.b32.xlu1 %v2293_v28, %s6476_s15  ;;  %v2329_v23 = vld [vmem:[#allocation3 + $0x112] sm:$0xff] }
 0x312   : > { %2566 = vrot.lane.b32.xlu0 %v2328_v12, %s6475_s24  ;;  %vm2129_vm3 = vcmp.ge.f32.partialorder %v2097_v8, 0.0  ;;  %v2161_v15 = vmul.f32 0.1, %v2097_v8  ;;  %v1764_v25 = vpop.f32.mrb[114].mxu0  ;;  %v2059_v32 = vadd.f32 %v2000_v38, %v1745_v3  ;;  %v2002_v55 = vpop.f32.mrb[91].mxu1 }
 0x313   : > { %v1765_v7 = vadd.f32 %v1764_v25, %v7719_v26  ;;  %v1766_v33 = vpop.f32.mrb[115].mxu0  ;;  %v7853_v3 = vpop.permute.xlu0 %2378 }
 0x314   : > { %v2193_v46 = vsel %vm2129_vm3, %v2097_v8, %v2161_v15  ;;  %v2098_v47 = vadd.f32 %v7728_v40, %v2059_v32  ;;  %v2294_v17 = vld [vmem:[#allocation3 + $0x121] sm:$0xff]  ;;  %vm5818_vm3 = vcmask 589312  }
 0x315   : > { %2226 = vst.msk [vmem:[#allocation3 + $0x139] sm:$0xff] %vm334_vm6, %v2193_v46  ;;  %v2005_v51 = vpop.f32.mrb[92].mxu1  ;;  %2568 = vrot.lane.b32.xlu1 %v2329_v23, %s6475_s24 }
 0x316   : > { %2426 = vrot.lane.b32.xlu0 %v2294_v17, %s6476_s15  ;;  %vm2130_vm4 = vcmp.ge.f32.partialorder %v2098_v47, 0.0  ;;  %v2162_v11 = vmul.f32 0.1, %v2098_v47  ;;  %v1769_v0 = vpop.f32.mrb[116].mxu0  ;;  %v2060_v13 = vadd.f32 %v2005_v51, %v1750_v20  ;;  %v2007_v14 = vpop.f32.mrb[93].mxu1 }
 0x317   : > { %v1770_v26 = vadd.f32 %v1769_v0, %v7721_v2  ;;  %v1771_v35 = vpop.f32.mrb[117].mxu0  ;;  %v7860_v20 = vpop.permute.xlu1 %2380 }
 0x318   : > { %v2194_v61 = vsel %vm2130_vm4, %v2098_v47, %v2162_v11  ;;  %v2099_v36 = vadd.f32 %v7728_v40, %v2060_v13  ;;  %v2295_v1 = vld [vmem:[#allocation3 + $0x129] sm:$0xff]  ;;  %vm5825_vm4 = vcmask 654912  }
 0x319   : > { %v2330_v52 = vld [vmem:[#allocation3 + $0x122] sm:$0xff]  ;;  %2227 = vst.msk [vmem:[#allocation3 + $0x141] sm:$0xff] %vm334_vm6, %v2194_v61  ;;  %v2010_v9 = vpop.f32.mrb[94].mxu1  ;;  %2428 = vrot.lane.b32.xlu1 %v2295_v1, %s6476_s15  ;;  %v2331_v49 = vld [vmem:[#allocation3 + $0x12a] sm:$0xff] }
 0x31a   : > { %2570 = vrot.lane.b32.xlu0 %v2330_v52, %s6475_s24  ;;  %vm2131_vm5 = vcmp.ge.f32.partialorder %v2099_v36, 0.0  ;;  %v2163_v37 = vmul.f32 0.1, %v2099_v36  ;;  %v1774_v29 = vpop.f32.mrb[118].mxu0  ;;  %v2061_v56 = vadd.f32 %v2010_v9, %v1755_v39  ;;  %v2012_v2 = vpop.f32.mrb[95].mxu1 }
 0x31b   : > { %v1775_v48 = vadd.f32 %v1774_v29, %v7723_v34  ;;  %v1776_v31 = vpop.f32.mrb[119].mxu0  ;;  %v7864_v34 = vpop.permute.xlu0 %2446 }
 0x31c   : > { %v2195_v42 = vsel %vm2131_vm5, %v2099_v36, %v2163_v37  ;;  %v2100_v16 = vadd.f32 %v7728_v40, %v2061_v56  ;;  %v2296_v60 = vld [vmem:[#allocation3 + $0x139] sm:$0xff]  ;;  %v7870_v10 = vpop.permute.xlu1 %2448  ;;  %v2703_v56 = vlaneseq  ;;  %vm5832_vm5 = vcmask 720512  }
 0x31d   : > { %2228 = vst.msk [vmem:[#allocation3 + $0x151] sm:$0xff] %vm334_vm6, %v2195_v42  ;;  %v2015_v5 = vpop.f32.mrb[96].mxu1  ;;  %2572 = vrot.lane.b32.xlu1 %v2331_v49, %s6475_s24 }
 0x31e   : > { %2430 = vrot.lane.b32.xlu0 %v2296_v60, %s6476_s15  ;;  %vm2132_vm7 = vcmp.ge.f32.partialorder %v2100_v16, 0.0  ;;  %v2164_v63 = vmul.f32 0.1, %v2100_v16  ;;  %v2062_v22 = vadd.f32 %v2015_v5, %v1760_v54  ;;  %v2017_v18 = vpop.f32.mrb[97].mxu1  ;;  %v7901_v31 = vshrl.u32 %v2703_v56, 7  ;;  %v2234_v60 = vld [vmem:[#allocation3] sm:$0xff] }
 0x31f   : > { %v7874_v45 = vpop.permute.xlu0 %2522  ;;  %v2702_v18 = vld [vmem:[%s9096_s5] sm:$0x7] }
 0x320   : > { %v2196_v41 = vsel %vm2132_vm7, %v2100_v16, %v2164_v63  ;;  %v2101_v19 = vadd.f32 %v7728_v40, %v2062_v22  ;;  %v2297_v4 = vld [vmem:[#allocation3 + $0x141] sm:$0xff]  ;;  %v7880_v12 = vpop.permute.xlu1 %2524  ;;  %v7904_v49 = vsub.s32 1, %v7901_v31  ;;  %v7907_v5 = vsub.s32 0, %v7901_v31 }
 0x321   : > { %v2332_v53 = vld [vmem:[#allocation3 + $0x13a] sm:$0xff]  ;;  %2229 = vst.msk [vmem:[#allocation3 + $0x159] sm:$0xff] %vm334_vm6, %v2196_v41  ;;  %v2020_v6 = vpop.f32.mrb[98].mxu1  ;;  %2432 = vrot.lane.b32.xlu1 %v2297_v4, %s6476_s15  ;;  %v2333_v27 = vld [vmem:[#allocation3 + $0x142] sm:$0xff]  ;;  %v7915_v4 = vsub.s32 2, %v7901_v31  ;;  %vm5839_vm7 = vcmask 786112  }
 0x322   : > { %2574 = vrot.lane.b32.xlu0 %v2332_v53, %s6475_s24  ;;  %vm2133_vm8 = vcmp.ge.f32.partialorder %v2101_v19, 0.0  ;;  %v2165_v50 = vmul.f32 0.1, %v2101_v19  ;;  %v2063_v39 = vadd.f32 %v2020_v6, %v1765_v7  ;;  %v2022_v30 = vpop.f32.mrb[99].mxu1  ;;  %v2236_v41 = vld [vmem:[#allocation3 + $0x18] sm:$0xff]  ;;  %v7919_v6 = vrot.slane %v2702_v18, %v7904_v49 }
 0x323   : > { %v7884_v55 = vpop.permute.xlu0 %2590  ;;  %v7923_v30 = vrot.slane %v2702_v18, %v7907_v5 }
 0x324   : > { %v2197_v24 = vsel %vm2133_vm8, %v2101_v19, %v2165_v50  ;;  %v2102_v21 = vadd.f32 %v7728_v40, %v2063_v39  ;;  %v2298_v44 = vld [vmem:[#allocation3 + $0x151] sm:$0xff]  ;;  %v7890_v17 = vpop.permute.xlu1 %2592  ;;  %v2630_v19 = vsel %vm334_vm6, %v2234_v60, %v7853_v3  ;;  %vm5846_vm8 = vcmask 851712  }
 0x325   : > { %2230 = vst.msk [vmem:[#allocation3 + $0x169] sm:$0xff] %vm334_vm6, %v2197_v24  ;;  %v2025_v58 = vpop.f32.mrb[100].mxu1  ;;  %2576 = vrot.lane.b32.xlu1 %v2333_v27, %s6475_s24  ;;  %v2238_v39 = vld [vmem:[#allocation3 + $0x30] sm:$0xff]  ;;  %v2666_v3 = vsel %vm278_vm0, %v2630_v19, %v7874_v45 }
 0x326   : > { %2434 = vrot.lane.b32.xlu0 %v2298_v44, %s6476_s15  ;;  %vm2134_vm9 = vcmp.ge.f32.partialorder %v2102_v21, 0.0  ;;  %v2166_v62 = vmul.f32 0.1, %v2102_v21  ;;  %v2064_v43 = vadd.f32 %v2025_v58, %v1770_v26  ;;  %v2027_v54 = vpop.f32.mrb[101].mxu1  ;;  %v2235_v44 = vld [vmem:[#allocation3 + $0x8] sm:$0xff] }
 0x327   : > { %v2240_v54 = vld [vmem:[#allocation3 + $0x48] sm:$0xff] }
 0x328   : > { %v2198_v59 = vsel %vm2134_vm9, %v2102_v21, %v2166_v62  ;;  %v2103_v57 = vadd.f32 %v7728_v40, %v2064_v43  ;;  %v2299_v8 = vld [vmem:[#allocation3 + $0x159] sm:$0xff]  ;;  %v7930_v62 = vrot.slane %v2702_v18, %v7915_v4  ;;  %vm5853_vm9 = vcmask 917312  }
 0x329   : > { %v2334_v28 = vld [vmem:[#allocation3 + $0x152] sm:$0xff]  ;;  %2231 = vst.msk [vmem:[#allocation3 + $0x171] sm:$0xff] %vm334_vm6, %v2198_v59  ;;  %v2030_v38 = vpop.f32.mrb[102].mxu1  ;;  %2436 = vrot.lane.b32.xlu1 %v2299_v8, %s6476_s15  ;;  %v2335_v46 = vld [vmem:[#allocation3 + $0x15a] sm:$0xff]  ;;  %v2631_v59 = vsel %vm334_vm6, %v2235_v44, %v7860_v20 }
 0x32a   : > { %2578 = vrot.lane.b32.xlu0 %v2334_v28, %s6475_s24  ;;  %vm2135_vm10 = vcmp.ge.f32.partialorder %v2103_v57, 0.0  ;;  %v2167_v15 = vmul.f32 0.1, %v2103_v57  ;;  %v2065_v25 = vadd.f32 %v2030_v38, %v1775_v48  ;;  %v2032_v32 = vpop.f32.mrb[103].mxu1  ;;  %v2237_v8 = vld [vmem:[#allocation3 + $0x20] sm:$0xff] }
 0x32b   : > { %v2239_v32 = vld [vmem:[#allocation3 + $0x38] sm:$0xff] }
 0x32c   : > { %v2199_v7 = vsel %vm2135_vm10, %v2103_v57, %v2167_v15  ;;  %v2104_v33 = vadd.f32 %v7728_v40, %v2065_v25  ;;  %v2300_v47 = vld [vmem:[#allocation3 + $0x169] sm:$0xff]  ;;  %v2707_v57 = vmul.f32 %v7923_v30, %v2666_v3  ;;  %v2245_v3 = vld [vmem:[#allocation3 + $0x80] sm:$0xff]  ;;  %vm5860_vm10 = vcmask 982912  }
 0x32d   : > { %2232 = vst.msk [vmem:[#allocation3 + $0x181] sm:$0xff] %vm334_vm6, %v2199_v7  ;;  %2580 = vrot.lane.b32.xlu1 %v2335_v46, %s6475_s24 }
 0x32e   : > { %2438 = vrot.lane.b32.xlu0 %v2300_v47, %s6476_s15  ;;  %vm2136_vm11 = vcmp.ge.f32.partialorder %v2104_v33, 0.0  ;;  %v2168_v23 = vmul.f32 0.1, %v2104_v33 }
 0x32f   : > { %v2383_v51 = vpop.permute.xlu0 %2382 }
 0x330   : > { %v2200_v11 = vsel %vm2136_vm11, %v2104_v33, %v2168_v23  ;;  %v2301_v0 = vld [vmem:[#allocation3 + $0x171] sm:$0xff]  ;;  %v2632_v53 = vsel %vm334_vm6, %v2236_v41, %v2383_v51  ;;  %v2667_v23 = vsel %vm278_vm0, %v2631_v59, %v7880_v12  ;;  %vm5867_vm11 = vcmask 1048512  }
 0x331   : > { %v2336_v13 = vld [vmem:[#allocation3 + $0x16a] sm:$0xff]  ;;  %2233 = vst.msk [vmem:[#allocation3 + $0x189] sm:$0xff] %vm334_vm6, %v2200_v11  ;;  %2440 = vrot.lane.b32.xlu1 %v2301_v0, %s6476_s15  ;;  %v2337_v26 = vld [vmem:[#allocation3 + $0x172] sm:$0xff] }
 0x332   : > { %2582 = vrot.lane.b32.xlu0 %v2336_v13, %s6475_s24  ;;  %v2241_v11 = vld [vmem:[#allocation3 + $0x50] sm:$0xff]  ;;  %v2244_v59 = vld [vmem:[#allocation3 + $0x78] sm:$0xff] }
 0x333   : > { %v2385_v40 = vpop.permute.xlu1 %2384 }
 0x334   : > { %v2527_v14 = vpop.permute.xlu0 %2526  ;;  %v2302_v35 = vld [vmem:[#allocation3 + $0x181] sm:$0xff]  ;;  %v2633_v25 = vsel %vm334_vm6, %v2237_v8, %v2385_v40 }
 0x335   : > { %2584 = vrot.lane.b32.xlu1 %v2337_v26, %s6475_s24  ;;  %v2668_v50 = vsel %vm278_vm0, %v2632_v53, %v2527_v14 }
 0x336   : > { %2442 = vrot.lane.b32.xlu0 %v2302_v35, %s6476_s15  ;;  %v2775_v43 = vmul.f32 %v7919_v6, %v2668_v50  ;;  %v2709_v0 = vmul.f32 %v7923_v30, %v2668_v50 }
 0x337   : > { %v2529_v61 = vpop.permute.xlu1 %2528 }
 0x338   : > { %v2387_v36 = vpop.permute.xlu0 %2386  ;;  %v2303_v1 = vld [vmem:[#allocation3 + $0x189] sm:$0xff]  ;;  %v2807_v33 = vadd.f32 %v2775_v43, %v2707_v57  ;;  %v2669_v46 = vsel %vm278_vm0, %v2633_v25, %v2529_v61 }
 0x339   : > { %v2338_v52 = vld [vmem:[#allocation3 + $0x182] sm:$0xff]  ;;  %2444 = vrot.lane.b32.xlu1 %v2303_v1, %s6476_s15  ;;  %v2339_v29 = vld [vmem:[#allocation3 + $0x18a] sm:$0xff]  ;;  %v2634_v24 = vsel %vm334_vm6, %v2238_v39, %v2387_v36  ;;  %v2776_v61 = vmul.f32 %v7919_v6, %v2669_v46 }
 0x33a   : > { %2586 = vrot.lane.b32.xlu0 %v2338_v52, %s6475_s24  ;;  %v2708_v52 = vmul.f32 %v7923_v30, %v2667_v23 }
 0x33b   : > { %v2389_v9 = vpop.permute.xlu1 %2388 }
 0x33c   : > { %v2531_v37 = vpop.permute.xlu0 %2530  ;;  %v2635_v47 = vsel %vm334_vm6, %v2239_v32, %v2389_v9  ;;  %v2710_v9 = vmul.f32 %v7923_v30, %v2669_v46  ;;  %v2808_v41 = vadd.f32 %v2776_v61, %v2708_v52 }
 0x33d   : > { %2588 = vrot.lane.b32.xlu1 %v2339_v29, %s6475_s24  ;;  %v2670_v58 = vsel %vm278_vm0, %v2634_v24, %v2531_v37  ;;  %v2243_v29 = vld [vmem:[#allocation3 + $0x68] sm:$0xff]  ;;  %s3004_s24 = sld [smem:[#allocation4]] }
 0x33e   : > { %v2843_v28 = vmul.f32 %v7930_v62, %v2670_v58  ;;  %v2777_v20 = vmul.f32 %v7919_v6, %v2670_v58 }
 0x33f   : > { %v2533_v2 = vpop.permute.xlu1 %2532 }
 0x340   : > { %v2391_v48 = vpop.permute.xlu0 %2390  ;;  %v2671_v51 = vsel %vm278_vm0, %v2635_v47, %v2533_v2  ;;  %v2875_v35 = vadd.f32 %v2843_v28, %v2807_v33  ;;  %v2809_v12 = vadd.f32 %v2777_v20, %v2709_v0 }
 0x341   : > { %v2636_v38 = vsel %vm334_vm6, %v2240_v54, %v2391_v48  ;;  %v2778_v1 = vmul.f32 %v7919_v6, %v2671_v51  ;;  %v2844_v37 = vmul.f32 %v7930_v62, %v2671_v51  ;;  %v2242_v48 = vld [vmem:[#allocation3 + $0x60] sm:$0xff]  ;;  %v2712_v44 = vmul.f32 %v7923_v30, %v2671_v51 }
 0x343   : > { %v2393_v42 = vpop.permute.xlu1 %2392  ;;  %v2810_v24 = vadd.f32 %v2778_v1, %v2710_v9  ;;  %v2876_v43 = vadd.f32 %v2844_v37, %v2808_v41 }
 0x344   : > { %v2535_v16 = vpop.permute.xlu0 %2534  ;;  %v2637_v13 = vsel %vm334_vm6, %v2241_v11, %v2393_v42  ;;  %v2247_v11 = vld [vmem:[#allocation3 + $0x98] sm:$0xff] }
 0x345   : > { %v2672_v7 = vsel %vm278_vm0, %v2636_v38, %v2535_v16 }
 0x346   : > { %v2845_v40 = vmul.f32 %v7930_v62, %v2672_v7  ;;  %v2713_v33 = vmul.f32 %v7923_v30, %v2672_v7 }
 0x347   : > { %v2537_v63 = vpop.permute.xlu1 %2536 }
 0x348   : > { %v2395_v22 = vpop.permute.xlu0 %2394  ;;  %v2673_v36 = vsel %vm278_vm0, %v2637_v13, %v2537_v63  ;;  %v2908_v63 = vsel %vm2907_vm12, %v2875_v35, 0.0  ;;  %v2877_v18 = vadd.f32 %v2845_v40, %v2809_v12  ;;  %v2246_v13 = vld [vmem:[#allocation3 + $0x90] sm:$0xff] }
 0x349   : > { %v2846_v2 = vmul.f32 %v7930_v62, %v2673_v36  ;;  %v2638_v19 = vsel %vm334_vm6, %v2242_v48, %v2395_v22  ;;  %v2780_v50 = vmul.f32 %v7919_v6, %v2673_v36  ;;  %v2714_v23 = vmul.f32 %v7923_v30, %v2673_v36 }
 0x34a   : > { %v2914_v28 = vsel %vm2907_vm12, %v2877_v18, 0.0 }
 0x34b   : > { %v2397_v21 = vpop.permute.xlu1 %2396  ;;  %v2878_v38 = vadd.f32 %v2846_v2, %v2810_v24  ;;  %v2812_v20 = vadd.f32 %v2780_v50, %v2712_v44 }
 0x34c   : > { %v2539_v27 = vpop.permute.xlu0 %2538  ;;  %v2639_v42 = vsel %vm334_vm6, %v2243_v29, %v2397_v21  ;;  %v2779_v21 = vmul.f32 %v7919_v6, %v2672_v7 }
 0x34d   : > { %v2674_v39 = vsel %vm278_vm0, %v2638_v19, %v2539_v27  ;;  %v2917_v35 = vsel %vm2907_vm12, %v2878_v38, 0.0 }
 0x34e   : > { %v2847_v27 = vmul.f32 %v7930_v62, %v2674_v39  ;;  %v2781_v51 = vmul.f32 %v7919_v6, %v2674_v39  ;;  %v2715_v29 = vmul.f32 %v7923_v30, %v2674_v39 }
 0x34f   : > { %v2541_v15 = vpop.permute.xlu1 %2540 }
 0x350   : > { %v2399_v45 = vpop.permute.xlu0 %2398  ;;  %v2675_v53 = vsel %vm278_vm0, %v2639_v42, %v2541_v15  ;;  %v2711_v15 = vmul.f32 %v7923_v30, %v2670_v58  ;;  %v2911_v58 = vsel %vm2907_vm12, %v2876_v43, 0.0  ;;  %v2813_v48 = vadd.f32 %v2781_v51, %v2713_v33  ;;  %v2250_v51 = vld [vmem:[#allocation3 + $0xc0] sm:$0xff] }
 0x351   : > { %v2848_v54 = vmul.f32 %v7930_v62, %v2675_v53  ;;  %v2640_v25 = vsel %vm334_vm6, %v2244_v59, %v2399_v45  ;;  %v2782_v46 = vmul.f32 %v7919_v6, %v2675_v53  ;;  %v2716_v42 = vmul.f32 %v7923_v30, %v2675_v53  ;;  %v2249_v59 = vld [vmem:[#allocation3 + $0xb0] sm:$0xff] }
 0x352   : > { %v2811_v0 = vadd.f32 %v2779_v21, %v2711_v15 }
 0x353   : > { %v2401_v14 = vpop.permute.xlu1 %2400  ;;  %v2880_v61 = vadd.f32 %v2848_v54, %v2812_v20  ;;  %v2814_v37 = vadd.f32 %v2782_v46, %v2714_v23 }
 0x354   : > { %v2543_v26 = vpop.permute.xlu0 %2542  ;;  %v2641_v57 = vsel %vm334_vm6, %v2245_v3, %v2401_v14  ;;  %v2879_v12 = vadd.f32 %v2847_v27, %v2811_v0 }
 0x355   : > { %v2676_v47 = vsel %vm278_vm0, %v2640_v25, %v2543_v26  ;;  %v2923_v41 = vsel %vm2907_vm12, %v2880_v61, 0.0 }
 0x356   : > { %v2849_v26 = vmul.f32 %v7930_v62, %v2676_v47  ;;  %v2783_v2 = vmul.f32 %v7919_v6, %v2676_v47  ;;  %v2920_v39 = vsel %vm2907_vm12, %v2879_v12, 0.0  ;;  %v2717_v43 = vmul.f32 %v7923_v30, %v2676_v47  ;;  %v2251_v12 = vld [vmem:[#allocation3 + $0xc8] sm:$0xff] }
 0x357   : > { %v2545_v16 = vpop.permute.xlu1 %2544 }
 0x358   : > { %v2403_v60 = vpop.permute.xlu0 %2402  ;;  %v2677_v32 = vsel %vm278_vm0, %v2641_v57, %v2545_v16  ;;  %v2881_v44 = vadd.f32 %v2849_v26, %v2813_v48  ;;  %v2815_v57 = vadd.f32 %v2783_v2, %v2715_v29 }
 0x359   : > { %2909 = vadd.xlane.f32.xlu0 %v2908_v63  ;;  %v2850_v45 = vmul.f32 %v7930_v62, %v2677_v32  ;;  %v2642_v36 = vsel %vm334_vm6, %v2246_v13, %v2403_v60  ;;  %v2784_v52 = vmul.f32 %v7919_v6, %v2677_v32  ;;  %v2248_v60 = vld [vmem:[#allocation3 + $0xa8] sm:$0xff] }
 0x35a   : > { %v2926_v46 = vsel %vm2907_vm12, %v2881_v44, 0.0 }
 0x35b   : > { %v2405_v22 = vpop.permute.xlu1 %2404  ;;  %v2882_v19 = vadd.f32 %v2850_v45, %v2814_v37  ;;  %v2816_v3 = vadd.f32 %v2784_v52, %v2716_v42 }
 0x35c   : > { %v2547_v8 = vpop.permute.xlu0 %2546  ;;  %v2643_v40 = vsel %vm334_vm6, %v2247_v11, %v2405_v22  ;;  %v2718_v22 = vmul.f32 %v7923_v30, %v2677_v32 }
 0x35d   : > { %2915 = vadd.xlane.f32.xlu0 %v2914_v28  ;;  %v2678_v9 = vsel %vm278_vm0, %v2642_v36, %v2547_v8  ;;  %v2929_v15 = vsel %vm2907_vm12, %v2882_v19, 0.0  ;;  %v2252_v19 = vld [vmem:[#allocation3 + $0xd8] sm:$0xff] }
 0x35e   : > { %v2851_v50 = vmul.f32 %v7930_v62, %v2678_v9  ;;  %v2785_v54 = vmul.f32 %v7919_v6, %v2678_v9 }
 0x35f   : > { %v2549_v14 = vpop.permute.xlu1 %2548 }
 0x360   : > { %v2407_v7 = vpop.permute.xlu0 %2406  ;;  %v2679_v1 = vsel %vm278_vm0, %v2643_v40, %v2549_v14  ;;  %v2883_v47 = vadd.f32 %v2851_v50, %v2815_v57  ;;  %v2817_v11 = vadd.f32 %v2785_v54, %v2717_v43  ;;  %v2719_v14 = vmul.f32 %v7923_v30, %v2678_v9 }
 0x361   : > { %2918 = vadd.xlane.f32.xlu0 %v2917_v35  ;;  %2912 = vadd.xlane.f32.xlu1 %v2911_v58  ;;  %v2852_v16 = vmul.f32 %v7930_v62, %v2679_v1  ;;  %v2644_v24 = vsel %vm334_vm6, %v2248_v60, %v2407_v7  ;;  %v2786_v21 = vmul.f32 %v7919_v6, %v2679_v1  ;;  %v6477_v43 = vmov 0  }
 0x362   : > { %v2932_v35 = vsel %vm2907_vm12, %v2883_v47, 0.0  ;;  %v2720_v37 = vmul.f32 %v7923_v30, %v2679_v1  ;;  %6461 = vset.pattern.permute.xlu1 %v6477_v43  ;;  %6462 = vset.pattern.permute.xlu0 %v6477_v43 }
 0x363   : > { %v2409_v63 = vpop.permute.xlu1 %2408  ;;  %v2884_v27 = vadd.f32 %v2852_v16, %v2816_v3  ;;  %v2818_v23 = vadd.f32 %v2786_v21, %v2718_v22  ;;  %v2253_v22 = vld [vmem:[#allocation3 + $0xe0] sm:$0xff] }
 0x364   : > { %v2551_v18 = vpop.permute.xlu0 %2550  ;;  %v2645_v8 = vsel %vm334_vm6, %v2249_v59, %v2409_v63 }
 0x365   : > { %2924 = vadd.xlane.f32.xlu0 %v2923_v41  ;;  %v2680_v53 = vsel %vm278_vm0, %v2644_v24, %v2551_v18  ;;  %2921 = vadd.xlane.f32.xlu1 %v2920_v39  ;;  %v2935_v13 = vsel %vm2907_vm12, %v2884_v27, 0.0 }
 0x366   : > { %v2853_v25 = vmul.f32 %v7930_v62, %v2680_v53  ;;  %v2787_v32 = vmul.f32 %v7919_v6, %v2680_v53  ;;  %v2721_v1 = vmul.f32 %v7923_v30, %v2680_v53 }
 0x367   : > { %v2553_v28 = vpop.permute.xlu1 %2552 }
 0x368   : > { %v2411_v38 = vpop.permute.xlu0 %2410  ;;  %v2681_v33 = vsel %vm278_vm0, %v2645_v8, %v2553_v28  ;;  %v2885_v61 = vadd.f32 %v2853_v25, %v2817_v11  ;;  %v2819_v52 = vadd.f32 %v2787_v32, %v2719_v14  ;;  %v2254_v32 = vld [vmem:[#allocation3 + $0xf0] sm:$0xff] }
 0x369   : > { %2930 = vadd.xlane.f32.xlu0 %v2929_v15  ;;  %v2854_v20 = vmul.f32 %v7930_v62, %v2681_v33  ;;  %2927 = vadd.xlane.f32.xlu1 %v2926_v46  ;;  %v2646_v58 = vsel %vm334_vm6, %v2250_v51, %v2411_v38  ;;  %v2788_v26 = vmul.f32 %v7919_v6, %v2681_v33 }
 0x36a   : > { %v2938_v16 = vsel %vm2907_vm12, %v2885_v61, 0.0  ;;  %v2722_v8 = vmul.f32 %v7923_v30, %v2681_v33  ;;  %v2255_v61 = vld [vmem:[#allocation3 + $0xf8] sm:$0xff] }
 0x36b   : > { %v2413_v0 = vpop.permute.xlu1 %2412  ;;  %v2886_v40 = vadd.f32 %v2854_v20, %v2818_v23  ;;  %v2820_v41 = vadd.f32 %v2788_v26, %v2720_v37 }
 0x36c   : > { %v2555_v45 = vpop.permute.xlu0 %2554  ;;  %v2647_v29 = vsel %vm334_vm6, %v2251_v12, %v2413_v0 }
 0x36d   : > { %v2682_v7 = vsel %vm278_vm0, %v2646_v58, %v2555_v45  ;;  %2936 = vadd.xlane.f32.xlu0 %v2935_v13  ;;  %2933 = vadd.xlane.f32.xlu1 %v2932_v35  ;;  %v2941_v9 = vsel %vm2907_vm12, %v2886_v40, 0.0 }
 0x36e   : > { %v2855_v36 = vmul.f32 %v7930_v62, %v2682_v7  ;;  %v2789_v63 = vmul.f32 %v7919_v6, %v2682_v7  ;;  %v2723_v51 = vmul.f32 %v7923_v30, %v2682_v7 }
 0x36f   : > { %v2557_v2 = vpop.permute.xlu1 %2556 }
 0x370   : > { %v2415_v48 = vpop.permute.xlu0 %2414  ;;  %v2683_v42 = vsel %vm278_vm0, %v2647_v29, %v2557_v2  ;;  %v2887_v60 = vadd.f32 %v2855_v36, %v2819_v52  ;;  %v2821_v53 = vadd.f32 %v2789_v63, %v2721_v1 }
 0x371   : > { %2942 = vadd.xlane.f32.xlu0 %v2941_v9  ;;  %v2856_v18 = vmul.f32 %v7930_v62, %v2683_v42  ;;  %2939 = vadd.xlane.f32.xlu1 %v2938_v16  ;;  %v2648_v50 = vsel %vm334_vm6, %v2252_v19, %v2415_v48  ;;  %v2790_v54 = vmul.f32 %v7919_v6, %v2683_v42  ;;  %v2256_v16 = vld [vmem:[#allocation3 + $0x108] sm:$0xff] }
 0x372   : > { %v2944_v3 = vsel %vm2907_vm12, %v2887_v60, 0.0  ;;  %v2724_v26 = vmul.f32 %v7923_v30, %v2683_v42 }
 0x373   : > { %v2417_v24 = vpop.permute.xlu1 %2416  ;;  %v2888_v44 = vadd.f32 %v2856_v18, %v2820_v41  ;;  %v2822_v23 = vadd.f32 %v2790_v54, %v2722_v8 }
 0x374   : > { %v2559_v39 = vpop.permute.xlu0 %2558  ;;  %v2649_v28 = vsel %vm334_vm6, %v2253_v22, %v2417_v24 }
 0x375   : > { %v2684_v21 = vsel %vm278_vm0, %v2648_v50, %v2559_v39  ;;  %2945 = vadd.xlane.f32.xlu1 %v2944_v3  ;;  %v2947_v57 = vsel %vm2907_vm12, %v2888_v44, 0.0  ;;  %v2257_v44 = vld [vmem:[#allocation3 + $0x110] sm:$0xff] }
 0x376   : > { %v2857_v59 = vmul.f32 %v7930_v62, %v2684_v21  ;;  %2948 = vadd.xlane.f32.xlu0 %v2947_v57  ;;  %v2791_v46 = vmul.f32 %v7919_v6, %v2684_v21  ;;  %v2725_v60 = vmul.f32 %v7923_v30, %v2684_v21 }
 0x377   : > { %v2561_v38 = vpop.permute.xlu1 %2560 }
 0x378   : > { %v2419_v15 = vpop.permute.xlu0 %2418  ;;  %v2889_v27 = vadd.f32 %v2857_v59, %v2821_v53  ;;  %v2685_v25 = vsel %vm278_vm0, %v2649_v28, %v2561_v38  ;;  %v2823_v35 = vadd.f32 %v2791_v46, %v2723_v51  ;;  %v2258_v38 = vld [vmem:[#allocation3 + $0x120] sm:$0xff] }
 0x379   : > { %v2858_v47 = vmul.f32 %v7930_v62, %v2685_v25  ;;  %v2650_v33 = vsel %vm334_vm6, %v2254_v32, %v2419_v15  ;;  %v2792_v13 = vmul.f32 %v7919_v6, %v2685_v25  ;;  %v2726_v3 = vmul.f32 %v7923_v30, %v2685_v25 }
 0x37a   : > { %v2950_v20 = vsel %vm2907_vm12, %v2889_v27, 0.0 }
 0x37b   : > { %2951 = vadd.xlane.f32.xlu1 %v2950_v20  ;;  %v2421_v11 = vpop.permute.xlu1 %2420  ;;  %v2890_v0 = vadd.f32 %v2858_v47, %v2822_v23  ;;  %v2824_v9 = vadd.f32 %v2792_v13, %v2724_v26 }
 0x37c   : > { %v2563_v58 = vpop.permute.xlu0 %2562  ;;  %v2651_v7 = vsel %vm334_vm6, %v2255_v61, %v2421_v11  ;;  %v2259_v11 = vld [vmem:[#allocation3 + $0x128] sm:$0xff] }
 0x37d   : > { %v2686_v45 = vsel %vm278_vm0, %v2650_v33, %v2563_v58  ;;  %v2953_v14 = vsel %vm2907_vm12, %v2890_v0, 0.0 }
 0x37e   : > { %v2859_v40 = vmul.f32 %v7930_v62, %v2686_v45  ;;  %2954 = vadd.xlane.f32.xlu0 %v2953_v14  ;;  %v2793_v29 = vmul.f32 %v7919_v6, %v2686_v45  ;;  %v2727_v15 = vmul.f32 %v7923_v30, %v2686_v45 }
 0x37f   : > { %v2565_v36 = vpop.permute.xlu1 %2564 }
 0x380   : > { %v2423_v12 = vpop.permute.xlu0 %2422  ;;  %v2891_v52 = vadd.f32 %v2859_v40, %v2823_v35  ;;  %v2687_v37 = vsel %vm278_vm0, %v2651_v7, %v2565_v36  ;;  %v2825_v39 = vadd.f32 %v2793_v29, %v2725_v60  ;;  %v2260_v36 = vld [vmem:[#allocation3 + $0x138] sm:$0xff] }
 0x381   : > { %v2860_v2 = vmul.f32 %v7930_v62, %v2687_v37  ;;  %v2652_v42 = vsel %vm334_vm6, %v2256_v16, %v2423_v12  ;;  %v2794_v1 = vmul.f32 %v7919_v6, %v2687_v37  ;;  %v2728_v58 = vmul.f32 %v7923_v30, %v2687_v37 }
 0x382   : > { %v2956_v48 = vsel %vm2907_vm12, %v2891_v52, 0.0 }
 0x383   : > { %2957 = vadd.xlane.f32.xlu1 %v2956_v48  ;;  %v2425_v63 = vpop.permute.xlu1 %2424  ;;  %v2892_v41 = vadd.f32 %v2860_v2, %v2824_v9  ;;  %v2826_v28 = vadd.f32 %v2794_v1, %v2726_v3 }
 0x384   : > { %v2567_v18 = vpop.permute.xlu0 %2566  ;;  %v2653_v21 = vsel %vm334_vm6, %v2257_v44, %v2425_v63  ;;  %v2261_v63 = vld [vmem:[#allocation3 + $0x140] sm:$0xff] }
 0x385   : > { %v2688_v19 = vsel %vm278_vm0, %v2652_v42, %v2567_v18  ;;  %v2959_v24 = vsel %vm2907_vm12, %v2892_v41, 0.0 }
 0x386   : > { %v2861_v50 = vmul.f32 %v7930_v62, %v2688_v19  ;;  %2960 = vadd.xlane.f32.xlu0 %v2959_v24  ;;  %v2795_v53 = vmul.f32 %v7919_v6, %v2688_v19  ;;  %v2729_v12 = vmul.f32 %v7923_v30, %v2688_v19 }
 0x387   : > { %v2569_v43 = vpop.permute.xlu1 %2568 }
 0x388   : > { %v2427_v54 = vpop.permute.xlu0 %2426  ;;  %v2893_v59 = vadd.f32 %v2861_v50, %v2825_v39  ;;  %v2689_v57 = vsel %vm278_vm0, %v2653_v21, %v2569_v43  ;;  %v2827_v33 = vadd.f32 %v2795_v53, %v2727_v15  ;;  %v2262_v43 = vld [vmem:[#allocation3 + $0x150] sm:$0xff] }
 0x389   : > { %v2862_v22 = vmul.f32 %v7930_v62, %v2689_v57  ;;  %v2654_v27 = vsel %vm334_vm6, %v2258_v38, %v2427_v54  ;;  %v2796_v23 = vmul.f32 %v7919_v6, %v2689_v57  ;;  %v2730_v18 = vmul.f32 %v7923_v30, %v2689_v57 }
 0x38a   : > { %v2962_v8 = vsel %vm2907_vm12, %v2893_v59, 0.0 }
 0x38b   : > { %2963 = vadd.xlane.f32.xlu1 %v2962_v8  ;;  %v2429_v25 = vpop.permute.xlu1 %2428  ;;  %v2894_v47 = vadd.f32 %v2862_v22, %v2826_v28  ;;  %v2828_v7 = vadd.f32 %v2796_v23, %v2728_v58 }
 0x38c   : > { %v2571_v46 = vpop.permute.xlu0 %2570  ;;  %v2655_v0 = vsel %vm334_vm6, %v2259_v11, %v2429_v25  ;;  %v2263_v25 = vld [vmem:[#allocation3 + $0x158] sm:$0xff] }
 0x38d   : > { %v2690_v20 = vsel %vm278_vm0, %v2654_v27, %v2571_v46  ;;  %v2965_v51 = vsel %vm2907_vm12, %v2894_v47, 0.0 }
 0x38e   : > { %v2863_v32 = vmul.f32 %v7930_v62, %v2690_v20  ;;  %2966 = vadd.xlane.f32.xlu0 %v2965_v51  ;;  %v2797_v35 = vmul.f32 %v7919_v6, %v2690_v20  ;;  %v2731_v54 = vmul.f32 %v7923_v30, %v2690_v20 }
 0x38f   : > { %v2573_v45 = vpop.permute.xlu1 %2572 }
 0x390   : > { %v2431_v13 = vpop.permute.xlu0 %2430  ;;  %v2895_v40 = vadd.f32 %v2863_v32, %v2827_v33  ;;  %v2691_v14 = vsel %vm278_vm0, %v2655_v0, %v2573_v45  ;;  %v2829_v42 = vadd.f32 %v2797_v35, %v2729_v12  ;;  %v2264_v45 = vld [vmem:[#allocation3 + $0x168] sm:$0xff] }
 0x391   : > { %v2864_v61 = vmul.f32 %v7930_v62, %v2691_v14  ;;  %v2656_v52 = vsel %vm334_vm6, %v2260_v36, %v2431_v13  ;;  %v2798_v9 = vmul.f32 %v7919_v6, %v2691_v14  ;;  %v2732_v46 = vmul.f32 %v7923_v30, %v2691_v14 }
 0x392   : > { %v2968_v26 = vsel %vm2907_vm12, %v2895_v40, 0.0 }
 0x393   : > { %2969 = vadd.xlane.f32.xlu1 %v2968_v26  ;;  %v2433_v37 = vpop.permute.xlu1 %2432  ;;  %v2896_v2 = vadd.f32 %v2864_v61, %v2828_v7  ;;  %v2830_v21 = vadd.f32 %v2798_v9, %v2730_v18  ;;  %v2268_v7 = vld [vmem:[#allocation3 + $0x198] sm:$0xff] }
 0x394   : > { %v2575_v29 = vpop.permute.xlu0 %2574  ;;  %v2657_v41 = vsel %vm334_vm6, %v2261_v63, %v2433_v37  ;;  %v2269_v63 = vld [vmem:[#allocation3 + $0x1a0] sm:$0xff] }
 0x395   : > { %v2692_v48 = vsel %vm278_vm0, %v2656_v52, %v2575_v29  ;;  %v2971_v60 = vsel %vm2907_vm12, %v2896_v2, 0.0  ;;  %v2265_v29 = vld [vmem:[#allocation3 + $0x170] sm:$0xff] }
 0x396   : > { %v2865_v16 = vmul.f32 %v7930_v62, %v2692_v48  ;;  %2972 = vadd.xlane.f32.xlu0 %v2971_v60  ;;  %v2799_v39 = vmul.f32 %v7919_v6, %v2692_v48  ;;  %v2733_v13 = vmul.f32 %v7923_v30, %v2692_v48 }
 0x397   : > { %v2577_v19 = vpop.permute.xlu1 %2576 }
 0x398   : > { %v2435_v1 = vpop.permute.xlu0 %2434  ;;  %v2897_v50 = vadd.f32 %v2865_v16, %v2829_v42  ;;  %v2693_v24 = vsel %vm278_vm0, %v2657_v41, %v2577_v19  ;;  %v2831_v27 = vadd.f32 %v2799_v39, %v2731_v54  ;;  %v2664_v42 = vsel %vm334_vm6, %v2268_v7, %v7864_v34  ;;  %v2266_v39 = vld [vmem:[#allocation3 + $0x180] sm:$0xff] }
 0x399   : > { %v2866_v44 = vmul.f32 %v7930_v62, %v2693_v24  ;;  %v2658_v59 = vsel %vm334_vm6, %v2262_v43, %v2435_v1  ;;  %v2800_v28 = vmul.f32 %v7919_v6, %v2693_v24  ;;  %v2734_v2 = vmul.f32 %v7923_v30, %v2693_v24 }
 0x39a   : > { %v2974_v3 = vsel %vm2907_vm12, %v2897_v50, 0.0  ;;  %v2665_v24 = vsel %vm334_vm6, %v2269_v63, %v7870_v10  ;;  %v2700_v54 = vsel %vm278_vm0, %v2664_v42, %v7884_v55 }
 0x39b   : > { %2975 = vadd.xlane.f32.xlu1 %v2974_v3  ;;  %v2437_v57 = vpop.permute.xlu1 %2436  ;;  %v2898_v22 = vadd.f32 %v2866_v44, %v2830_v21  ;;  %v2832_v0 = vadd.f32 %v2800_v28, %v2732_v46 }
 0x39c   : > { %v2579_v53 = vpop.permute.xlu0 %2578  ;;  %v2659_v47 = vsel %vm334_vm6, %v2263_v25, %v2437_v57 }
 0x39d   : > { %v2694_v8 = vsel %vm278_vm0, %v2658_v59, %v2579_v53  ;;  %v2977_v15 = vsel %vm2907_vm12, %v2898_v22, 0.0 }
 0x39e   : > { %v2867_v38 = vmul.f32 %v7930_v62, %v2694_v8  ;;  %2978 = vadd.xlane.f32.xlu0 %v2977_v15  ;;  %v2801_v33 = vmul.f32 %v7919_v6, %v2694_v8  ;;  %v2735_v44 = vmul.f32 %v7923_v30, %v2694_v8  ;;  %v2267_v15 = vld [vmem:[#allocation3 + $0x188] sm:$0xff] }
 0x39f   : > { %v2581_v20 = vpop.permute.xlu1 %2580 }
 0x3a0   : > { %v2439_v23 = vpop.permute.xlu0 %2438  ;;  %v2899_v32 = vadd.f32 %v2867_v38, %v2831_v27  ;;  %v2695_v51 = vsel %vm278_vm0, %v2659_v47, %v2581_v20  ;;  %v2833_v37 = vadd.f32 %v2801_v33, %v2733_v13  ;;  %v2873_v27 = vmul.f32 %v7930_v62, %v2700_v54 }
 0x3a1   : > { %v2868_v11 = vmul.f32 %v7930_v62, %v2695_v51  ;;  %v2660_v40 = vsel %vm334_vm6, %v2264_v45, %v2439_v23  ;;  %v2802_v36 = vmul.f32 %v7919_v6, %v2695_v51  ;;  %v2736_v38 = vmul.f32 %v7923_v30, %v2695_v51 }
 0x3a2   : > { %v2980_v58 = vsel %vm2907_vm12, %v2899_v32, 0.0  ;;  %v2701_v20 = vsel %vm278_vm0, %v2665_v24, %v7890_v17 }
 0x3a3   : > { %2981 = vadd.xlane.f32.xlu1 %v2980_v58  ;;  %v2441_v14 = vpop.permute.xlu1 %2440  ;;  %v2900_v61 = vadd.f32 %v2868_v11, %v2832_v0  ;;  %v2834_v50 = vadd.f32 %v2802_v36, %v2734_v2  ;;  %v2874_v45 = vmul.f32 %v7930_v62, %v2701_v20 }
 0x3a4   : > { %v2583_v35 = vpop.permute.xlu0 %2582  ;;  %v2661_v48 = vsel %vm334_vm6, %v2265_v29, %v2441_v14  ;;  %v8147_v29 = vsub.s32 7, %v7901_v31 }
 0x3a5   : > { %v2696_v26 = vsel %vm278_vm0, %v2660_v40, %v2583_v35  ;;  %v2983_v52 = vsel %vm2907_vm12, %v2900_v61, 0.0 }
 0x3a6   : > { %v2869_v12 = vmul.f32 %v7930_v62, %v2696_v26  ;;  %2984 = vadd.xlane.f32.xlu0 %v2983_v52  ;;  %v2803_v41 = vmul.f32 %v7919_v6, %v2696_v26  ;;  %v2737_v59 = vmul.f32 %v7923_v30, %v2696_v26  ;;  %v8132_v26 = vstv %s3004_s24 }
 0x3a7   : > { %v2585_v9 = vpop.permute.xlu1 %2584  ;;  %v8141_v52 = vsub.s32 5, %v7901_v31 }
 0x3a8   : > { %v2443_v16 = vpop.permute.xlu0 %2442  ;;  %v2901_v60 = vadd.f32 %v2869_v12, %v2833_v37  ;;  %v2697_v18 = vsel %vm278_vm0, %v2661_v48, %v2585_v9  ;;  %v2835_v28 = vadd.f32 %v2803_v41, %v2735_v44  ;;  %v8138_v12 = vsub.s32 4, %v7901_v31 }
 0x3a9   : > { %v2870_v19 = vmul.f32 %v7930_v62, %v2697_v18  ;;  %v2662_v3 = vsel %vm334_vm6, %v2266_v39, %v2443_v16  ;;  %v2804_v57 = vmul.f32 %v7919_v6, %v2697_v18  ;;  %v2738_v23 = vmul.f32 %v7923_v30, %v2697_v18 }
 0x3aa   : > { %v2986_v1 = vsel %vm2907_vm12, %v2901_v60, 0.0  ;;  %v8144_v37 = vsub.s32 6, %v7901_v31 }
 0x3ab   : > { %2987 = vadd.xlane.f32.xlu1 %v2986_v1  ;;  %v2445_v34 = vpop.permute.xlu1 %2444  ;;  %v2902_v43 = vadd.f32 %v2870_v19, %v2834_v50  ;;  %v2836_v33 = vadd.f32 %v2804_v57, %v2736_v38 }
 0x3ac   : > { %v2587_v21 = vpop.permute.xlu0 %2586  ;;  %v2663_v55 = vsel %vm334_vm6, %v2267_v15, %v2445_v34  ;;  %vm5776_vm6 = vcmask 195712  }
 0x3ad   : > { %v2698_v53 = vsel %vm278_vm0, %v2662_v3, %v2587_v21  ;;  %v2989_v8 = vsel %vm2907_vm12, %v2902_v43, 0.0 }
 0x3ae   : > { %v2805_v22 = vmul.f32 %v7919_v6, %v2698_v53  ;;  %v2871_v10 = vmul.f32 %v7930_v62, %v2698_v53  ;;  %2990 = vadd.xlane.f32.xlu0 %v2989_v8 }
 0x3af   : > { %v2589_v46 = vpop.permute.xlu1 %2588 }
 0x3b0   : > { %v2837_v25 = vadd.f32 %v2805_v22, %v2737_v59  ;;  %v2903_v47 = vadd.f32 %v2871_v10, %v2835_v28  ;;  %v2699_v32 = vsel %vm278_vm0, %v2663_v55, %v2589_v46  ;;  %vm5769_vm0 = vcmask 130112  }
 0x3b1   : > { %v2806_v11 = vmul.f32 %v7919_v6, %v2699_v32  ;;  %v2872_v51 = vmul.f32 %v7930_v62, %v2699_v32  ;;  %v6478_v6 = vmov 1966171168   ;;  %v8135_v62 = vsub.s32 3, %v7901_v31 }
 0x3b2   : > { %v2992_v58 = vsel %vm2907_vm12, %v2903_v47, 0.0  ;;  %v2905_v0 = vadd.f32 %v2873_v27, %v2837_v25  ;;  %v4099_v61 = vunpack.c.l.s4 %v6478_v6 }
 0x3b3   : > { %2993 = vadd.xlane.f32.xlu1 %v2992_v58  ;;  %v2838_v13 = vadd.f32 %v2806_v11, %v2738_v23  ;;  %v2904_v40 = vadd.f32 %v2872_v51, %v2836_v33 }
 0x3b4   : > { %v2998_v14 = vsel %vm2907_vm12, %v2905_v0, 0.0  ;;  %v4100_v7 = vunpack.c.0.s8 %v4099_v61 }
 0x3b5   : > { %v2995_v17 = vsel %vm2907_vm12, %v2904_v40, 0.0  ;;  %v2906_v30 = vadd.f32 %v2874_v45, %v2838_v13 }
 0x3b6   : > { %2996 = vadd.xlane.f32.xlu0 %v2995_v17  ;;  %v8151_v48 = vsub.s32 %v4100_v7, %v7901_v31 }
 0x3b7   : > { %2999 = vadd.xlane.f32.xlu1 %v2998_v14  ;;  %v3001_v35 = vsel %vm2907_vm12, %v2906_v30, 0.0  ;;  %vm5966_vm12 = vcmp.lt.s32.totalorder %v2703_v56, 256 }
 0x3ba   : > { %3002 = vadd.xlane.f32.xlu0 %v3001_v35 }
 0x3e6   : > { %v2910_v36 = vpop.xlane.xlu0 %2909 }
 0x3e7   : > { %v3006_v2 = vadd.f32 %v8132_v26, %v2910_v36 }
 0x3e9   : > { %v3073_v9 = vrot.slane %v3006_v2, %v7907_v5  ;;  %v3077_v16 = vrot.slane %v3006_v2, %v7904_v49  ;;  %v3081_v60 = vrot.slane %v3006_v2, %v7915_v4  ;;  %v3085_v42 = vrot.slane %v3006_v2, %v8135_v62 }
 0x3ea   : > { %v2916_v63 = vpop.xlane.xlu0 %2915  ;;  %v3089_v18 = vrot.slane %v3006_v2, %v8138_v12  ;;  %v3093_v41 = vrot.slane %v3006_v2, %v8141_v52  ;;  %v3097_v19 = vrot.slane %v3006_v2, %v8144_v37  ;;  %v3101_v1 = vrot.slane %v3006_v2, %v8147_v29 }
 0x3eb   : > { %v3008_v50 = vadd.f32 %v8132_v26, %v2916_v63  ;;  %v4094_v39 = vcombine.low %v3073_v9, %v3077_v16  ;;  %v4095_v24 = vcombine.low %v3081_v60, %v3085_v42 }
 0x3ec   : > { %v4096_v44 = vcombine.low %v3089_v18, %v3093_v41  ;;  %v4097_v3 = vcombine.low %v3097_v19, %v3101_v1 }
 0x3ed   : > { %v4104_v34 = vrot.slane %v4094_v39, %v8151_v48  ;;  %v4111_v21 = vrot.slane %v4095_v24, %v8151_v48  ;;  %v3137_v43 = vrot.slane %v3008_v50, %v7907_v5  ;;  %v3141_v54 = vrot.slane %v3008_v50, %v7904_v49 }
 0x3ee   : > { %v2919_v59 = vpop.xlane.xlu0 %2918  ;;  %v4118_v57 = vrot.slane %v4096_v44, %v8151_v48  ;;  %v4125_v53 = vrot.slane %v4097_v3, %v8151_v48  ;;  %v3145_v22 = vrot.slane %v3008_v50, %v7915_v4  ;;  %v3149_v10 = vrot.slane %v3008_v50, %v8135_v62  ;;  %v2913_v28 = vpop.xlane.xlu1 %2912 }
 0x3ef   : > { %v3009_v8 = vadd.f32 %v8132_v26, %v2919_v59  ;;  %v4126_v38 = vcombine.low %v4104_v34, %v4111_v21  ;;  %v3153_v15 = vrot.slane %v3008_v50, %v8138_v12  ;;  %v3157_v27 = vrot.slane %v3008_v50, %v8141_v52 }
 0x3f0   : > { %v8174_v55 = vadd.f32 %v8132_v26, %v2913_v28  ;;  %v4127_v25 = vcombine.low %v4118_v57, %v4125_v53  ;;  %v3161_v46 = vrot.slane %v3008_v50, %v8144_v37  ;;  %v3165_v47 = vrot.slane %v3008_v50, %v8147_v29 }
 0x3f1   : > { %v4134_v20 = vrot.slane %v4126_v38, %v8151_v48  ;;  %v4192_v23 = vcombine.low %v3137_v43, %v3141_v54  ;;  %v4193_v32 = vcombine.low %v3145_v22, %v3149_v10  ;;  %v4194_v33 = vcombine.low %v3153_v15, %v3157_v27 }
 0x3f2   : > { %v2925_v11 = vpop.xlane.xlu0 %2924  ;;  %v4141_v51 = vrot.slane %v4127_v25, %v8151_v48  ;;  %v4195_v58 = vcombine.low %v3161_v46, %v3165_v47  ;;  %v3169_v0 = vrot.slane %v3009_v8, %v7907_v5  ;;  %v3173_v45 = vrot.slane %v3009_v8, %v7904_v49  ;;  %v2922_v40 = vpop.xlane.xlu1 %2921 }
 0x3f3   : > { %v8183_v13 = vadd.f32 %v8132_v26, %v2925_v11  ;;  %v4202_v14 = vrot.slane %v4192_v23, %v8151_v48  ;;  %v4209_v17 = vrot.slane %v4193_v32, %v8151_v48  ;;  %v4216_v30 = vrot.slane %v4194_v33, %v8151_v48 }
 0x3f4   : > { %v8189_v35 = vadd.f32 %v8132_v26, %v2922_v40  ;;  %v4142_v6 = vcombine.low %v4134_v20, %v4141_v51  ;;  %v4223_v61 = vrot.slane %v4195_v58, %v8151_v48  ;;  %v3177_v7 = vrot.slane %v3009_v8, %v7915_v4 }
 0x3f5   : > { %v4224_v36 = vcombine.low %v4202_v14, %v4209_v17  ;;  %v3181_v2 = vrot.slane %v3009_v8, %v8135_v62  ;;  %v3185_v9 = vrot.slane %v3009_v8, %v8138_v12  ;;  %v3189_v16 = vrot.slane %v3009_v8, %v8141_v52 }
 0x3f6   : > { %5663 = vperm.xlu1 %6461, %v4142_v6   ;;  %v2931_v60 = vpop.xlane.xlu0 %2930  ;;  %v4225_v42 = vcombine.low %v4216_v30, %v4223_v61  ;;  %v3193_v63 = vrot.slane %v3009_v8, %v8144_v37  ;;  %v3197_v18 = vrot.slane %v3009_v8, %v8147_v29  ;;  %v4241_v41 = vcombine.low %v3169_v0, %v3173_v45  ;;  %v2928_v1 = vpop.xlane.xlu1 %2927 }
 0x3f7   : > { %v8199_v19 = vadd.f32 %v8132_v26, %v2931_v60  ;;  %v4232_v50 = vrot.slane %v4224_v36, %v8151_v48  ;;  %v4242_v39 = vcombine.low %v3177_v7, %v3181_v2  ;;  %v4243_v24 = vcombine.low %v3185_v9, %v3189_v16 }
 0x3f8   : > { %v8203_v44 = vadd.f32 %v8132_v26, %v2928_v1  ;;  %v4239_v3 = vrot.slane %v4225_v42, %v8151_v48  ;;  %v4244_v34 = vcombine.low %v3193_v63, %v3197_v18  ;;  %v4251_v21 = vrot.slane %v4241_v41, %v8151_v48 }
 0x3f9   : > { %v4258_v43 = vrot.slane %v4242_v39, %v8151_v48  ;;  %v4265_v54 = vrot.slane %v4243_v24, %v8151_v48  ;;  %v3105_v59 = vrot.slane %v8174_v55, %v7907_v5  ;;  %v3109_v57 = vrot.slane %v8174_v55, %v7904_v49 }
 0x3fa   : > { %v4240_v53 = vcombine.low %v4232_v50, %v4239_v3  ;;  %v2937_v22 = vpop.xlane.xlu0 %2936  ;;  %v4272_v10 = vrot.slane %v4244_v34, %v8151_v48  ;;  %v3113_v8 = vrot.slane %v8174_v55, %v7915_v4  ;;  %v3117_v28 = vrot.slane %v8174_v55, %v8135_v62  ;;  %v2934_v15 = vpop.xlane.xlu1 %2933 }
 0x3fb   : > { %v8219_v38 = vadd.f32 %v8132_v26, %v2937_v22  ;;  %v4273_v27 = vcombine.low %v4251_v21, %v4258_v43  ;;  %v3121_v25 = vrot.slane %v8174_v55, %v8138_v12  ;;  %v3125_v46 = vrot.slane %v8174_v55, %v8141_v52 }
 0x3fc   : > { %5669 = vperm.xlu1 %6461, %v4240_v53   ;;  %v8226_v47 = vadd.f32 %v8132_v26, %v2934_v15  ;;  %v4274_v20 = vcombine.low %v4265_v54, %v4272_v10  ;;  %v3129_v23 = vrot.slane %v8174_v55, %v8144_v37  ;;  %v3133_v32 = vrot.slane %v8174_v55, %v8147_v29 }
 0x3fd   : > { %v4281_v33 = vrot.slane %v4273_v27, %v8151_v48  ;;  %v4143_v11 = vcombine.low %v3105_v59, %v3109_v57  ;;  %v4144_v51 = vcombine.low %v3113_v8, %v3117_v28  ;;  %v4145_v58 = vcombine.low %v3121_v25, %v3125_v46 }
 0x3fe   : > { %v4288_v0 = vrot.slane %v4274_v20, %v8151_v48  ;;  %v4146_v45 = vcombine.low %v3129_v23, %v3133_v32  ;;  %v2943_v40 = vpop.xlane.xlu0 %2942  ;;  %v3201_v14 = vrot.slane %v8189_v35, %v7907_v5  ;;  %v3205_v17 = vrot.slane %v8189_v35, %v7904_v49  ;;  %v2940_v7 = vpop.xlane.xlu1 %2939 }
 0x3ff   : > { %v4153_v30 = vrot.slane %v4143_v11, %v8151_v48  ;;  %v4160_v6 = vrot.slane %v4144_v51, %v8151_v48  ;;  %v4167_v55 = vrot.slane %v4145_v58, %v8151_v48  ;;  %v8242_v61 = vadd.f32 %v8132_v26, %v2943_v40 }
 0x400   : > { %v4289_v36 = vcombine.low %v4281_v33, %v4288_v0  ;;  %v4174_v2 = vrot.slane %v4146_v45, %v8151_v48  ;;  %v8246_v9 = vadd.f32 %v8132_v26, %v2940_v7  ;;  %v3209_v16 = vrot.slane %v8189_v35, %v7915_v4 }
 0x401   : > { %v4175_v60 = vcombine.low %v4153_v30, %v4160_v6  ;;  %v3213_v42 = vrot.slane %v8189_v35, %v8135_v62  ;;  %v3217_v63 = vrot.slane %v8189_v35, %v8138_v12  ;;  %v3221_v18 = vrot.slane %v8189_v35, %v8141_v52 }
 0x402   : > { %5672 = vperm.xlu1 %6461, %v4289_v36   ;;  %v4176_v41 = vcombine.low %v4167_v55, %v4174_v2  ;;  %v3225_v1 = vrot.slane %v8189_v35, %v8144_v37  ;;  %v3229_v50 = vrot.slane %v8189_v35, %v8147_v29  ;;  %v4290_v39 = vcombine.low %v3201_v14, %v3205_v17  ;;  %v2946_v21 = vpop.xlane.xlu1 %2945 }
 0x403   : > { %v4183_v24 = vrot.slane %v4175_v60, %v8151_v48  ;;  %v4291_v3 = vcombine.low %v3209_v16, %v3213_v42  ;;  %v4292_v34 = vcombine.low %v3217_v63, %v3221_v18  ;;  %v3233_v43 = vrot.slane %v8183_v13, %v7907_v5  ;;  %v2949_v22 = vpop.xlane.xlu0 %2948 }
 0x404   : > { %v4190_v54 = vrot.slane %v4176_v41, %v8151_v48  ;;  %v4293_v59 = vcombine.low %v3225_v1, %v3229_v50  ;;  %v4300_v57 = vrot.slane %v4290_v39, %v8151_v48  ;;  %v8266_v53 = vadd.f32 %v8132_v26, %v2946_v21 }
 0x405   : > { %v4307_v35 = vrot.slane %v4291_v3, %v8151_v48  ;;  %v4314_v10 = vrot.slane %v4292_v34, %v8151_v48  ;;  %v8271_v8 = vadd.f32 %v8132_v26, %v2949_v22  ;;  %v3237_v28 = vrot.slane %v8183_v13, %v7904_v49 }
 0x406   : > { %v4191_v15 = vcombine.low %v4183_v24, %v4190_v54  ;;  %v4321_v27 = vrot.slane %v4293_v59, %v8151_v48  ;;  %v3241_v25 = vrot.slane %v8183_v13, %v7915_v4  ;;  %v3245_v46 = vrot.slane %v8183_v13, %v8135_v62 }
 0x407   : > { %v4322_v20 = vcombine.low %v4300_v57, %v4307_v35  ;;  %v3249_v23 = vrot.slane %v8183_v13, %v8138_v12  ;;  %v3253_v32 = vrot.slane %v8183_v13, %v8141_v52  ;;  %v3257_v33 = vrot.slane %v8183_v13, %v8144_v37 }
 0x408   : > { %5666 = vperm.xlu0 %6462, %v4191_v15   ;;  %v4323_v11 = vcombine.low %v4314_v10, %v4321_v27  ;;  %v3261_v51 = vrot.slane %v8183_v13, %v8147_v29  ;;  %v4339_v58 = vcombine.low %v3233_v43, %v3237_v28  ;;  %v4340_v0 = vcombine.low %v3241_v25, %v3245_v46  ;;  %v2952_v45 = vpop.xlane.xlu1 %2951 }
 0x409   : > { %v4330_v40 = vrot.slane %v4322_v20, %v8151_v48  ;;  %v4341_v14 = vcombine.low %v3249_v23, %v3253_v32  ;;  %v8290_v17 = vadd.f32 %v8132_v26, %v2952_v45  ;;  %v3265_v30 = vrot.slane %v8203_v44, %v7907_v5 }
 0x40a   : > { %v4337_v6 = vrot.slane %v4323_v11, %v8151_v48  ;;  %v4342_v55 = vcombine.low %v3257_v33, %v3261_v51  ;;  %v4349_v7 = vrot.slane %v4339_v58, %v8151_v48  ;;  %v4356_v36 = vrot.slane %v4340_v0, %v8151_v48 }
 0x40b   : > { %v4363_v13 = vrot.slane %v4341_v14, %v8151_v48  ;;  %v3269_v2 = vrot.slane %v8203_v44, %v7904_v49  ;;  %v3273_v16 = vrot.slane %v8203_v44, %v7915_v4  ;;  %v3277_v60 = vrot.slane %v8203_v44, %v8135_v62  ;;  %v2955_v1 = vpop.xlane.xlu0 %2954 }
 0x40c   : > { %v4338_v42 = vcombine.low %v4330_v40, %v4337_v6  ;;  %v4370_v63 = vrot.slane %v4342_v55, %v8151_v48  ;;  %v4371_v18 = vcombine.low %v4349_v7, %v4356_v36  ;;  %v3281_v41 = vrot.slane %v8203_v44, %v8138_v12 }
 0x40d   : > { %v3285_v50 = vrot.slane %v8203_v44, %v8141_v52  ;;  %v3289_v39 = vrot.slane %v8203_v44, %v8144_v37  ;;  %v3293_v24 = vrot.slane %v8203_v44, %v8147_v29  ;;  %v4388_v3 = vcombine.low %v3265_v30, %v3269_v2 }
 0x40e   : > { %5675 = vperm.xlu1 %6461, %v4338_v42   ;;  %v4372_v34 = vcombine.low %v4363_v13, %v4370_v63  ;;  %v4379_v21 = vrot.slane %v4371_v18, %v8151_v48  ;;  %v4389_v43 = vcombine.low %v3273_v16, %v3277_v60  ;;  %v8315_v54 = vadd.f32 %v8132_v26, %v2955_v1 }
 0x40f   : > { %v4390_v59 = vcombine.low %v3281_v41, %v3285_v50  ;;  %v4391_v57 = vcombine.low %v3289_v39, %v3293_v24  ;;  %v4398_v22 = vrot.slane %v4388_v3, %v8151_v48  ;;  %v3393_v35 = vrot.slane %v8246_v9, %v7907_v5 }
 0x410   : > { %v4386_v10 = vrot.slane %v4372_v34, %v8151_v48  ;;  %v4405_v44 = vrot.slane %v4389_v43, %v8151_v48  ;;  %v3397_v28 = vrot.slane %v8246_v9, %v7904_v49  ;;  %v3401_v15 = vrot.slane %v8246_v9, %v7915_v4  ;;  %v2958_v42 = vpop.xlane.xlu1 %2957 }
 0x411   : > { %v4412_v27 = vrot.slane %v4390_v59, %v8151_v48  ;;  %v4419_v25 = vrot.slane %v4391_v57, %v8151_v48  ;;  %v3405_v46 = vrot.slane %v8246_v9, %v8135_v62  ;;  %v3409_v20 = vrot.slane %v8246_v9, %v8138_v12 }
 0x412   : > { %v4387_v23 = vcombine.low %v4379_v21, %v4386_v10  ;;  %v4420_v32 = vcombine.low %v4398_v22, %v4405_v44  ;;  %v3413_v33 = vrot.slane %v8246_v9, %v8141_v52  ;;  %v3417_v11 = vrot.slane %v8246_v9, %v8144_v37 }
 0x413   : > { %v4421_v51 = vcombine.low %v4412_v27, %v4419_v25  ;;  %v3421_v58 = vrot.slane %v8246_v9, %v8147_v29  ;;  %v4584_v0 = vcombine.low %v3393_v35, %v3397_v28  ;;  %v4585_v45 = vcombine.low %v3401_v15, %v3405_v46 }
 0x414   : > { %5678 = vperm.xlu1 %6461, %v4387_v23   ;;  %v4428_v40 = vrot.slane %v4420_v32, %v8151_v48  ;;  %v4586_v14 = vcombine.low %v3409_v20, %v3413_v33  ;;  %v3297_v30 = vrot.slane %v8199_v19, %v7907_v5  ;;  %v3301_v6 = vrot.slane %v8199_v19, %v7904_v49 }
 0x415   : > { %v4435_v55 = vrot.slane %v4421_v51, %v8151_v48  ;;  %v4587_v7 = vcombine.low %v3417_v11, %v3421_v58  ;;  %v4594_v36 = vrot.slane %v4584_v0, %v8151_v48  ;;  %v4601_v13 = vrot.slane %v4585_v45, %v8151_v48 }
 0x416   : > { %v4608_v9 = vrot.slane %v4586_v14, %v8151_v48  ;;  %v3305_v2 = vrot.slane %v8199_v19, %v7915_v4  ;;  %v3309_v16 = vrot.slane %v8199_v19, %v8135_v62  ;;  %v3313_v60 = vrot.slane %v8199_v19, %v8138_v12 }
 0x417   : > { %v4436_v63 = vcombine.low %v4428_v40, %v4435_v55  ;;  %v4615_v18 = vrot.slane %v4587_v7, %v8151_v48  ;;  %v4616_v41 = vcombine.low %v4594_v36, %v4601_v13  ;;  %v3317_v1 = vrot.slane %v8199_v19, %v8141_v52 }
 0x418   : > { %v3321_v50 = vrot.slane %v8199_v19, %v8144_v37  ;;  %v3325_v39 = vrot.slane %v8199_v19, %v8147_v29  ;;  %v4437_v24 = vcombine.low %v3297_v30, %v3301_v6  ;;  %v4438_v3 = vcombine.low %v3305_v2, %v3309_v16 }
 0x419   : > { %5681 = vperm.xlu1 %6461, %v4436_v63   ;;  %v4617_v34 = vcombine.low %v4608_v9, %v4615_v18  ;;  %v4624_v21 = vrot.slane %v4616_v41, %v8151_v48  ;;  %v4439_v43 = vcombine.low %v3313_v60, %v3317_v1  ;;  %v8362_v59 = vadd.f32 %v8132_v26, %v2958_v42  ;;  %v2961_v60 = vpop.xlane.xlu0 %2960 }
 0x41a   : > { %v4440_v57 = vcombine.low %v3321_v50, %v3325_v39  ;;  %v4447_v22 = vrot.slane %v4437_v24, %v8151_v48  ;;  %v4454_v35 = vrot.slane %v4438_v3, %v8151_v48  ;;  %v3329_v10 = vrot.slane %v8226_v47, %v7907_v5 }
 0x41b   : > { %v4631_v19 = vrot.slane %v4617_v34, %v8151_v48  ;;  %v4461_v44 = vrot.slane %v4439_v43, %v8151_v48  ;;  %v3333_v28 = vrot.slane %v8226_v47, %v7904_v49  ;;  %v3337_v15 = vrot.slane %v8226_v47, %v7915_v4 }
 0x41c   : > { %v4468_v27 = vrot.slane %v4440_v57, %v8151_v48  ;;  %v4469_v25 = vcombine.low %v4447_v22, %v4454_v35  ;;  %v3341_v46 = vrot.slane %v8226_v47, %v8135_v62  ;;  %v3345_v20 = vrot.slane %v8226_v47, %v8138_v12 }
 0x41d   : > { %v4632_v23 = vcombine.low %v4624_v21, %v4631_v19  ;;  %v3349_v32 = vrot.slane %v8226_v47, %v8141_v52  ;;  %v3353_v33 = vrot.slane %v8226_v47, %v8144_v37  ;;  %v3357_v11 = vrot.slane %v8226_v47, %v8147_v29 }
 0x41e   : > { %v4470_v51 = vcombine.low %v4461_v44, %v4468_v27  ;;  %v4477_v58 = vrot.slane %v4469_v25, %v8151_v48  ;;  %v4486_v0 = vcombine.low %v3329_v10, %v3333_v28  ;;  %v4487_v45 = vcombine.low %v3337_v15, %v3341_v46 }
 0x41f   : > { %5693 = vperm.xlu0 %6462, %v4632_v23   ;;  %v4488_v40 = vcombine.low %v3345_v20, %v3349_v32  ;;  %v4489_v14 = vcombine.low %v3353_v33, %v3357_v11  ;;  %v3425_v30 = vrot.slane %v8242_v61, %v7907_v5  ;;  %v3429_v6 = vrot.slane %v8242_v61, %v7904_v49 }
 0x420   : > { %v4484_v55 = vrot.slane %v4470_v51, %v8151_v48  ;;  %v4496_v7 = vrot.slane %v4486_v0, %v8151_v48  ;;  %v4503_v47 = vrot.slane %v4487_v45, %v8151_v48  ;;  %v3433_v36 = vrot.slane %v8242_v61, %v7915_v4 }
 0x421   : > { %v4510_v13 = vrot.slane %v4488_v40, %v8151_v48  ;;  %v4517_v9 = vrot.slane %v4489_v14, %v8151_v48  ;;  %v3437_v2 = vrot.slane %v8242_v61, %v8135_v62  ;;  %v3441_v16 = vrot.slane %v8242_v61, %v8138_v12 }
 0x422   : > { %v4485_v42 = vcombine.low %v4477_v58, %v4484_v55  ;;  %v4518_v63 = vcombine.low %v4496_v7, %v4503_v47  ;;  %v3445_v18 = vrot.slane %v8242_v61, %v8141_v52  ;;  %v3449_v41 = vrot.slane %v8242_v61, %v8144_v37 }
 0x423   : > { %v4519_v1 = vcombine.low %v4510_v13, %v4517_v9  ;;  %v3453_v50 = vrot.slane %v8242_v61, %v8147_v29  ;;  %v4633_v39 = vcombine.low %v3425_v30, %v3429_v6  ;;  %v4634_v24 = vcombine.low %v3433_v36, %v3437_v2  ;;  %v2964_v2 = vpop.xlane.xlu1 %2963 }
 0x424   : > { %5684 = vperm.xlu1 %6461, %v4485_v42   ;;  %v4526_v3 = vrot.slane %v4518_v63, %v8151_v48  ;;  %v4635_v34 = vcombine.low %v3441_v16, %v3445_v18  ;;  %v8409_v21 = vadd.f32 %v8132_v26, %v2961_v60  ;;  %v3361_v43 = vrot.slane %v8219_v38, %v7907_v5 }
 0x425   : > { %v4533_v57 = vrot.slane %v4519_v1, %v8151_v48  ;;  %v4636_v22 = vcombine.low %v3449_v41, %v3453_v50  ;;  %v4643_v35 = vrot.slane %v4633_v39, %v8151_v48  ;;  %v4650_v10 = vrot.slane %v4634_v24, %v8151_v48 }
 0x426   : > { %v4657_v61 = vrot.slane %v4635_v34, %v8151_v48  ;;  %v3365_v19 = vrot.slane %v8219_v38, %v7904_v49  ;;  %v3369_v44 = vrot.slane %v8219_v38, %v7915_v4  ;;  %v3373_v28 = vrot.slane %v8219_v38, %v8135_v62 }
 0x427   : > { %v4534_v15 = vcombine.low %v4526_v3, %v4533_v57  ;;  %v4664_v27 = vrot.slane %v4636_v22, %v8151_v48  ;;  %v4665_v25 = vcombine.low %v4643_v35, %v4650_v10  ;;  %v3377_v46 = vrot.slane %v8219_v38, %v8138_v12 }
 0x428   : > { %v3381_v20 = vrot.slane %v8219_v38, %v8141_v52  ;;  %v3385_v23 = vrot.slane %v8219_v38, %v8144_v37  ;;  %v3389_v32 = vrot.slane %v8219_v38, %v8147_v29  ;;  %v4535_v33 = vcombine.low %v3361_v43, %v3365_v19 }
 0x429   : > { %5687 = vperm.xlu1 %6461, %v4534_v15   ;;  %v4666_v11 = vcombine.low %v4657_v61, %v4664_v27  ;;  %v4673_v51 = vrot.slane %v4665_v25, %v8151_v48  ;;  %v4536_v58 = vcombine.low %v3369_v44, %v3373_v28  ;;  %v3457_v0 = vrot.slane %v8266_v53, %v7907_v5  ;;  %v2967_v44 = vpop.xlane.xlu0 %2966 }
 0x42a   : > { %v4537_v45 = vcombine.low %v3377_v46, %v3381_v20  ;;  %v4538_v40 = vcombine.low %v3385_v23, %v3389_v32  ;;  %v4545_v14 = vrot.slane %v4535_v33, %v8151_v48  ;;  %v3461_v30 = vrot.slane %v8266_v53, %v7904_v49 }
 0x42b   : > { %v4680_v6 = vrot.slane %v4666_v11, %v8151_v48  ;;  %v4552_v38 = vrot.slane %v4536_v58, %v8151_v48  ;;  %v3465_v55 = vrot.slane %v8266_v53, %v7915_v4  ;;  %v3469_v7 = vrot.slane %v8266_v53, %v8135_v62 }
 0x42c   : > { %v4559_v47 = vrot.slane %v4537_v45, %v8151_v48  ;;  %v4566_v36 = vrot.slane %v4538_v40, %v8151_v48  ;;  %v3473_v13 = vrot.slane %v8266_v53, %v8138_v12  ;;  %v3477_v9 = vrot.slane %v8266_v53, %v8141_v52 }
 0x42d   : > { %v4681_v16 = vcombine.low %v4673_v51, %v4680_v6  ;;  %v4567_v60 = vcombine.low %v4545_v14, %v4552_v38  ;;  %v3481_v42 = vrot.slane %v8266_v53, %v8144_v37  ;;  %v3485_v63 = vrot.slane %v8266_v53, %v8147_v29 }
 0x42e   : > { %v4568_v18 = vcombine.low %v4559_v47, %v4566_v36  ;;  %v4682_v41 = vcombine.low %v3457_v0, %v3461_v30  ;;  %v4683_v1 = vcombine.low %v3465_v55, %v3469_v7  ;;  %v4684_v50 = vcombine.low %v3473_v13, %v3477_v9  ;;  %v2970_v55 = vpop.xlane.xlu1 %2969 }
 0x42f   : > { %5696 = vperm.xlu0 %6462, %v4681_v16   ;;  %v4575_v39 = vrot.slane %v4567_v60, %v8151_v48  ;;  %v4685_v24 = vcombine.low %v3481_v42, %v3485_v63  ;;  %v8456_v3 = vadd.f32 %v8132_v26, %v2964_v2  ;;  %v3489_v34 = vrot.slane %v8271_v8, %v7907_v5 }
 0x430   : > { %v4582_v43 = vrot.slane %v4568_v18, %v8151_v48  ;;  %v4692_v57 = vrot.slane %v4682_v41, %v8151_v48  ;;  %v4699_v53 = vrot.slane %v4683_v1, %v8151_v48  ;;  %v4706_v22 = vrot.slane %v4684_v50, %v8151_v48 }
 0x431   : > { %v4713_v35 = vrot.slane %v4685_v24, %v8151_v48  ;;  %v3493_v10 = vrot.slane %v8271_v8, %v7904_v49  ;;  %v3497_v61 = vrot.slane %v8271_v8, %v7915_v4  ;;  %v3501_v19 = vrot.slane %v8271_v8, %v8135_v62 }
 0x432   : > { %v4583_v28 = vcombine.low %v4575_v39, %v4582_v43  ;;  %v4714_v15 = vcombine.low %v4692_v57, %v4699_v53  ;;  %v3505_v27 = vrot.slane %v8271_v8, %v8138_v12  ;;  %v3509_v25 = vrot.slane %v8271_v8, %v8141_v52 }
 0x433   : > { %v4715_v46 = vcombine.low %v4706_v22, %v4713_v35  ;;  %v3513_v20 = vrot.slane %v8271_v8, %v8144_v37  ;;  %v3517_v23 = vrot.slane %v8271_v8, %v8147_v29  ;;  %v4731_v32 = vcombine.low %v3489_v34, %v3493_v10 }
 0x434   : > { %5690 = vperm.xlu1 %6461, %v4583_v28   ;;  %v4722_v33 = vrot.slane %v4714_v15, %v8151_v48  ;;  %v4732_v11 = vcombine.low %v3497_v61, %v3501_v19  ;;  %v4733_v51 = vcombine.low %v3505_v27, %v3509_v25  ;;  %v8481_v58 = vadd.f32 %v8132_v26, %v2967_v44  ;;  %v2973_v61 = vpop.xlane.xlu0 %2972 }
 0x435   : > { %v4729_v0 = vrot.slane %v4715_v46, %v8151_v48  ;;  %v4734_v45 = vcombine.low %v3513_v20, %v3517_v23  ;;  %v4741_v40 = vrot.slane %v4731_v32, %v8151_v48  ;;  %v3585_v14 = vrot.slane %v8362_v59, %v7907_v5 }
 0x436   : > { %v4748_v30 = vrot.slane %v4732_v11, %v8151_v48  ;;  %v4755_v8 = vrot.slane %v4733_v51, %v8151_v48  ;;  %v3589_v6 = vrot.slane %v8362_v59, %v7904_v49  ;;  %v3593_v38 = vrot.slane %v8362_v59, %v7915_v4 }
 0x437   : > { %v4730_v7 = vcombine.low %v4722_v33, %v4729_v0  ;;  %v4762_v47 = vrot.slane %v4734_v45, %v8151_v48  ;;  %v3597_v36 = vrot.slane %v8362_v59, %v8135_v62  ;;  %v3601_v13 = vrot.slane %v8362_v59, %v8138_v12 }
 0x438   : > { %v4763_v9 = vcombine.low %v4741_v40, %v4748_v30  ;;  %v3605_v2 = vrot.slane %v8362_v59, %v8141_v52  ;;  %v3609_v16 = vrot.slane %v8362_v59, %v8144_v37  ;;  %v3613_v60 = vrot.slane %v8362_v59, %v8147_v29 }
 0x439   : > { %5699 = vperm.xlu0 %6462, %v4730_v7   ;;  %v4764_v42 = vcombine.low %v4755_v8, %v4762_v47  ;;  %v4878_v63 = vcombine.low %v3585_v14, %v3589_v6  ;;  %v4879_v18 = vcombine.low %v3593_v38, %v3597_v36  ;;  %v8505_v41 = vadd.f32 %v8132_v26, %v2970_v55  ;;  %v2976_v6 = vpop.xlane.xlu1 %2975 }
 0x43a   : > { %v4771_v1 = vrot.slane %v4763_v9, %v8151_v48  ;;  %v4880_v50 = vcombine.low %v3601_v13, %v3605_v2  ;;  %v4881_v39 = vcombine.low %v3609_v16, %v3613_v60  ;;  %v3617_v24 = vrot.slane %v8409_v21, %v7907_v5 }
 0x43b   : > { %v4778_v34 = vrot.slane %v4764_v42, %v8151_v48  ;;  %v4888_v43 = vrot.slane %v4878_v63, %v8151_v48  ;;  %v4895_v59 = vrot.slane %v4879_v18, %v8151_v48  ;;  %v3621_v57 = vrot.slane %v8409_v21, %v7904_v49 }
 0x43c   : > { %v4902_v53 = vrot.slane %v4880_v50, %v8151_v48  ;;  %v4909_v22 = vrot.slane %v4881_v39, %v8151_v48  ;;  %v3625_v35 = vrot.slane %v8409_v21, %v7915_v4  ;;  %v3629_v10 = vrot.slane %v8409_v21, %v8135_v62 }
 0x43d   : > { %v4779_v19 = vcombine.low %v4771_v1, %v4778_v34  ;;  %v4910_v44 = vcombine.low %v4888_v43, %v4895_v59  ;;  %v3633_v28 = vrot.slane %v8409_v21, %v8138_v12  ;;  %v3637_v15 = vrot.slane %v8409_v21, %v8141_v52 }
 0x43e   : > { %v4911_v27 = vcombine.low %v4902_v53, %v4909_v22  ;;  %v3641_v25 = vrot.slane %v8409_v21, %v8144_v37  ;;  %v3645_v46 = vrot.slane %v8409_v21, %v8147_v29  ;;  %v4927_v20 = vcombine.low %v3617_v24, %v3621_v57 }
 0x43f   : > { %5702 = vperm.xlu0 %6462, %v4779_v19   ;;  %v4918_v23 = vrot.slane %v4910_v44, %v8151_v48  ;;  %v4928_v32 = vcombine.low %v3625_v35, %v3629_v10  ;;  %v4929_v33 = vcombine.low %v3633_v28, %v3637_v15  ;;  %v8531_v11 = vadd.f32 %v8132_v26, %v2973_v61  ;;  %v2979_v35 = vpop.xlane.xlu0 %2978 }
 0x440   : > { %v4925_v51 = vrot.slane %v4911_v27, %v8151_v48  ;;  %v4930_v0 = vcombine.low %v3641_v25, %v3645_v46  ;;  %v4937_v45 = vrot.slane %v4927_v20, %v8151_v48  ;;  %v3649_v40 = vrot.slane %v8456_v3, %v7907_v5 }
 0x441   : > { %v4944_v14 = vrot.slane %v4928_v32, %v8151_v48  ;;  %v4951_v21 = vrot.slane %v4929_v33, %v8151_v48  ;;  %v3653_v30 = vrot.slane %v8456_v3, %v7904_v49  ;;  %v3657_v8 = vrot.slane %v8456_v3, %v7915_v4 }
 0x442   : > { %v4926_v38 = vcombine.low %v4918_v23, %v4925_v51  ;;  %v4958_v55 = vrot.slane %v4930_v0, %v8151_v48  ;;  %v3661_v7 = vrot.slane %v8456_v3, %v8135_v62  ;;  %v3665_v47 = vrot.slane %v8456_v3, %v8138_v12 }
 0x443   : > { %v4959_v36 = vcombine.low %v4937_v45, %v4944_v14  ;;  %v3669_v13 = vrot.slane %v8456_v3, %v8141_v52  ;;  %v3673_v9 = vrot.slane %v8456_v3, %v8144_v37  ;;  %v3677_v2 = vrot.slane %v8456_v3, %v8147_v29 }
 0x444   : > { %5711 = vperm.xlu0 %6462, %v4926_v38   ;;  %v4960_v16 = vcombine.low %v4951_v21, %v4958_v55  ;;  %v4976_v60 = vcombine.low %v3649_v40, %v3653_v30  ;;  %v4977_v42 = vcombine.low %v3657_v8, %v3661_v7  ;;  %v8555_v63 = vadd.f32 %v8132_v26, %v2976_v6  ;;  %v2982_v30 = vpop.xlane.xlu1 %2981 }
 0x445   : > { %v4967_v18 = vrot.slane %v4959_v36, %v8151_v48  ;;  %v4978_v1 = vcombine.low %v3665_v47, %v3669_v13  ;;  %v4979_v50 = vcombine.low %v3673_v9, %v3677_v2  ;;  %v3681_v39 = vrot.slane %v8481_v58, %v7907_v5 }
 0x446   : > { %v4974_v24 = vrot.slane %v4960_v16, %v8151_v48  ;;  %v4986_v34 = vrot.slane %v4976_v60, %v8151_v48  ;;  %v4993_v3 = vrot.slane %v4977_v42, %v8151_v48  ;;  %v3685_v43 = vrot.slane %v8481_v58, %v7904_v49 }
 0x447   : > { %v5000_v59 = vrot.slane %v4978_v1, %v8151_v48  ;;  %v5007_v57 = vrot.slane %v4979_v50, %v8151_v48  ;;  %v3689_v53 = vrot.slane %v8481_v58, %v7915_v4  ;;  %v3693_v22 = vrot.slane %v8481_v58, %v8135_v62 }
 0x448   : > { %v4975_v10 = vcombine.low %v4967_v18, %v4974_v24  ;;  %v5008_v61 = vcombine.low %v4986_v34, %v4993_v3  ;;  %v3697_v19 = vrot.slane %v8481_v58, %v8138_v12  ;;  %v3701_v44 = vrot.slane %v8481_v58, %v8141_v52 }
 0x449   : > { %v5009_v28 = vcombine.low %v5000_v59, %v5007_v57  ;;  %v3705_v15 = vrot.slane %v8481_v58, %v8144_v37  ;;  %v3709_v27 = vrot.slane %v8481_v58, %v8147_v29  ;;  %v5025_v25 = vcombine.low %v3681_v39, %v3685_v43 }
 0x44a   : > { %5714 = vperm.xlu1 %6461, %v4975_v10   ;;  %v5016_v46 = vrot.slane %v5008_v61, %v8151_v48  ;;  %v5026_v20 = vcombine.low %v3689_v53, %v3693_v22  ;;  %v5027_v23 = vcombine.low %v3697_v19, %v3701_v44  ;;  %v8581_v32 = vadd.f32 %v8132_v26, %v2979_v35  ;;  %v2985_v53 = vpop.xlane.xlu0 %2984 }
 0x44b   : > { %v5023_v33 = vrot.slane %v5009_v28, %v8151_v48  ;;  %v5028_v51 = vcombine.low %v3705_v15, %v3709_v27  ;;  %v5035_v0 = vrot.slane %v5025_v25, %v8151_v48  ;;  %v3713_v45 = vrot.slane %v8505_v41, %v7907_v5 }
 0x44c   : > { %v5042_v40 = vrot.slane %v5026_v20, %v8151_v48  ;;  %v5049_v58 = vrot.slane %v5027_v23, %v8151_v48  ;;  %v3717_v14 = vrot.slane %v8505_v41, %v7904_v49  ;;  %v3721_v21 = vrot.slane %v8505_v41, %v7915_v4 }
 0x44d   : > { %v5024_v8 = vcombine.low %v5016_v46, %v5023_v33  ;;  %v5056_v6 = vrot.slane %v5028_v51, %v8151_v48  ;;  %v3725_v38 = vrot.slane %v8505_v41, %v8135_v62  ;;  %v3729_v55 = vrot.slane %v8505_v41, %v8138_v12 }
 0x44e   : > { %v5057_v7 = vcombine.low %v5035_v0, %v5042_v40  ;;  %v3733_v47 = vrot.slane %v8505_v41, %v8141_v52  ;;  %v3737_v36 = vrot.slane %v8505_v41, %v8144_v37  ;;  %v3741_v13 = vrot.slane %v8505_v41, %v8147_v29 }
 0x44f   : > { %5717 = vperm.xlu0 %6462, %v5024_v8   ;;  %v5058_v9 = vcombine.low %v5049_v58, %v5056_v6  ;;  %v5074_v2 = vcombine.low %v3713_v45, %v3717_v14  ;;  %v5075_v16 = vcombine.low %v3721_v21, %v3725_v38  ;;  %v8605_v60 = vadd.f32 %v8132_v26, %v2982_v30  ;;  %v2988_v14 = vpop.xlane.xlu1 %2987 }
 0x450   : > { %v5065_v42 = vrot.slane %v5057_v7, %v8151_v48  ;;  %v5076_v18 = vcombine.low %v3729_v55, %v3733_v47  ;;  %v5077_v1 = vcombine.low %v3737_v36, %v3741_v13  ;;  %v3745_v50 = vrot.slane %v8531_v11, %v7907_v5 }
 0x451   : > { %v5072_v39 = vrot.slane %v5058_v9, %v8151_v48  ;;  %v5084_v24 = vrot.slane %v5074_v2, %v8151_v48  ;;  %v5091_v41 = vrot.slane %v5075_v16, %v8151_v48  ;;  %v3749_v34 = vrot.slane %v8531_v11, %v7904_v49 }
 0x452   : > { %v5098_v3 = vrot.slane %v5076_v18, %v8151_v48  ;;  %v5105_v43 = vrot.slane %v5077_v1, %v8151_v48  ;;  %v3753_v59 = vrot.slane %v8531_v11, %v7915_v4  ;;  %v3757_v57 = vrot.slane %v8531_v11, %v8135_v62 }
 0x453   : > { %v5073_v22 = vcombine.low %v5065_v42, %v5072_v39  ;;  %v5106_v35 = vcombine.low %v5084_v24, %v5091_v41  ;;  %v3761_v10 = vrot.slane %v8531_v11, %v8138_v12  ;;  %v3765_v61 = vrot.slane %v8531_v11, %v8141_v52 }
 0x454   : > { %v5107_v19 = vcombine.low %v5098_v3, %v5105_v43  ;;  %v3769_v44 = vrot.slane %v8531_v11, %v8144_v37  ;;  %v3773_v28 = vrot.slane %v8531_v11, %v8147_v29  ;;  %v5123_v15 = vcombine.low %v3745_v50, %v3749_v34 }
 0x455   : > { %5720 = vperm.xlu1 %6461, %v5073_v22   ;;  %v5114_v27 = vrot.slane %v5106_v35, %v8151_v48  ;;  %v5124_v25 = vcombine.low %v3753_v59, %v3757_v57  ;;  %v5125_v46 = vcombine.low %v3761_v10, %v3765_v61  ;;  %v8631_v20 = vadd.f32 %v8132_v26, %v2985_v53  ;;  %v2991_v59 = vpop.xlane.xlu0 %2990 }
 0x456   : > { %v5121_v23 = vrot.slane %v5107_v19, %v8151_v48  ;;  %v5126_v33 = vcombine.low %v3769_v44, %v3773_v28  ;;  %v5133_v51 = vrot.slane %v5123_v15, %v8151_v48  ;;  %v3777_v0 = vrot.slane %v8555_v63, %v7907_v5 }
 0x457   : > { %v5140_v45 = vrot.slane %v5124_v25, %v8151_v48  ;;  %v5147_v11 = vrot.slane %v5125_v46, %v8151_v48  ;;  %v3781_v40 = vrot.slane %v8555_v63, %v7904_v49  ;;  %v3785_v58 = vrot.slane %v8555_v63, %v7915_v4 }
 0x458   : > { %v5122_v21 = vcombine.low %v5114_v27, %v5121_v23  ;;  %v5154_v30 = vrot.slane %v5126_v33, %v8151_v48  ;;  %v3789_v8 = vrot.slane %v8555_v63, %v8135_v62  ;;  %v3793_v6 = vrot.slane %v8555_v63, %v8138_v12 }
 0x459   : > { %v5155_v38 = vcombine.low %v5133_v51, %v5140_v45  ;;  %v3797_v55 = vrot.slane %v8555_v63, %v8141_v52  ;;  %v3801_v7 = vrot.slane %v8555_v63, %v8144_v37  ;;  %v3805_v47 = vrot.slane %v8555_v63, %v8147_v29 }
 0x45a   : > { %5723 = vperm.xlu0 %6462, %v5122_v21   ;;  %v5156_v36 = vcombine.low %v5147_v11, %v5154_v30  ;;  %v5172_v13 = vcombine.low %v3777_v0, %v3781_v40  ;;  %v5173_v9 = vcombine.low %v3785_v58, %v3789_v8  ;;  %v8655_v2 = vadd.f32 %v8132_v26, %v2988_v14  ;;  %v2994_v40 = vpop.xlane.xlu1 %2993 }
 0x45b   : > { %v5163_v16 = vrot.slane %v5155_v38, %v8151_v48  ;;  %v5174_v42 = vcombine.low %v3793_v6, %v3797_v55  ;;  %v5175_v18 = vcombine.low %v3801_v7, %v3805_v47  ;;  %v3809_v1 = vrot.slane %v8581_v32, %v7907_v5 }
 0x45c   : > { %v5170_v50 = vrot.slane %v5156_v36, %v8151_v48  ;;  %v5182_v39 = vrot.slane %v5172_v13, %v8151_v48  ;;  %v5189_v63 = vrot.slane %v5173_v9, %v8151_v48  ;;  %v3813_v24 = vrot.slane %v8581_v32, %v7904_v49 }
 0x45d   : > { %v5196_v41 = vrot.slane %v5174_v42, %v8151_v48  ;;  %v5203_v34 = vrot.slane %v5175_v18, %v8151_v48  ;;  %v3817_v3 = vrot.slane %v8581_v32, %v7915_v4  ;;  %v3821_v43 = vrot.slane %v8581_v32, %v8135_v62 }
 0x45e   : > { %v5171_v57 = vcombine.low %v5163_v16, %v5170_v50  ;;  %v5204_v53 = vcombine.low %v5182_v39, %v5189_v63  ;;  %v3825_v22 = vrot.slane %v8581_v32, %v8138_v12  ;;  %v3829_v35 = vrot.slane %v8581_v32, %v8141_v52 }
 0x45f   : > { %v5205_v10 = vcombine.low %v5196_v41, %v5203_v34  ;;  %v3833_v61 = vrot.slane %v8581_v32, %v8144_v37  ;;  %v3837_v19 = vrot.slane %v8581_v32, %v8147_v29  ;;  %v5221_v44 = vcombine.low %v3809_v1, %v3813_v24 }
 0x460   : > { %5726 = vperm.xlu1 %6461, %v5171_v57   ;;  %v5212_v28 = vrot.slane %v5204_v53, %v8151_v48  ;;  %v5222_v15 = vcombine.low %v3817_v3, %v3821_v43  ;;  %v5223_v27 = vcombine.low %v3825_v22, %v3829_v35  ;;  %v8681_v25 = vadd.f32 %v8132_v26, %v2991_v59 }
 0x461   : > { %v5219_v46 = vrot.slane %v5205_v10, %v8151_v48  ;;  %v5224_v23 = vcombine.low %v3833_v61, %v3837_v19  ;;  %v5231_v33 = vrot.slane %v5221_v44, %v8151_v48  ;;  %v3841_v51 = vrot.slane %v8605_v60, %v7907_v5 }
 0x462   : > { %v5238_v0 = vrot.slane %v5222_v15, %v8151_v48  ;;  %v5245_v32 = vrot.slane %v5223_v27, %v8151_v48  ;;  %v3845_v45 = vrot.slane %v8605_v60, %v7904_v49  ;;  %v3849_v11 = vrot.slane %v8605_v60, %v7915_v4 }
 0x463   : > { %v5220_v58 = vcombine.low %v5212_v28, %v5219_v46  ;;  %v5252_v14 = vrot.slane %v5224_v23, %v8151_v48  ;;  %v3853_v21 = vrot.slane %v8605_v60, %v8135_v62  ;;  %v3857_v30 = vrot.slane %v8605_v60, %v8138_v12 }
 0x464   : > { %v5253_v8 = vcombine.low %v5231_v33, %v5238_v0  ;;  %v3861_v6 = vrot.slane %v8605_v60, %v8141_v52  ;;  %v3865_v38 = vrot.slane %v8605_v60, %v8144_v37  ;;  %v3869_v55 = vrot.slane %v8605_v60, %v8147_v29 }
 0x465   : > { %5729 = vperm.xlu0 %6462, %v5220_v58   ;;  %v5254_v7 = vcombine.low %v5245_v32, %v5252_v14  ;;  %v5270_v47 = vcombine.low %v3841_v51, %v3845_v45  ;;  %v5271_v36 = vcombine.low %v3849_v11, %v3853_v21  ;;  %v8705_v13 = vadd.f32 %v8132_v26, %v2994_v40  ;;  %v3000_v32 = vpop.xlane.xlu1 %2999  ;;  %v2997_v14 = vpop.xlane.xlu0 %2996 }
 0x466   : > { %v5261_v9 = vrot.slane %v5253_v8, %v8151_v48  ;;  %v5272_v16 = vcombine.low %v3857_v30, %v3861_v6  ;;  %v5273_v42 = vcombine.low %v3865_v38, %v3869_v55  ;;  %v3521_v18 = vrot.slane %v8290_v17, %v7907_v5 }
 0x467   : > { %v5268_v1 = vrot.slane %v5254_v7, %v8151_v48  ;;  %v5280_v50 = vrot.slane %v5270_v47, %v8151_v48  ;;  %v5287_v60 = vrot.slane %v5271_v36, %v8151_v48  ;;  %v3525_v39 = vrot.slane %v8290_v17, %v7904_v49 }
 0x468   : > { %v5294_v63 = vrot.slane %v5272_v16, %v8151_v48  ;;  %v5301_v24 = vrot.slane %v5273_v42, %v8151_v48  ;;  %v3529_v41 = vrot.slane %v8290_v17, %v7915_v4  ;;  %v3533_v34 = vrot.slane %v8290_v17, %v8135_v62 }
 0x469   : > { %v5269_v3 = vcombine.low %v5261_v9, %v5268_v1  ;;  %v5302_v43 = vcombine.low %v5280_v50, %v5287_v60  ;;  %v3537_v59 = vrot.slane %v8290_v17, %v8138_v12  ;;  %v3541_v57 = vrot.slane %v8290_v17, %v8141_v52 }
 0x46a   : > { %v5303_v53 = vcombine.low %v5294_v63, %v5301_v24  ;;  %v3545_v22 = vrot.slane %v8290_v17, %v8144_v37  ;;  %v3549_v35 = vrot.slane %v8290_v17, %v8147_v29  ;;  %v4780_v10 = vcombine.low %v3521_v18, %v3525_v39 }
 0x46b   : > { %5732 = vperm.xlu1 %6461, %v5269_v3   ;;  %v5310_v61 = vrot.slane %v5302_v43, %v8151_v48  ;;  %v4781_v19 = vcombine.low %v3529_v41, %v3533_v34  ;;  %v4782_v44 = vcombine.low %v3537_v59, %v3541_v57  ;;  %v3873_v28 = vrot.slane %v8631_v20, %v7907_v5 }
 0x46c   : > { %v5317_v15 = vrot.slane %v5303_v53, %v8151_v48  ;;  %v4783_v27 = vcombine.low %v3545_v22, %v3549_v35  ;;  %v4790_v46 = vrot.slane %v4780_v10, %v8151_v48  ;;  %v3877_v23 = vrot.slane %v8631_v20, %v7904_v49 }
 0x46d   : > { %v4797_v33 = vrot.slane %v4781_v19, %v8151_v48  ;;  %v4804_v17 = vrot.slane %v4782_v44, %v8151_v48  ;;  %v3881_v51 = vrot.slane %v8631_v20, %v7915_v4  ;;  %v3885_v0 = vrot.slane %v8631_v20, %v8135_v62 }
 0x46e   : > { %v5318_v45 = vcombine.low %v5310_v61, %v5317_v15  ;;  %v4811_v11 = vrot.slane %v4783_v27, %v8151_v48  ;;  %v3889_v40 = vrot.slane %v8631_v20, %v8138_v12  ;;  %v3893_v58 = vrot.slane %v8631_v20, %v8141_v52 }
 0x46f   : > { %v4812_v21 = vcombine.low %v4790_v46, %v4797_v33  ;;  %v3897_v30 = vrot.slane %v8631_v20, %v8144_v37  ;;  %v3901_v8 = vrot.slane %v8631_v20, %v8147_v29  ;;  %v5319_v6 = vcombine.low %v3873_v28, %v3877_v23 }
 0x470   : > { %5735 = vperm.xlu0 %6462, %v5318_v45   ;;  %v4813_v38 = vcombine.low %v4804_v17, %v4811_v11  ;;  %v5320_v55 = vcombine.low %v3881_v51, %v3885_v0  ;;  %v5321_v7 = vcombine.low %v3889_v40, %v3893_v58  ;;  %v8752_v47 = vadd.f32 %v8132_v26, %v3000_v32  ;;  %v3003_v17 = vpop.xlane.xlu0 %3002 }
 0x471   : > { %v4820_v36 = vrot.slane %v4812_v21, %v8151_v48  ;;  %v5322_v9 = vcombine.low %v3897_v30, %v3901_v8  ;;  %v5329_v16 = vrot.slane %v5319_v6, %v8151_v48  ;;  %v8757_v42 = vadd.f32 %v8132_v26, %v2997_v14 }
 0x472   : > { %v4827_v18 = vrot.slane %v4813_v38, %v8151_v48  ;;  %v5336_v20 = vrot.slane %v5320_v55, %v8151_v48  ;;  %v5343_v1 = vrot.slane %v5321_v7, %v8151_v48  ;;  %v3553_v50 = vrot.slane %v8315_v54, %v7907_v5 }
 0x473   : > { %v5350_v60 = vrot.slane %v5322_v9, %v8151_v48  ;;  %v3557_v39 = vrot.slane %v8315_v54, %v7904_v49  ;;  %v3561_v63 = vrot.slane %v8315_v54, %v7915_v4  ;;  %v3565_v24 = vrot.slane %v8315_v54, %v8135_v62 }
 0x474   : > { %v4828_v41 = vcombine.low %v4820_v36, %v4827_v18  ;;  %v5351_v34 = vcombine.low %v5329_v16, %v5336_v20  ;;  %v3569_v3 = vrot.slane %v8315_v54, %v8138_v12  ;;  %v3573_v43 = vrot.slane %v8315_v54, %v8141_v52 }
 0x475   : > { %v5352_v59 = vcombine.low %v5343_v1, %v5350_v60  ;;  %v3577_v57 = vrot.slane %v8315_v54, %v8144_v37  ;;  %v3581_v53 = vrot.slane %v8315_v54, %v8147_v29  ;;  %v4829_v22 = vcombine.low %v3553_v50, %v3557_v39 }
 0x476   : > { %5705 = vperm.xlu0 %6462, %v4828_v41   ;;  %v5359_v35 = vrot.slane %v5351_v34, %v8151_v48  ;;  %v4830_v10 = vcombine.low %v3561_v63, %v3565_v24  ;;  %v4831_v61 = vcombine.low %v3569_v3, %v3573_v43  ;;  %v3905_v19 = vrot.slane %v8655_v2, %v7907_v5 }
 0x477   : > { %v5366_v44 = vrot.slane %v5352_v59, %v8151_v48  ;;  %v4832_v28 = vcombine.low %v3577_v57, %v3581_v53  ;;  %v4839_v15 = vrot.slane %v4829_v22, %v8151_v48  ;;  %v3909_v27 = vrot.slane %v8655_v2, %v7904_v49 }
 0x478   : > { %v4846_v46 = vrot.slane %v4830_v10, %v8151_v48  ;;  %v4853_v54 = vrot.slane %v4831_v61, %v8151_v48  ;;  %v3913_v23 = vrot.slane %v8655_v2, %v7915_v4  ;;  %v3917_v33 = vrot.slane %v8655_v2, %v8135_v62 }
 0x479   : > { %v5367_v51 = vcombine.low %v5359_v35, %v5366_v44  ;;  %v4860_v0 = vrot.slane %v4832_v28, %v8151_v48  ;;  %v3921_v32 = vrot.slane %v8655_v2, %v8138_v12  ;;  %v3925_v45 = vrot.slane %v8655_v2, %v8141_v52 }
 0x47a   : > { %v4861_v11 = vcombine.low %v4839_v15, %v4846_v46  ;;  %v3929_v40 = vrot.slane %v8655_v2, %v8144_v37  ;;  %v3933_v58 = vrot.slane %v8655_v2, %v8147_v29  ;;  %v5368_v14 = vcombine.low %v3905_v19, %v3909_v27 }
 0x47b   : > { %5738 = vperm.xlu1 %6461, %v5367_v51   ;;  %v4862_v21 = vcombine.low %v4853_v54, %v4860_v0  ;;  %v5369_v30 = vcombine.low %v3913_v23, %v3917_v33  ;;  %v5370_v8 = vcombine.low %v3921_v32, %v3925_v45  ;;  %v8802_v6 = vadd.f32 %v8132_v26, %v3003_v17 }
 0x47c   : > { %v4869_v38 = vrot.slane %v4861_v11, %v8151_v48  ;;  %v5371_v55 = vcombine.low %v3929_v40, %v3933_v58  ;;  %v5378_v7 = vrot.slane %v5368_v14, %v8151_v48  ;;  %v3937_v36 = vrot.slane %v8681_v25, %v7907_v5 }
 0x47d   : > { %v4876_v9 = vrot.slane %v4862_v21, %v8151_v48  ;;  %v5385_v2 = vrot.slane %v5369_v30, %v8151_v48  ;;  %v5392_v16 = vrot.slane %v5370_v8, %v8151_v48  ;;  %v3941_v18 = vrot.slane %v8681_v25, %v7904_v49 }
 0x47e   : > { %v5399_v26 = vrot.slane %v5371_v55, %v8151_v48  ;;  %v3945_v20 = vrot.slane %v8681_v25, %v7915_v4  ;;  %v3949_v1 = vrot.slane %v8681_v25, %v8135_v62  ;;  %v3953_v50 = vrot.slane %v8681_v25, %v8138_v12 }
 0x47f   : > { %v4877_v60 = vcombine.low %v4869_v38, %v4876_v9  ;;  %v5400_v39 = vcombine.low %v5378_v7, %v5385_v2  ;;  %v3957_v63 = vrot.slane %v8681_v25, %v8141_v52  ;;  %v3961_v24 = vrot.slane %v8681_v25, %v8144_v37 }
 0x480   : > { %v5401_v41 = vcombine.low %v5392_v16, %v5399_v26  ;;  %v3965_v34 = vrot.slane %v8681_v25, %v8147_v29  ;;  %v5417_v3 = vcombine.low %v3937_v36, %v3941_v18  ;;  %v5418_v43 = vcombine.low %v3945_v20, %v3949_v1 }
 0x481   : > { %5708 = vperm.xlu0 %6462, %v4877_v60   ;;  %v5408_v59 = vrot.slane %v5400_v39, %v8151_v48  ;;  %v5419_v57 = vcombine.low %v3953_v50, %v3957_v63  ;;  %v3969_v53 = vrot.slane %v8705_v13, %v7907_v5  ;;  %v3973_v22 = vrot.slane %v8705_v13, %v7904_v49 }
 0x482   : > { %v5415_v35 = vrot.slane %v5401_v41, %v8151_v48  ;;  %v5420_v10 = vcombine.low %v3961_v24, %v3965_v34  ;;  %v5427_v61 = vrot.slane %v5417_v3, %v8151_v48  ;;  %v5434_v19 = vrot.slane %v5418_v43, %v8151_v48 }
 0x483   : > { %v5441_v25 = vrot.slane %v5419_v57, %v8151_v48  ;;  %v3977_v44 = vrot.slane %v8705_v13, %v7915_v4  ;;  %v3981_v28 = vrot.slane %v8705_v13, %v8135_v62  ;;  %v3985_v15 = vrot.slane %v8705_v13, %v8138_v12 }
 0x484   : > { %v5416_v27 = vcombine.low %v5408_v59, %v5415_v35  ;;  %v5448_v46 = vrot.slane %v5420_v10, %v8151_v48  ;;  %v5449_v54 = vcombine.low %v5427_v61, %v5434_v19  ;;  %v3989_v23 = vrot.slane %v8705_v13, %v8141_v52 }
 0x485   : > { %v3993_v33 = vrot.slane %v8705_v13, %v8144_v37  ;;  %v3997_v17 = vrot.slane %v8705_v13, %v8147_v29  ;;  %v5466_v51 = vcombine.low %v3969_v53, %v3973_v22  ;;  %v5467_v0 = vcombine.low %v3977_v44, %v3981_v28 }
 0x486   : > { %5741 = vperm.xlu1 %6461, %v5416_v27   ;;  %v5450_v32 = vcombine.low %v5441_v25, %v5448_v46  ;;  %v5457_v45 = vrot.slane %v5449_v54, %v8151_v48  ;;  %v5468_v11 = vcombine.low %v3985_v15, %v3989_v23  ;;  %v4001_v40 = vrot.slane %v8757_v42, %v7907_v5 }
 0x487   : > { %v5469_v58 = vcombine.low %v3993_v33, %v3997_v17  ;;  %v5476_v14 = vrot.slane %v5466_v51, %v8151_v48  ;;  %v5483_v21 = vrot.slane %v5467_v0, %v8151_v48  ;;  %v4005_v30 = vrot.slane %v8757_v42, %v7904_v49 }
 0x488   : > { %v5464_v13 = vrot.slane %v5450_v32, %v8151_v48  ;;  %v5490_v8 = vrot.slane %v5468_v11, %v8151_v48  ;;  %v4009_v38 = vrot.slane %v8757_v42, %v7915_v4  ;;  %v4013_v55 = vrot.slane %v8757_v42, %v8135_v62 }
 0x489   : > { %v5497_v7 = vrot.slane %v5469_v58, %v8151_v48  ;;  %v5498_v36 = vcombine.low %v5476_v14, %v5483_v21  ;;  %v4017_v9 = vrot.slane %v8757_v42, %v8138_v12  ;;  %v4021_v2 = vrot.slane %v8757_v42, %v8141_v52 }
 0x48a   : > { %v5465_v16 = vcombine.low %v5457_v45, %v5464_v13  ;;  %v4025_v18 = vrot.slane %v8757_v42, %v8144_v37  ;;  %v4029_v26 = vrot.slane %v8757_v42, %v8147_v29  ;;  %v5515_v20 = vcombine.low %v4001_v40, %v4005_v30 }
 0x48b   : > { %v5499_v1 = vcombine.low %v5490_v8, %v5497_v7  ;;  %v5506_v50 = vrot.slane %v5498_v36, %v8151_v48  ;;  %v5516_v60 = vcombine.low %v4009_v38, %v4013_v55  ;;  %v5517_v39 = vcombine.low %v4017_v9, %v4021_v2 }
 0x48c   : > { %5744 = vperm.xlu1 %6461, %v5465_v16   ;;  %v5518_v63 = vcombine.low %v4025_v18, %v4029_v26  ;;  %v5525_v24 = vrot.slane %v5515_v20, %v8151_v48  ;;  %v4033_v41 = vrot.slane %v8752_v47, %v7907_v5  ;;  %v4037_v34 = vrot.slane %v8752_v47, %v7904_v49  ;;  %v5664_v18 = vpop.permute.xlu1 %5663 }
 0x48d   : > { %v5513_v3 = vrot.slane %v5499_v1, %v8151_v48  ;;  %v5532_v42 = vrot.slane %v5516_v60, %v8151_v48  ;;  %v5539_v43 = vrot.slane %v5517_v39, %v8151_v48  ;;  %v4041_v59 = vrot.slane %v8752_v47, %v7915_v4 }
 0x48e   : > { %v5546_v57 = vrot.slane %v5518_v63, %v8151_v48  ;;  %v4045_v53 = vrot.slane %v8752_v47, %v8135_v62  ;;  %v4049_v22 = vrot.slane %v8752_v47, %v8138_v12  ;;  %v4053_v35 = vrot.slane %v8752_v47, %v8141_v52  ;;  %v5667_v63 = vpop.permute.xlu0 %5666 }
 0x48f   : > { %v5514_v10 = vcombine.low %v5506_v50, %v5513_v3  ;;  %v5547_v61 = vcombine.low %v5525_v24, %v5532_v42  ;;  %v4057_v19 = vrot.slane %v8752_v47, %v8144_v37  ;;  %v4061_v25 = vrot.slane %v8752_v47, %v8147_v29 }
 0x490   : > { %v5548_v44 = vcombine.low %v5539_v43, %v5546_v57  ;;  %v5564_v28 = vcombine.low %v4033_v41, %v4037_v34  ;;  %v5565_v15 = vcombine.low %v4041_v59, %v4045_v53  ;;  %v5566_v27 = vcombine.low %v4049_v22, %v4053_v35  ;;  %v5670_v26 = vpop.permute.xlu1 %5669 }
 0x491   : > { %5747 = vperm.xlu1 %6461, %v5514_v10   ;;  %v5555_v46 = vrot.slane %v5547_v61, %v8151_v48  ;;  %v5567_v54 = vcombine.low %v4057_v19, %v4061_v25  ;;  %v4065_v23 = vrot.slane %v8802_v6, %v7907_v5  ;;  %v4069_v33 = vrot.slane %v8802_v6, %v7904_v49 }
 0x492   : > { %v5562_v17 = vrot.slane %v5548_v44, %v8151_v48  ;;  %v5574_v51 = vrot.slane %v5564_v28, %v8151_v48  ;;  %v5581_v47 = vrot.slane %v5565_v15, %v8151_v48  ;;  %v5588_v0 = vrot.slane %v5566_v27, %v8151_v48 }
 0x493   : > { %v5595_v32 = vrot.slane %v5567_v54, %v8151_v48  ;;  %v4073_v45 = vrot.slane %v8802_v6, %v7915_v4  ;;  %v4077_v11 = vrot.slane %v8802_v6, %v8135_v62  ;;  %v4081_v5 = vrot.slane %v8802_v6, %v8138_v12 }
 0x494   : > { %v5563_v49 = vcombine.low %v5555_v46, %v5562_v17  ;;  %v5596_v40 = vcombine.low %v5574_v51, %v5581_v47  ;;  %v4085_v58 = vrot.slane %v8802_v6, %v8141_v52  ;;  %v4089_v14 = vrot.slane %v8802_v6, %v8144_v37  ;;  %v5673_v20 = vpop.permute.xlu1 %5672 }
 0x495   : > { %v5597_v21 = vcombine.low %v5588_v0, %v5595_v32  ;;  %v4093_v30 = vrot.slane %v8802_v6, %v8147_v29  ;;  %v5613_v13 = vcombine.low %v4065_v23, %v4069_v33  ;;  %v5614_v4 = vcombine.low %v4073_v45, %v4077_v11 }
 0x496   : > { %5750 = vperm.xlu1 %6461, %v5563_v49   ;;  %v5604_v62 = vrot.slane %v5596_v40, %v8151_v48  ;;  %v5615_v8 = vcombine.low %v4081_v5, %v4085_v58  ;;  %v8947_v53 = vand.u32 127, %v2703_v56 }
 0x497   : > { %v5611_v12 = vrot.slane %v5597_v21, %v8151_v48  ;;  %v5616_v38 = vcombine.low %v4089_v14, %v4093_v30  ;;  %v5623_v55 = vrot.slane %v5613_v13, %v8151_v48  ;;  %v5630_v52 = vrot.slane %v5614_v4, %v8151_v48 }
 0x498   : > { %v5637_v7 = vrot.slane %v5615_v8, %v8151_v48  ;;  %v8922_v1 = vpop.permute.xlu1 %5675  ;;  %v5764_v35 = vadd.s32 4294967288, %v8947_v53  ;;  %v5771_v25 = vadd.s32 4294967280, %v8947_v53  ;;  %v8964_v28 = vsub.s32 %v8947_v53, %v7901_v31 }
 0x499   : > { %v5612_v37 = vcombine.low %v5604_v62, %v5611_v12  ;;  %v5644_v36 = vrot.slane %v5616_v38, %v8151_v48  ;;  %v5645_v9 = vcombine.low %v5623_v55, %v5630_v52  ;;  %v5778_v15 = vadd.s32 4294967272, %v8947_v53 }
 0x49a   : > { %v8955_v61 = vsub.s32 %v5764_v35, %v7901_v31  ;;  %v8969_v46 = vsub.s32 %v5771_v25, %v7901_v31  ;;  %v5785_v54 = vadd.s32 4294967264, %v8947_v53  ;;  %v5763_v33 = vrot.slane %v5664_v18, %v8964_v28 }
 0x49b   : > { %5753 = vperm.xlu1 %6461, %v5612_v37   ;;  %v5646_v29 = vcombine.low %v5637_v7, %v5644_v36  ;;  %v5653_v6 = vrot.slane %v5645_v9, %v8151_v48  ;;  %v5792_v17 = vadd.s32 4294967256, %v8947_v53  ;;  %v5799_v47 = vadd.s32 4294967248, %v8947_v53 }
 0x49c   : > { %v8924_v50 = vpop.permute.xlu1 %5678  ;;  %v5768_v27 = vrot.slane %v5667_v63, %v8955_v61  ;;  %v8980_v0 = vsub.s32 %v5778_v15, %v7901_v31  ;;  %v5806_v45 = vadd.s32 4294967240, %v8947_v53  ;;  %v5775_v11 = vrot.slane %v5670_v26, %v8969_v46 }
 0x49d   : > { %v5660_v2 = vrot.slane %v5646_v29, %v8151_v48  ;;  %v8986_v5 = vsub.s32 %v5785_v54, %v7901_v31  ;;  %v5813_v49 = vadd.s32 4294967232, %v8947_v53  ;;  %v8990_v58 = vsub.s32 %v5792_v17, %v7901_v31 }
 0x49e   : > { %v8932_v41 = vpop.permute.xlu0 %5693  ;;  %v5770_v32 = vsel %vm5769_vm0, %v5768_v27, %v5763_v33  ;;  %v5820_v14 = vadd.s32 4294967224, %v8947_v53  ;;  %v8995_v30 = vsub.s32 %v5799_v47, %v7901_v31  ;;  %v5782_v13 = vrot.slane %v5673_v20, %v8980_v0 }
 0x49f   : > { %v5661_v16 = vcombine.low %v5653_v6, %v5660_v2  ;;  %v5777_v21 = vsel %vm5776_vm6, %v5775_v11, %v5770_v32  ;;  %v8999_v4 = vsub.s32 %v5806_v45, %v7901_v31  ;;  %v5789_v8 = vrot.slane %v8922_v1, %v8986_v5 }
 0x4a0   : > { %v8926_v60 = vpop.permute.xlu1 %5681  ;;  %v9006_v12 = vsub.s32 %v5813_v49, %v7901_v31  ;;  %v5784_v55 = vsel %vm5783_vm13, %v5782_v13, %v5777_v21  ;;  %v5796_v52 = vrot.slane %v8924_v50, %v8990_v58  ;;  %v9012_v7 = vsub.s32 %v5820_v14, %v7901_v31 }
 0x4a1   : > { %5756 = vperm.xlu1 %6461, %v5661_v16   ;;  %v5803_v37 = vrot.slane %v8926_v60, %v8995_v30  ;;  %v5827_v36 = vadd.s32 4294967216, %v8947_v53  ;;  %v5834_v29 = vadd.s32 4294967208, %v8947_v53  ;;  %v5791_v6 = vsel %vm5790_vm14, %v5789_v8, %v5784_v55 }
 0x4a2   : > { %v5798_v26 = vsel %vm5797_vm15, %v5796_v52, %v5791_v6  ;;  %v5848_v27 = vadd.s32 4294967192, %v8947_v53  ;;  %v5855_v33 = vadd.s32 4294967184, %v8947_v53  ;;  %v5862_v32 = vadd.s32 4294967176, %v8947_v53 }
 0x4a3   : > { %v5805_v50 = vsel %vm5804_vm1, %v5803_v37, %v5798_v26  ;;  %v5830_v60 = vsub.s32 %v5827_v36, %v7901_v31 }
 0x4a4   : > { %v8928_v39 = vpop.permute.xlu1 %5684  ;;  %v5851_v49 = vsub.s32 %v5848_v27, %v7901_v31 }
 0x4a5   : > { %v5810_v9 = vrot.slane %v8928_v39, %v8999_v4 }
 0x4a7   : > { %v5812_v63 = vsel %vm5811_vm2, %v5810_v9, %v5805_v50 }
 0x4a8   : > { %v8930_v24 = vpop.permute.xlu1 %5687 }
 0x4a9   : > { %v5817_v2 = vrot.slane %v8930_v24, %v9006_v12  ;;  %v5837_v24 = vsub.s32 %v5834_v29, %v7901_v31 }
 0x4ae   : > { %v8936_v3 = vpop.permute.xlu0 %5696 }
 0x4b3   : > { %v8934_v34 = vpop.permute.xlu1 %5690 }
 0x4b4   : > { %v5824_v20 = vrot.slane %v8934_v34, %v9012_v7 }
 0x4b8   : > { %v8942_v59 = vpop.permute.xlu0 %5699 }
 0x4be   : > { %v8949_v22 = vpop.permute.xlu0 %5702 }
 0x4bf   : > { %v5852_v55 = vrot.slane %v8949_v22, %v5851_v49 }
 0x4c3   : > { %v8960_v44 = vpop.permute.xlu0 %5711 }
 0x4c4   : > { %v5872_v35 = vrot.slane %v8960_v44, %v8964_v28  ;;  %v5831_v28 = vrot.slane %v8932_v41, %v5830_v60 }
 0x4c9   : > { %v8938_v42 = vpop.permute.xlu1 %5714 }
 0x4ca   : > { %v5876_v1 = vrot.slane %v8938_v42, %v8955_v61  ;;  %v5819_v42 = vsel %vm5818_vm3, %v5817_v2, %v5812_v63  ;;  %v5841_v61 = vadd.s32 4294967200, %v8947_v53 }
 0x4cb   : > { %v5826_v15 = vsel %vm5825_vm4, %v5824_v20, %v5819_v42 }
 0x4cc   : > { %v5844_v45 = vsub.s32 %v5841_v61, %v7901_v31 }
 0x4ce   : > { %v8972_v23 = vpop.permute.xlu0 %5717  ;;  %v5845_v8 = vrot.slane %v8942_v59, %v5844_v45 }
 0x4cf   : > { %v5881_v39 = vrot.slane %v8972_v23, %v8969_v46  ;;  %v5877_v46 = vsel %vm5769_vm0, %v5876_v1, %v5872_v35 }
 0x4d4   : > { %v8940_v43 = vpop.permute.xlu1 %5720 }
 0x4d5   : > { %v5886_v34 = vrot.slane %v8940_v43, %v8980_v0  ;;  %v5882_v43 = vsel %vm5776_vm6, %v5881_v39, %v5877_v46 }
 0x4d7   : > { %v5887_v47 = vsel %vm5783_vm13, %v5886_v34, %v5882_v43 }
 0x4d9   : > { %v5724_v40 = vpop.permute.xlu0 %5723 }
 0x4da   : > { %v5891_v25 = vrot.slane %v5724_v40, %v8986_v5  ;;  %v5838_v5 = vrot.slane %v8936_v3, %v5837_v24  ;;  %v5865_v3 = vsub.s32 %v5862_v32, %v7901_v31 }
 0x4dc   : > { %v5892_v41 = vsel %vm5790_vm14, %v5891_v25, %v5887_v47 }
 0x4df   : > { %v8944_v57 = vpop.permute.xlu1 %5726 }
 0x4e0   : > { %v5896_v54 = vrot.slane %v8944_v57, %v8990_v58  ;;  %v5833_v57 = vsel %vm5832_vm5, %v5831_v28, %v5826_v15 }
 0x4e2   : > { %v5897_v40 = vsel %vm5797_vm15, %v5896_v54, %v5892_v41 }
 0x4e4   : > { %v5730_v38 = vpop.permute.xlu0 %5729 }
 0x4e5   : > { %v5901_v23 = vrot.slane %v5730_v38, %v8995_v30  ;;  %v5840_v30 = vsel %vm5839_vm7, %v5838_v5, %v5833_v57 }
 0x4e7   : > { %v5902_v53 = vsel %vm5804_vm1, %v5901_v23, %v5897_v40 }
 0x4ea   : > { %v8952_v10 = vpop.permute.xlu1 %5732 }
 0x4eb   : > { %v5906_v0 = vrot.slane %v8952_v10, %v8999_v4  ;;  %v5858_v10 = vsub.s32 %v5855_v33, %v7901_v31 }
 0x4ed   : > { %v5907_v13 = vsel %vm5811_vm2, %v5906_v0, %v5902_v53 }
 0x4ef   : > { %v5736_v16 = vpop.permute.xlu0 %5735 }
 0x4f0   : > { %v5911_v11 = vrot.slane %v5736_v16, %v9006_v12 }
 0x4f5   : > { %v5706_v17 = vpop.permute.xlu0 %5705 }
 0x4f6   : > { %v5859_v37 = vrot.slane %v5706_v17, %v5858_v10 }
 0x4fa   : > { %v8957_v19 = vpop.permute.xlu1 %5738 }
 0x4fb   : > { %v5916_v58 = vrot.slane %v8957_v19, %v9012_v7  ;;  %v5912_v19 = vsel %vm5818_vm3, %v5911_v11, %v5907_v13  ;;  %v5847_v7 = vsel %vm5846_vm8, %v5845_v8, %v5840_v30 }
 0x4fc   : > { %v5854_v6 = vsel %vm5853_vm9, %v5852_v55, %v5847_v7 }
 0x4fd   : > { %v5861_v16 = vsel %vm5860_vm10, %v5859_v37, %v5854_v6 }
 0x500   : > { %v5709_v12 = vpop.permute.xlu0 %5708 }
 0x501   : > { %v5866_v59 = vrot.slane %v5709_v12, %v5865_v3 }
 0x503   : > { %v5868_v26 = vsel %vm5867_vm11, %v5866_v59, %v5861_v16 }
 0x505   : > { %v8976_v51 = vpop.permute.xlu1 %5741 }
 0x506   : > { %v5921_v14 = vrot.slane %v8976_v51, %v5830_v60  ;;  %v5917_v51 = vsel %vm5825_vm4, %v5916_v58, %v5912_v19 }
 0x508   : > { %v5922_v31 = vsel %vm5832_vm5, %v5921_v14, %v5917_v51 }
 0x50b   : > { %v9001_v62 = vpop.permute.xlu1 %5744 }
 0x50c   : > { %v5926_v4 = vrot.slane %v9001_v62, %v5837_v24 }
 0x50e   : > { %v5927_v36 = vsel %vm5839_vm7, %v5926_v4, %v5922_v31 }
 0x510   : > { %v9023_v18 = vpop.permute.xlu1 %5747 }
 0x511   : > { %v5931_v38 = vrot.slane %v9023_v18, %v5844_v45 }
 0x513   : > { %v5932_v9 = vsel %vm5846_vm8, %v5931_v38, %v5927_v36 }
 0x515   : > { %v5751_v44 = vpop.permute.xlu1 %5750 }
 0x516   : > { %v5936_v52 = vrot.slane %v5751_v44, %v5851_v49 }
 0x518   : > { %v5937_v22 = vsel %vm5853_vm9, %v5936_v52, %v5932_v9 }
 0x51a   : > { %v5754_v21 = vpop.permute.xlu1 %5753 }
 0x51b   : > { %v5941_v62 = vrot.slane %v5754_v21, %v5858_v10 }
 0x51d   : > { %v5942_v18 = vsel %vm5860_vm10, %v5941_v62, %v5937_v22 }
 0x520   : > { %v5757_v29 = vpop.permute.xlu1 %5756 }
 0x521   : > { %v5946_v2 = vrot.slane %v5757_v29, %v5865_v3 }
 0x523   : > { %v5947_v20 = vsel %vm5867_vm11, %v5946_v2, %v5942_v18 }
 0x524   : > { %v5948_v1 = vcombine.low %v5868_v26, %v5947_v20 }
 0x526   : > { %v5955_v50 = vrot.slane %v5948_v1, %v8151_v48 }
 0x528   : > { %v5962_v60 = vrot.slane %v5955_v50, %v8151_v48 }
 0x52a   : > { %5968 = vst.msk [vmem:[%s277_s23] sm:$0x3] %vm5966_vm12, %v5962_v60 }
 0x52b PF: > { %s18_s26 = sadd.s32 1, %s6471_s26  }
 0x52c   : > { %p15_p4 = scmp.ge.s32.totalorder %s18_s26, 4  }
 0x52e   :  { %17 = sbr.rel (!%p15_p4) target bundleno = 2 (0x2), region = 82 }

</bundles_post_ra>
